<compile_context>
chip_gen: v6e
topology: v6e:2x2x1
jax: 0.10.0
libtpu: 0.0.40
codegen_flags: <defaults>
</compile_context>

<pallas_src>
import functools

import jax
import jax.numpy as jnp
from jax import lax
from jax.experimental import pallas as pl
from jax.experimental.pallas import tpu as pltpu


def _fused_upconv_instnorm_kernel(x_ref, w_ref, g_ref, b_ref, o_ref,
                                  xpad_ref, col_ref, *,
                                  k, cin, hu, wu, hp, wp, lp, ld,
                                  oh, ow, stride, inv_count, eps):
    """One (sample n, cout-tile) block: fused pad + im2col + deep matmul + instance norm.

    x_ref   : [Cin, Hu*Wu]   un-padded plane, flattened row-major (free wrapper reshape)
    w_ref   : [ct, K*K*Cin]  weights; column index = (ki*K + kj)*Cin + ci
    g_ref   : [ct, 1]        instance-norm gamma (f32)
    b_ref   : [ct, 1]        instance-norm beta  (f32)
    o_ref   : [ct, Ld]       normalized dense output slab (Ld = OHd * Wp, lane-dense)
    xpad_ref: [Cin, Lp]      VMEM scratch: reflect-padded plane, flattened, zeroed tail
    col_ref : [K*K*Cin, Ld]  VMEM scratch: im2col buffer (taps stacked on contraction)
    """
    # ---- 1. reflect pad + flatten, fused into VMEM (no wrapper HBM pad pass) -------
    for p in range(hp):                           # static unroll over padded rows
        src = p - 1                               # module hard-codes padding=1 (reflect)
        if src < 0:
            src = -src                            # reflect top
        if src > hu - 1:
            src = 2 * (hu - 1) - src              # reflect bottom
        row = x_ref[:, src * wu:(src + 1) * wu]   # [Cin, Wu]
        base = p * wp
        xpad_ref[:, base + 1:base + 1 + wu] = row              # interior columns
        xpad_ref[:, base:base + 1] = row[:, 1:2]                # left reflect column
        xpad_ref[:, base + wu + 1:base + wu + 2] = row[:, wu - 2:wu - 1]  # right reflect
    if lp > hp * wp:                              # keep over-read tail finite (masked cols)
        xpad_ref[:, hp * wp:lp] = jnp.zeros((cin, lp - hp * wp), xpad_ref.dtype)

    # ---- 2. im2col: one shifted copy per tap, concatenated along the contraction ----
    for t in range(k * k):
        ki, kj = divmod(t, k)
        off = ki * wp + kj                        # static element offset of this tap
        col_ref[t * cin:(t + 1) * cin, :] = xpad_ref[:, off:off + ld]

    # ---- 3. single deep MXU matmul (contraction = K*K*Cin), one accumulator write ---
    acc = jnp.dot(w_ref[...], col_ref[...], preferred_element_type=jnp.float32)  # [ct, Ld]

    # ---- 4. validity mask from an in-kernel iota (dense slab has K-1 junk columns
    #         per row; for stride > 1 only every s-th row/col is a real output) -------
    pos = lax.broadcasted_iota(jnp.int32, (1, ld), 1).astype(jnp.float32)
    r = jnp.floor((pos + 0.5) * (1.0 / wp))       # exact integer division via f32 trick
    c = pos - r * wp
    if stride == 1:
        m = (c < ow).astype(jnp.float32)          # all dense rows are valid at stride 1
    else:
        s = float(stride)
        rq = jnp.floor((r + 0.5) * (1.0 / s))
        cq = jnp.floor((c + 0.5) * (1.0 / s))
        m = ((c == cq * s) & (c <= s * (ow - 1)) &
             (r == rq * s) & (r <= s * (oh - 1))).astype(jnp.float32)

    # ---- 5. fused InstanceNorm2d (biased variance), one-pass masked statistics ------
    am = acc * m
    s1 = jnp.sum(am, axis=-1, keepdims=True)
    s2 = jnp.sum(am * acc, axis=-1, keepdims=True)      # m in {0,1} -> sum of acc^2
    mean = s1 * inv_count
    var = jnp.maximum(s2 * inv_count - mean * mean, 0.0)
    scale = lax.rsqrt(var + eps) * g_ref[...].astype(jnp.float32)
    shift = b_ref[...].astype(jnp.float32) - mean * scale
    o_ref[...] = (acc * scale + shift).astype(o_ref.dtype)


def upsample_conv_layer_forward(x, weight, gamma, beta, *, stride=1, upsample=None,
                                eps=1e-5, compute_dtype=jnp.bfloat16):
    """UpsampleConvLayer.forward (norm_type='instance', the module default).

    x:      [N, Cin, H, W]  float32 (NCHW)
    weight: [Cout, Cin, K, K];  gamma, beta: [Cout]  InstanceNorm2d affine parameters
    returns [N, Cout, OH, OW]

    Conv bias is intentionally omitted: a per-channel constant is cancelled exactly by
    the instance-norm mean subtraction.  compute_dtype controls the streamed operand
    dtype (default bf16; accumulation and all norm math stay f32).  Pass
    compute_dtype=jnp.float32 for bit-tight results.
    """
    if upsample:
        up = int(upsample)
        # TODO(synk): fuse the nearest upsample into the kernel (phase decomposition of
        # the KxK conv over the original-resolution plane) to avoid this up^2-sized HBM
        # materialization; non-integer F.interpolate scale factors are not supported.
        x_in = jnp.repeat(jnp.repeat(x, up, axis=2), up, axis=3)
    else:
        x_in = x

    N, Cin, Hu, Wu = x_in.shape
    Cout, _, K, _ = weight.shape
    pad = 1                                    # the module hard-codes padding=1 (reflect)
    s = int(stride)

    Hp, Wp = Hu + 2 * pad, Wu + 2 * pad
    OHd = Hp - K + 1                           # dense (stride-1) conv row count
    OH = (Hp - K) // s + 1                     # strided output (what the module returns)
    OW = (Wp - K) // s + 1
    Ld = OHd * Wp                              # dense output slab (row-major, width Wp)
    Lx = Hu * Wu
    Lp = ((Hp * Wp + K - 1 + 127) // 128) * 128   # padded-plane scratch length

    cdt = jnp.dtype(compute_dtype) if compute_dtype is not None else jnp.dtype(x.dtype)
    out_dtype = x.dtype
    item = jnp.dtype(cdt).itemsize

    xk = x_in.reshape(N, Cin, Lx).astype(cdt)             # free reshape; pad is in-kernel
    KKC = K * K * Cin
    w2d = weight.transpose(0, 2, 3, 1).reshape(Cout, KKC).astype(cdt)
    g2 = gamma.reshape(Cout, 1).astype(jnp.float32)
    b2 = beta.reshape(Cout, 1).astype(jnp.float32)

    # ---- Cout tile + explicit VMEM budget -------------------------------------------
    def _est_bytes(ct_):
        kkc_pad = ((KKC + 7) // 8) * 8
        return (2 * Cin * Lx * item                          # x block (double-buffered)
                + 2 * ct_ * KKC * item                       # weight block
                + 2 * ct_ * Ld * jnp.dtype(out_dtype).itemsize   # output block
                + Cin * Lp * item                            # padded-plane scratch
                + kkc_pad * Ld * item                        # im2col scratch
                + 3 * ct_ * Ld * 4)                          # f32 acc + epilogue temps

    try:
        phys_vmem = int(pltpu.get_tpu_info().vmem_capacity_bytes)
    except Exception:
        phys_vmem = 64 * 2**20                 # conservative default (v7x per-core VMEM)
    budget = (phys_vmem * 7) // 8              # headroom for Mosaic internal scratch

    divisors = [c for c in (256, 128, 64) if Cout % c == 0]
    ct = Cout
    for c in divisors:                         # largest Cout tile that fits the budget
        if _est_bytes(c) <= budget:
            ct = c
            break
    else:
        if divisors:
            ct = divisors[-1]
    n_ct = Cout // ct
    # TODO(synk): for planes too large for a whole-plane block (realistic style-transfer
    # resolutions vs. v7x's 64 MiB VMEM), add a spatial row-strip grid axis with a
    # (K-1)-row halo and a two-pass instance norm (conv + partial stats, then normalize).
    vmem_limit = int(min(max(int(1.25 * _est_bytes(ct)), 32 * 2**20), budget))

    kernel = functools.partial(
        _fused_upconv_instnorm_kernel,
        k=K, cin=Cin, hu=Hu, wu=Wu, hp=Hp, wp=Wp, lp=Lp, ld=Ld,
        oh=OH, ow=OW, stride=s,
        inv_count=1.0 / float(OH * OW), eps=float(eps))

    out = pl.pallas_call(
        kernel,
        out_shape=jax.ShapeDtypeStruct((N, Cout, Ld), out_dtype),
        grid=(N, n_ct),
        in_specs=[
            pl.BlockSpec((None, Cin, Lx), lambda n, c: (n, 0, 0)),   # un-padded plane
            pl.BlockSpec((ct, KKC), lambda n, c: (c, 0)),            # folded weights
            pl.BlockSpec((ct, 1), lambda n, c: (c, 0)),              # gamma
            pl.BlockSpec((ct, 1), lambda n, c: (c, 0)),              # beta
        ],
        out_specs=pl.BlockSpec((None, ct, Ld), lambda n, c: (n, c, 0)),
        scratch_shapes=[pltpu.VMEM((Cin, Lp), cdt),                  # padded plane
                        pltpu.VMEM((KKC, Ld), cdt)],                 # im2col buffer
        compiler_params=pltpu.CompilerParams(
            dimension_semantics=("parallel", "parallel"),
            vmem_limit_bytes=vmem_limit),
    )(xk, w2d, g2, b2)

    # Dense slab [N, Cout, OHd, Wp] -> the module's (strided) valid window.
    out = out.reshape(N, Cout, OHd, Wp)
    if s == 1:
        out = out[:, :, :, :OW]
    else:
        # TODO(synk): for stride > 1 the kernel still computes the dense conv and masks
        # the statistics; emitting only the strided positions would cut MXU work ~s^2.
        out = out[:, :, ::s, ::s][:, :, :OH, :OW]
    return out
    # TODO(synk): norm_type='batch' and norm_type='None' branches are not implemented;
    # only the default 'instance' path is.


def _reference(x, weight, bias, gamma, beta, *, stride, upsample, eps=1e-5):
    """Plain-JAX reference matching the PyTorch forward (bias included on purpose)."""
    if upsample:
        up = int(upsample)
        x = jnp.repeat(jnp.repeat(x, up, axis=2), up, axis=3)
    xp = jnp.pad(x, ((0, 0), (0, 0), (1, 1), (1, 1)), mode="reflect")
    y = lax.conv_general_dilated(
        xp, weight, (stride, stride), "VALID",
        dimension_numbers=("NCHW", "OIHW", "NCHW"))
    y = y + bias.reshape(1, -1, 1, 1)
    mean = y.mean(axis=(2, 3), keepdims=True)
    var = ((y - mean) ** 2).mean(axis=(2, 3), keepdims=True)
    yn = (y - mean) / jnp.sqrt(var + eps)
    return yn * gamma.reshape(1, -1, 1, 1) + beta.reshape(1, -1, 1, 1)


if __name__ == "__main__":
    # UpsampleConvLayer(4, 8, kernel_size=3, stride=1, upsample=2) at small shapes.
    N, Cin, Cout, K = 2, 4, 8, 3
    H = W = 16

    key = jax.random.PRNGKey(0)
    kx, kw, kb, kg, kbe = jax.random.split(key, 5)

    x = jax.random.normal(kx, (N, Cin, H, W), dtype=jnp.float32)
    fan_in = Cin * K * K
    bound = 1.0 / (fan_in ** 0.5)
    weight = jax.random.uniform(kw, (Cout, Cin, K, K), jnp.float32, -bound, bound)
    bias = jax.random.uniform(kb, (Cout,), jnp.float32, -bound, bound)
    gamma = 1.0 + 0.1 * jax.random.normal(kg, (Cout,), jnp.float32)
    beta = 0.1 * jax.random.normal(kbe, (Cout,), jnp.float32)

    # Canonical config: nearest upsample x2, stride-1 reflect conv, instance norm.
    ref = _reference(x, weight, bias, gamma, beta, stride=1, upsample=2)

    # f32 streamed operands: bit-tight check.
    out_f32 = jax.block_until_ready(
        upsample_conv_layer_forward(x, weight, gamma, beta, stride=1, upsample=2,
                                    compute_dtype=jnp.float32))
    assert out_f32.shape == ref.shape == (N, Cout, 2 * H, 2 * W)
    assert jnp.allclose(out_f32, ref, rtol=1e-4, atol=1e-4), \
        float(jnp.abs(out_f32 - ref).max())

    # Default (bf16 streamed operands, f32 accumulation): sanity band.
    out_bf16 = jax.block_until_ready(
        upsample_conv_layer_forward(x, weight, gamma, beta, stride=1, upsample=2))
    assert out_bf16.shape == ref.shape
    assert jnp.allclose(out_bf16, ref, rtol=1e-1, atol=1e-1), \
        float(jnp.abs(out_bf16 - ref).max())

    # Generic strided path (upsample=None, stride=2), f32 operands.
    ref2 = _reference(x, weight, bias, gamma, beta, stride=2, upsample=None)
    out2 = jax.block_until_ready(
        upsample_conv_layer_forward(x, weight, gamma, beta, stride=2, upsample=None,
                                    compute_dtype=jnp.float32))
    assert out2.shape == ref2.shape
    assert jnp.allclose(out2, ref2, rtol=1e-4, atol=1e-4), \
        float(jnp.abs(out2 - ref2).max())

    print("KERNEL_OK")
</pallas_src>

<mosaic_0001>
module attributes {stable_mosaic.version = 11 : i64} {
  func.func @_fused_upconv_instnorm_kernel(%arg0: i32, %arg1: i32, %arg2: memref<1x4x1024xf32, #tpu.memory_space<vmem>>, %arg3: memref<8x36xf32, #tpu.memory_space<vmem>>, %arg4: memref<8x1xf32, #tpu.memory_space<vmem>>, %arg5: memref<8x1xf32, #tpu.memory_space<vmem>>, %arg6: memref<1x8x1088xf32, #tpu.memory_space<vmem>>, %arg7: memref<4x1280xf32, #tpu.memory_space<vmem>>, %arg8: memref<36x1088xf32, #tpu.memory_space<vmem>>) attributes {dimension_semantics = [#tpu.dimension_semantics<parallel>, #tpu.dimension_semantics<parallel>], iteration_bounds = array<i64: 2, 1>, scalar_prefetch = 0 : i64, scratch_operands = 2 : i64, tpu.core_type = #tpu.core_type<tc>, window_params = [{transform_indices = @transform_0, window_bounds = array<i64: 1, 4, 1024>}, {transform_indices = @transform_1, window_bounds = array<i64: 8, 36>}, {transform_indices = @transform_2, window_bounds = array<i64: 8, 1>}, {transform_indices = @transform_3, window_bounds = array<i64: 8, 1>}, {transform_indices = @transform_4, window_bounds = array<i64: 1, 8, 1088>}]} {
    %c0 = arith.constant 0 : index
    %c0_0 = arith.constant 0 : index
    %c32 = arith.constant 32 : index
    %0 = vector.load %arg2[%c0, %c0_0, %c32] : memref<1x4x1024xf32, #tpu.memory_space<vmem>>, vector<1x4x32xf32>
    %1 = vector.shape_cast %0 : vector<1x4x32xf32> to vector<4x32xf32>
    %c0_1 = arith.constant 0 : index
    %c1 = arith.constant 1 : index
    %2 = vector.load %arg7[%c0_1, %c1] : memref<4x1280xf32, #tpu.memory_space<vmem>>, vector<4x32xf32>
    tpu.vector_store %arg7[%c0_1, %c1], %1 {strides = array<i32>} : memref<4x1280xf32, #tpu.memory_space<vmem>>, vector<4x32xf32>,
    %3 = vector.extract_strided_slice %1 {offsets = [0, 1], sizes = [4, 1], strides = [1, 1]} : vector<4x32xf32> to vector<4x1xf32>
    %c0_2 = arith.constant 0 : index
    %c0_3 = arith.constant 0 : index
    %4 = vector.load %arg7[%c0_2, %c0_3] : memref<4x1280xf32, #tpu.memory_space<vmem>>, vector<4x1xf32>
    tpu.vector_store %arg7[%c0_2, %c0_3], %3 {strides = array<i32>} : memref<4x1280xf32, #tpu.memory_space<vmem>>, vector<4x1xf32>,
    %5 = vector.extract_strided_slice %1 {offsets = [0, 30], sizes = [4, 1], strides = [1, 1]} : vector<4x32xf32> to vector<4x1xf32>
    %c0_4 = arith.constant 0 : index
    %c33 = arith.constant 33 : index
    %6 = vector.load %arg7[%c0_4, %c33] : memref<4x1280xf32, #tpu.memory_space<vmem>>, vector<4x1xf32>
    tpu.vector_store %arg7[%c0_4, %c33], %5 {strides = array<i32>} : memref<4x1280xf32, #tpu.memory_space<vmem>>, vector<4x1xf32>,
    %c0_5 = arith.constant 0 : index
    %c0_6 = arith.constant 0 : index
    %c0_7 = arith.constant 0 : index
    %7 = vector.load %arg2[%c0_5, %c0_6, %c0_7] : memref<1x4x1024xf32, #tpu.memory_space<vmem>>, vector<1x4x32xf32>
    %8 = vector.shape_cast %7 : vector<1x4x32xf32> to vector<4x32xf32>
    %c0_8 = arith.constant 0 : index
    %c35 = arith.constant 35 : index
    %9 = vector.load %arg7[%c0_8, %c35] : memref<4x1280xf32, #tpu.memory_space<vmem>>, vector<4x32xf32>
    tpu.vector_store %arg7[%c0_8, %c35], %8 {strides = array<i32>} : memref<4x1280xf32, #tpu.memory_space<vmem>>, vector<4x32xf32>,
    %10 = vector.extract_strided_slice %8 {offsets = [0, 1], sizes = [4, 1], strides = [1, 1]} : vector<4x32xf32> to vector<4x1xf32>
    %c0_9 = arith.constant 0 : index
    %c34 = arith.constant 34 : index
    %11 = vector.load %arg7[%c0_9, %c34] : memref<4x1280xf32, #tpu.memory_space<vmem>>, vector<4x1xf32>
    tpu.vector_store %arg7[%c0_9, %c34], %10 {strides = array<i32>} : memref<4x1280xf32, #tpu.memory_space<vmem>>, vector<4x1xf32>,
    %12 = vector.extract_strided_slice %8 {offsets = [0, 30], sizes = [4, 1], strides = [1, 1]} : vector<4x32xf32> to vector<4x1xf32>
    %c0_10 = arith.constant 0 : index
    %c67 = arith.constant 67 : index
    %13 = vector.load %arg7[%c0_10, %c67] : memref<4x1280xf32, #tpu.memory_space<vmem>>, vector<4x1xf32>
    tpu.vector_store %arg7[%c0_10, %c67], %12 {strides = array<i32>} : memref<4x1280xf32, #tpu.memory_space<vmem>>, vector<4x1xf32>,
    %c0_11 = arith.constant 0 : index
    %c0_12 = arith.constant 0 : index
    %c32_13 = arith.constant 32 : index
    %14 = vector.load %arg2[%c0_11, %c0_12, %c32_13] : memref<1x4x1024xf32, #tpu.memory_space<vmem>>, vector<1x4x32xf32>
    %15 = vector.shape_cast %14 : vector<1x4x32xf32> to vector<4x32xf32>
    %c0_14 = arith.constant 0 : index
    %c69 = arith.constant 69 : index
    %16 = vector.load %arg7[%c0_14, %c69] : memref<4x1280xf32, #tpu.memory_space<vmem>>, vector<4x32xf32>
    tpu.vector_store %arg7[%c0_14, %c69], %15 {strides = array<i32>} : memref<4x1280xf32, #tpu.memory_space<vmem>>, vector<4x32xf32>,
    %17 = vector.extract_strided_slice %15 {offsets = [0, 1], sizes = [4, 1], strides = [1, 1]} : vector<4x32xf32> to vector<4x1xf32>
    %c0_15 = arith.constant 0 : index
    %c68 = arith.constant 68 : index
    %18 = vector.load %arg7[%c0_15, %c68] : memref<4x1280xf32, #tpu.memory_space<vmem>>, vector<4x1xf32>
    tpu.vector_store %arg7[%c0_15, %c68], %17 {strides = array<i32>} : memref<4x1280xf32, #tpu.memory_space<vmem>>, vector<4x1xf32>,
    %19 = vector.extract_strided_slice %15 {offsets = [0, 30], sizes = [4, 1], strides = [1, 1]} : vector<4x32xf32> to vector<4x1xf32>
    %c0_16 = arith.constant 0 : index
    %c101 = arith.constant 101 : index
    %20 = vector.load %arg7[%c0_16, %c101] : memref<4x1280xf32, #tpu.memory_space<vmem>>, vector<4x1xf32>
    tpu.vector_store %arg7[%c0_16, %c101], %19 {strides = array<i32>} : memref<4x1280xf32, #tpu.memory_space<vmem>>, vector<4x1xf32>,
    %c0_17 = arith.constant 0 : index
    %c0_18 = arith.constant 0 : index
    %c64 = arith.constant 64 : index
    %21 = vector.load %arg2[%c0_17, %c0_18, %c64] : memref<1x4x1024xf32, #tpu.memory_space<vmem>>, vector<1x4x32xf32>
    %22 = vector.shape_cast %21 : vector<1x4x32xf32> to vector<4x32xf32>
    %c0_19 = arith.constant 0 : index
    %c103 = arith.constant 103 : index
    %23 = vector.load %arg7[%c0_19, %c103] : memref<4x1280xf32, #tpu.memory_space<vmem>>, vector<4x32xf32>
    tpu.vector_store %arg7[%c0_19, %c103], %22 {strides = array<i32>} : memref<4x1280xf32, #tpu.memory_space<vmem>>, vector<4x32xf32>,
    %24 = vector.extract_strided_slice %22 {offsets = [0, 1], sizes = [4, 1], strides = [1, 1]} : vector<4x32xf32> to vector<4x1xf32>
    %c0_20 = arith.constant 0 : index
    %c102 = arith.constant 102 : index
    %25 = vector.load %arg7[%c0_20, %c102] : memref<4x1280xf32, #tpu.memory_space<vmem>>, vector<4x1xf32>
    tpu.vector_store %arg7[%c0_20, %c102], %24 {strides = array<i32>} : memref<4x1280xf32, #tpu.memory_space<vmem>>, vector<4x1xf32>,
    %26 = vector.extract_strided_slice %22 {offsets = [0, 30], sizes = [4, 1], strides = [1, 1]} : vector<4x32xf32> to vector<4x1xf32>
    %c0_21 = arith.constant 0 : index
    %c135 = arith.constant 135 : index
    %27 = vector.load %arg7[%c0_21, %c135] : memref<4x1280xf32, #tpu.memory_space<vmem>>, vector<4x1xf32>
    tpu.vector_store %arg7[%c0_21, %c135], %26 {strides = array<i32>} : memref<4x1280xf32, #tpu.memory_space<vmem>>, vector<4x1xf32>,
    %c0_22 = arith.constant 0 : index
    %c0_23 = arith.constant 0 : index
    %c96 = arith.constant 96 : index
    %28 = vector.load %arg2[%c0_22, %c0_23, %c96] : memref<1x4x1024xf32, #tpu.memory_space<vmem>>, vector<1x4x32xf32>
    %29 = vector.shape_cast %28 : vector<1x4x32xf32> to vector<4x32xf32>
    %c0_24 = arith.constant 0 : index
    %c137 = arith.constant 137 : index
    %30 = vector.load %arg7[%c0_24, %c137] : memref<4x1280xf32, #tpu.memory_space<vmem>>, vector<4x32xf32>
    tpu.vector_store %arg7[%c0_24, %c137], %29 {strides = array<i32>} : memref<4x1280xf32, #tpu.memory_space<vmem>>, vector<4x32xf32>,
    %31 = vector.extract_strided_slice %29 {offsets = [0, 1], sizes = [4, 1], strides = [1, 1]} : vector<4x32xf32> to vector<4x1xf32>
    %c0_25 = arith.constant 0 : index
    %c136 = arith.constant 136 : index
    %32 = vector.load %arg7[%c0_25, %c136] : memref<4x1280xf32, #tpu.memory_space<vmem>>, vector<4x1xf32>
    tpu.vector_store %arg7[%c0_25, %c136], %31 {strides = array<i32>} : memref<4x1280xf32, #tpu.memory_space<vmem>>, vector<4x1xf32>,
    %33 = vector.extract_strided_slice %29 {offsets = [0, 30], sizes = [4, 1], strides = [1, 1]} : vector<4x32xf32> to vector<4x1xf32>
    %c0_26 = arith.constant 0 : index
    %c169 = arith.constant 169 : index
    %34 = vector.load %arg7[%c0_26, %c169] : memref<4x1280xf32, #tpu.memory_space<vmem>>, vector<4x1xf32>
    tpu.vector_store %arg7[%c0_26, %c169], %33 {strides = array<i32>} : memref<4x1280xf32, #tpu.memory_space<vmem>>, vector<4x1xf32>,
    %c0_27 = arith.constant 0 : index
    %c0_28 = arith.constant 0 : index
    %c128 = arith.constant 128 : index
    %35 = vector.load %arg2[%c0_27, %c0_28, %c128] : memref<1x4x1024xf32, #tpu.memory_space<vmem>>, vector<1x4x32xf32>
    %36 = vector.shape_cast %35 : vector<1x4x32xf32> to vector<4x32xf32>
    %c0_29 = arith.constant 0 : index
    %c171 = arith.constant 171 : index
    %37 = vector.load %arg7[%c0_29, %c171] : memref<4x1280xf32, #tpu.memory_space<vmem>>, vector<4x32xf32>
    tpu.vector_store %arg7[%c0_29, %c171], %36 {strides = array<i32>} : memref<4x1280xf32, #tpu.memory_space<vmem>>, vector<4x32xf32>,
    %38 = vector.extract_strided_slice %36 {offsets = [0, 1], sizes = [4, 1], strides = [1, 1]} : vector<4x32xf32> to vector<4x1xf32>
    %c0_30 = arith.constant 0 : index
    %c170 = arith.constant 170 : index
    %39 = vector.load %arg7[%c0_30, %c170] : memref<4x1280xf32, #tpu.memory_space<vmem>>, vector<4x1xf32>
    tpu.vector_store %arg7[%c0_30, %c170], %38 {strides = array<i32>} : memref<4x1280xf32, #tpu.memory_space<vmem>>, vector<4x1xf32>,
    %40 = vector.extract_strided_slice %36 {offsets = [0, 30], sizes = [4, 1], strides = [1, 1]} : vector<4x32xf32> to vector<4x1xf32>
    %c0_31 = arith.constant 0 : index
    %c203 = arith.constant 203 : index
    %41 = vector.load %arg7[%c0_31, %c203] : memref<4x1280xf32, #tpu.memory_space<vmem>>, vector<4x1xf32>
    tpu.vector_store %arg7[%c0_31, %c203], %40 {strides = array<i32>} : memref<4x1280xf32, #tpu.memory_space<vmem>>, vector<4x1xf32>,
    %c0_32 = arith.constant 0 : index
    %c0_33 = arith.constant 0 : index
    %c160 = arith.constant 160 : index
    %42 = vector.load %arg2[%c0_32, %c0_33, %c160] : memref<1x4x1024xf32, #tpu.memory_space<vmem>>, vector<1x4x32xf32>
    %43 = vector.shape_cast %42 : vector<1x4x32xf32> to vector<4x32xf32>
    %c0_34 = arith.constant 0 : index
    %c205 = arith.constant 205 : index
    %44 = vector.load %arg7[%c0_34, %c205] : memref<4x1280xf32, #tpu.memory_space<vmem>>, vector<4x32xf32>
    tpu.vector_store %arg7[%c0_34, %c205], %43 {strides = array<i32>} : memref<4x1280xf32, #tpu.memory_space<vmem>>, vector<4x32xf32>,
    %45 = vector.extract_strided_slice %43 {offsets = [0, 1], sizes = [4, 1], strides = [1, 1]} : vector<4x32xf32> to vector<4x1xf32>
    %c0_35 = arith.constant 0 : index
    %c204 = arith.constant 204 : index
    %46 = vector.load %arg7[%c0_35, %c204] : memref<4x1280xf32, #tpu.memory_space<vmem>>, vector<4x1xf32>
    tpu.vector_store %arg7[%c0_35, %c204], %45 {strides = array<i32>} : memref<4x1280xf32, #tpu.memory_space<vmem>>, vector<4x1xf32>,
    %47 = vector.extract_strided_slice %43 {offsets = [0, 30], sizes = [4, 1], strides = [1, 1]} : vector<4x32xf32> to vector<4x1xf32>
    %c0_36 = arith.constant 0 : index
    %c237 = arith.constant 237 : index
    %48 = vector.load %arg7[%c0_36, %c237] : memref<4x1280xf32, #tpu.memory_space<vmem>>, vector<4x1xf32>
    tpu.vector_store %arg7[%c0_36, %c237], %47 {strides = array<i32>} : memref<4x1280xf32, #tpu.memory_space<vmem>>, vector<4x1xf32>,
    %c0_37 = arith.constant 0 : index
    %c0_38 = arith.constant 0 : index
    %c192 = arith.constant 192 : index
    %49 = vector.load %arg2[%c0_37, %c0_38, %c192] : memref<1x4x1024xf32, #tpu.memory_space<vmem>>, vector<1x4x32xf32>
    %50 = vector.shape_cast %49 : vector<1x4x32xf32> to vector<4x32xf32>
    %c0_39 = arith.constant 0 : index
    %c239 = arith.constant 239 : index
    %51 = vector.load %arg7[%c0_39, %c239] : memref<4x1280xf32, #tpu.memory_space<vmem>>, vector<4x32xf32>
    tpu.vector_store %arg7[%c0_39, %c239], %50 {strides = array<i32>} : memref<4x1280xf32, #tpu.memory_space<vmem>>, vector<4x32xf32>,
    %52 = vector.extract_strided_slice %50 {offsets = [0, 1], sizes = [4, 1], strides = [1, 1]} : vector<4x32xf32> to vector<4x1xf32>
    %c0_40 = arith.constant 0 : index
    %c238 = arith.constant 238 : index
    %53 = vector.load %arg7[%c0_40, %c238] : memref<4x1280xf32, #tpu.memory_space<vmem>>, vector<4x1xf32>
    tpu.vector_store %arg7[%c0_40, %c238], %52 {strides = array<i32>} : memref<4x1280xf32, #tpu.memory_space<vmem>>, vector<4x1xf32>,
    %54 = vector.extract_strided_slice %50 {offsets = [0, 30], sizes = [4, 1], strides = [1, 1]} : vector<4x32xf32> to vector<4x1xf32>
    %c0_41 = arith.constant 0 : index
    %c271 = arith.constant 271 : index
    %55 = vector.load %arg7[%c0_41, %c271] : memref<4x1280xf32, #tpu.memory_space<vmem>>, vector<4x1xf32>
    tpu.vector_store %arg7[%c0_41, %c271], %54 {strides = array<i32>} : memref<4x1280xf32, #tpu.memory_space<vmem>>, vector<4x1xf32>,
    %c0_42 = arith.constant 0 : index
    %c0_43 = arith.constant 0 : index
    %c224 = arith.constant 224 : index
    %56 = vector.load %arg2[%c0_42, %c0_43, %c224] : memref<1x4x1024xf32, #tpu.memory_space<vmem>>, vector<1x4x32xf32>
    %57 = vector.shape_cast %56 : vector<1x4x32xf32> to vector<4x32xf32>
    %c0_44 = arith.constant 0 : index
    %c273 = arith.constant 273 : index
    %58 = vector.load %arg7[%c0_44, %c273] : memref<4x1280xf32, #tpu.memory_space<vmem>>, vector<4x32xf32>
    tpu.vector_store %arg7[%c0_44, %c273], %57 {strides = array<i32>} : memref<4x1280xf32, #tpu.memory_space<vmem>>, vector<4x32xf32>,
    %59 = vector.extract_strided_slice %57 {offsets = [0, 1], sizes = [4, 1], strides = [1, 1]} : vector<4x32xf32> to vector<4x1xf32>
    %c0_45 = arith.constant 0 : index
    %c272 = arith.constant 272 : index
    %60 = vector.load %arg7[%c0_45, %c272] : memref<4x1280xf32, #tpu.memory_space<vmem>>, vector<4x1xf32>
    tpu.vector_store %arg7[%c0_45, %c272], %59 {strides = array<i32>} : memref<4x1280xf32, #tpu.memory_space<vmem>>, vector<4x1xf32>,
    %61 = vector.extract_strided_slice %57 {offsets = [0, 30], sizes = [4, 1], strides = [1, 1]} : vector<4x32xf32> to vector<4x1xf32>
    %c0_46 = arith.constant 0 : index
    %c305 = arith.constant 305 : index
    %62 = vector.load %arg7[%c0_46, %c305] : memref<4x1280xf32, #tpu.memory_space<vmem>>, vector<4x1xf32>
    tpu.vector_store %arg7[%c0_46, %c305], %61 {strides = array<i32>} : memref<4x1280xf32, #tpu.memory_space<vmem>>, vector<4x1xf32>,
    %c0_47 = arith.constant 0 : index
    %c0_48 = arith.constant 0 : index
    %c256 = arith.constant 256 : index
    %63 = vector.load %arg2[%c0_47, %c0_48, %c256] : memref<1x4x1024xf32, #tpu.memory_space<vmem>>, vector<1x4x32xf32>
    %64 = vector.shape_cast %63 : vector<1x4x32xf32> to vector<4x32xf32>
    %c0_49 = arith.constant 0 : index
    %c307 = arith.constant 307 : index
    %65 = vector.load %arg7[%c0_49, %c307] : memref<4x1280xf32, #tpu.memory_space<vmem>>, vector<4x32xf32>
    tpu.vector_store %arg7[%c0_49, %c307], %64 {strides = array<i32>} : memref<4x1280xf32, #tpu.memory_space<vmem>>, vector<4x32xf32>,
    %66 = vector.extract_strided_slice %64 {offsets = [0, 1], sizes = [4, 1], strides = [1, 1]} : vector<4x32xf32> to vector<4x1xf32>
    %c0_50 = arith.constant 0 : index
    %c306 = arith.constant 306 : index
    %67 = vector.load %arg7[%c0_50, %c306] : memref<4x1280xf32, #tpu.memory_space<vmem>>, vector<4x1xf32>
    tpu.vector_store %arg7[%c0_50, %c306], %66 {strides = array<i32>} : memref<4x1280xf32, #tpu.memory_space<vmem>>, vector<4x1xf32>,
    %68 = vector.extract_strided_slice %64 {offsets = [0, 30], sizes = [4, 1], strides = [1, 1]} : vector<4x32xf32> to vector<4x1xf32>
    %c0_51 = arith.constant 0 : index
    %c339 = arith.constant 339 : index
    %69 = vector.load %arg7[%c0_51, %c339] : memref<4x1280xf32, #tpu.memory_space<vmem>>, vector<4x1xf32>
    tpu.vector_store %arg7[%c0_51, %c339], %68 {strides = array<i32>} : memref<4x1280xf32, #tpu.memory_space<vmem>>, vector<4x1xf32>,
    %c0_52 = arith.constant 0 : index
    %c0_53 = arith.constant 0 : index
    %c288 = arith.constant 288 : index
    %70 = vector.load %arg2[%c0_52, %c0_53, %c288] : memref<1x4x1024xf32, #tpu.memory_space<vmem>>, vector<1x4x32xf32>
    %71 = vector.shape_cast %70 : vector<1x4x32xf32> to vector<4x32xf32>
    %c0_54 = arith.constant 0 : index
    %c341 = arith.constant 341 : index
    %72 = vector.load %arg7[%c0_54, %c341] : memref<4x1280xf32, #tpu.memory_space<vmem>>, vector<4x32xf32>
    tpu.vector_store %arg7[%c0_54, %c341], %71 {strides = array<i32>} : memref<4x1280xf32, #tpu.memory_space<vmem>>, vector<4x32xf32>,
    %73 = vector.extract_strided_slice %71 {offsets = [0, 1], sizes = [4, 1], strides = [1, 1]} : vector<4x32xf32> to vector<4x1xf32>
    %c0_55 = arith.constant 0 : index
    %c340 = arith.constant 340 : index
    %74 = vector.load %arg7[%c0_55, %c340] : memref<4x1280xf32, #tpu.memory_space<vmem>>, vector<4x1xf32>
    tpu.vector_store %arg7[%c0_55, %c340], %73 {strides = array<i32>} : memref<4x1280xf32, #tpu.memory_space<vmem>>, vector<4x1xf32>,
    %75 = vector.extract_strided_slice %71 {offsets = [0, 30], sizes = [4, 1], strides = [1, 1]} : vector<4x32xf32> to vector<4x1xf32>
    %c0_56 = arith.constant 0 : index
    %c373 = arith.constant 373 : index
    %76 = vector.load %arg7[%c0_56, %c373] : memref<4x1280xf32, #tpu.memory_space<vmem>>, vector<4x1xf32>
    tpu.vector_store %arg7[%c0_56, %c373], %75 {strides = array<i32>} : memref<4x1280xf32, #tpu.memory_space<vmem>>, vector<4x1xf32>,
    %c0_57 = arith.constant 0 : index
    %c0_58 = arith.constant 0 : index
    %c320 = arith.constant 320 : index
    %77 = vector.load %arg2[%c0_57, %c0_58, %c320] : memref<1x4x1024xf32, #tpu.memory_space<vmem>>, vector<1x4x32xf32>
    %78 = vector.shape_cast %77 : vector<1x4x32xf32> to vector<4x32xf32>
    %c0_59 = arith.constant 0 : index
    %c375 = arith.constant 375 : index
    %79 = vector.load %arg7[%c0_59, %c375] : memref<4x1280xf32, #tpu.memory_space<vmem>>, vector<4x32xf32>
    tpu.vector_store %arg7[%c0_59, %c375], %78 {strides = array<i32>} : memref<4x1280xf32, #tpu.memory_space<vmem>>, vector<4x32xf32>,
    %80 = vector.extract_strided_slice %78 {offsets = [0, 1], sizes = [4, 1], strides = [1, 1]} : vector<4x32xf32> to vector<4x1xf32>
    %c0_60 = arith.constant 0 : index
    %c374 = arith.constant 374 : index
    %81 = vector.load %arg7[%c0_60, %c374] : memref<4x1280xf32, #tpu.memory_space<vmem>>, vector<4x1xf32>
    tpu.vector_store %arg7[%c0_60, %c374], %80 {strides = array<i32>} : memref<4x1280xf32, #tpu.memory_space<vmem>>, vector<4x1xf32>,
    %82 = vector.extract_strided_slice %78 {offsets = [0, 30], sizes = [4, 1], strides = [1, 1]} : vector<4x32xf32> to vector<4x1xf32>
    %c0_61 = arith.constant 0 : index
    %c407 = arith.constant 407 : index
    %83 = vector.load %arg7[%c0_61, %c407] : memref<4x1280xf32, #tpu.memory_space<vmem>>, vector<4x1xf32>
    tpu.vector_store %arg7[%c0_61, %c407], %82 {strides = array<i32>} : memref<4x1280xf32, #tpu.memory_space<vmem>>, vector<4x1xf32>,
    %c0_62 = arith.constant 0 : index
    %c0_63 = arith.constant 0 : index
    %c352 = arith.constant 352 : index
    %84 = vector.load %arg2[%c0_62, %c0_63, %c352] : memref<1x4x1024xf32, #tpu.memory_space<vmem>>, vector<1x4x32xf32>
    %85 = vector.shape_cast %84 : vector<1x4x32xf32> to vector<4x32xf32>
    %c0_64 = arith.constant 0 : index
    %c409 = arith.constant 409 : index
    %86 = vector.load %arg7[%c0_64, %c409] : memref<4x1280xf32, #tpu.memory_space<vmem>>, vector<4x32xf32>
    tpu.vector_store %arg7[%c0_64, %c409], %85 {strides = array<i32>} : memref<4x1280xf32, #tpu.memory_space<vmem>>, vector<4x32xf32>,
    %87 = vector.extract_strided_slice %85 {offsets = [0, 1], sizes = [4, 1], strides = [1, 1]} : vector<4x32xf32> to vector<4x1xf32>
    %c0_65 = arith.constant 0 : index
    %c408 = arith.constant 408 : index
    %88 = vector.load %arg7[%c0_65, %c408] : memref<4x1280xf32, #tpu.memory_space<vmem>>, vector<4x1xf32>
    tpu.vector_store %arg7[%c0_65, %c408], %87 {strides = array<i32>} : memref<4x1280xf32, #tpu.memory_space<vmem>>, vector<4x1xf32>,
    %89 = vector.extract_strided_slice %85 {offsets = [0, 30], sizes = [4, 1], strides = [1, 1]} : vector<4x32xf32> to vector<4x1xf32>
    %c0_66 = arith.constant 0 : index
    %c441 = arith.constant 441 : index
    %90 = vector.load %arg7[%c0_66, %c441] : memref<4x1280xf32, #tpu.memory_space<vmem>>, vector<4x1xf32>
    tpu.vector_store %arg7[%c0_66, %c441], %89 {strides = array<i32>} : memref<4x1280xf32, #tpu.memory_space<vmem>>, vector<4x1xf32>,
    %c0_67 = arith.constant 0 : index
    %c0_68 = arith.constant 0 : index
    %c384 = arith.constant 384 : index
    %91 = vector.load %arg2[%c0_67, %c0_68, %c384] : memref<1x4x1024xf32, #tpu.memory_space<vmem>>, vector<1x4x32xf32>
    %92 = vector.shape_cast %91 : vector<1x4x32xf32> to vector<4x32xf32>
    %c0_69 = arith.constant 0 : index
    %c443 = arith.constant 443 : index
    %93 = vector.load %arg7[%c0_69, %c443] : memref<4x1280xf32, #tpu.memory_space<vmem>>, vector<4x32xf32>
    tpu.vector_store %arg7[%c0_69, %c443], %92 {strides = array<i32>} : memref<4x1280xf32, #tpu.memory_space<vmem>>, vector<4x32xf32>,
    %94 = vector.extract_strided_slice %92 {offsets = [0, 1], sizes = [4, 1], strides = [1, 1]} : vector<4x32xf32> to vector<4x1xf32>
    %c0_70 = arith.constant 0 : index
    %c442 = arith.constant 442 : index
    %95 = vector.load %arg7[%c0_70, %c442] : memref<4x1280xf32, #tpu.memory_space<vmem>>, vector<4x1xf32>
    tpu.vector_store %arg7[%c0_70, %c442], %94 {strides = array<i32>} : memref<4x1280xf32, #tpu.memory_space<vmem>>, vector<4x1xf32>,
    %96 = vector.extract_strided_slice %92 {offsets = [0, 30], sizes = [4, 1], strides = [1, 1]} : vector<4x32xf32> to vector<4x1xf32>
    %c0_71 = arith.constant 0 : index
    %c475 = arith.constant 475 : index
    %97 = vector.load %arg7[%c0_71, %c475] : memref<4x1280xf32, #tpu.memory_space<vmem>>, vector<4x1xf32>
    tpu.vector_store %arg7[%c0_71, %c475], %96 {strides = array<i32>} : memref<4x1280xf32, #tpu.memory_space<vmem>>, vector<4x1xf32>,
    %c0_72 = arith.constant 0 : index
    %c0_73 = arith.constant 0 : index
    %c416 = arith.constant 416 : index
    %98 = vector.load %arg2[%c0_72, %c0_73, %c416] : memref<1x4x1024xf32, #tpu.memory_space<vmem>>, vector<1x4x32xf32>
    %99 = vector.shape_cast %98 : vector<1x4x32xf32> to vector<4x32xf32>
    %c0_74 = arith.constant 0 : index
    %c477 = arith.constant 477 : index
    %100 = vector.load %arg7[%c0_74, %c477] : memref<4x1280xf32, #tpu.memory_space<vmem>>, vector<4x32xf32>
    tpu.vector_store %arg7[%c0_74, %c477], %99 {strides = array<i32>} : memref<4x1280xf32, #tpu.memory_space<vmem>>, vector<4x32xf32>,
    %101 = vector.extract_strided_slice %99 {offsets = [0, 1], sizes = [4, 1], strides = [1, 1]} : vector<4x32xf32> to vector<4x1xf32>
    %c0_75 = arith.constant 0 : index
    %c476 = arith.constant 476 : index
    %102 = vector.load %arg7[%c0_75, %c476] : memref<4x1280xf32, #tpu.memory_space<vmem>>, vector<4x1xf32>
    tpu.vector_store %arg7[%c0_75, %c476], %101 {strides = array<i32>} : memref<4x1280xf32, #tpu.memory_space<vmem>>, vector<4x1xf32>,
    %103 = vector.extract_strided_slice %99 {offsets = [0, 30], sizes = [4, 1], strides = [1, 1]} : vector<4x32xf32> to vector<4x1xf32>
    %c0_76 = arith.constant 0 : index
    %c509 = arith.constant 509 : index
    %104 = vector.load %arg7[%c0_76, %c509] : memref<4x1280xf32, #tpu.memory_space<vmem>>, vector<4x1xf32>
    tpu.vector_store %arg7[%c0_76, %c509], %103 {strides = array<i32>} : memref<4x1280xf32, #tpu.memory_space<vmem>>, vector<4x1xf32>,
    %c0_77 = arith.constant 0 : index
    %c0_78 = arith.constant 0 : index
    %c448 = arith.constant 448 : index
    %105 = vector.load %arg2[%c0_77, %c0_78, %c448] : memref<1x4x1024xf32, #tpu.memory_space<vmem>>, vector<1x4x32xf32>
    %106 = vector.shape_cast %105 : vector<1x4x32xf32> to vector<4x32xf32>
    %c0_79 = arith.constant 0 : index
    %c511 = arith.constant 511 : index
    %107 = vector.load %arg7[%c0_79, %c511] : memref<4x1280xf32, #tpu.memory_space<vmem>>, vector<4x32xf32>
    tpu.vector_store %arg7[%c0_79, %c511], %106 {strides = array<i32>} : memref<4x1280xf32, #tpu.memory_space<vmem>>, vector<4x32xf32>,
    %108 = vector.extract_strided_slice %106 {offsets = [0, 1], sizes = [4, 1], strides = [1, 1]} : vector<4x32xf32> to vector<4x1xf32>
    %c0_80 = arith.constant 0 : index
    %c510 = arith.constant 510 : index
    %109 = vector.load %arg7[%c0_80, %c510] : memref<4x1280xf32, #tpu.memory_space<vmem>>, vector<4x1xf32>
    tpu.vector_store %arg7[%c0_80, %c510], %108 {strides = array<i32>} : memref<4x1280xf32, #tpu.memory_space<vmem>>, vector<4x1xf32>,
    %110 = vector.extract_strided_slice %106 {offsets = [0, 30], sizes = [4, 1], strides = [1, 1]} : vector<4x32xf32> to vector<4x1xf32>
    %c0_81 = arith.constant 0 : index
    %c543 = arith.constant 543 : index
    %111 = vector.load %arg7[%c0_81, %c543] : memref<4x1280xf32, #tpu.memory_space<vmem>>, vector<4x1xf32>
    tpu.vector_store %arg7[%c0_81, %c543], %110 {strides = array<i32>} : memref<4x1280xf32, #tpu.memory_space<vmem>>, vector<4x1xf32>,
    %c0_82 = arith.constant 0 : index
    %c0_83 = arith.constant 0 : index
    %c480 = arith.constant 480 : index
    %112 = vector.load %arg2[%c0_82, %c0_83, %c480] : memref<1x4x1024xf32, #tpu.memory_space<vmem>>, vector<1x4x32xf32>
    %113 = vector.shape_cast %112 : vector<1x4x32xf32> to vector<4x32xf32>
    %c0_84 = arith.constant 0 : index
    %c545 = arith.constant 545 : index
    %114 = vector.load %arg7[%c0_84, %c545] : memref<4x1280xf32, #tpu.memory_space<vmem>>, vector<4x32xf32>
    tpu.vector_store %arg7[%c0_84, %c545], %113 {strides = array<i32>} : memref<4x1280xf32, #tpu.memory_space<vmem>>, vector<4x32xf32>,
    %115 = vector.extract_strided_slice %113 {offsets = [0, 1], sizes = [4, 1], strides = [1, 1]} : vector<4x32xf32> to vector<4x1xf32>
    %c0_85 = arith.constant 0 : index
    %c544 = arith.constant 544 : index
    %116 = vector.load %arg7[%c0_85, %c544] : memref<4x1280xf32, #tpu.memory_space<vmem>>, vector<4x1xf32>
    tpu.vector_store %arg7[%c0_85, %c544], %115 {strides = array<i32>} : memref<4x1280xf32, #tpu.memory_space<vmem>>, vector<4x1xf32>,
    %117 = vector.extract_strided_slice %113 {offsets = [0, 30], sizes = [4, 1], strides = [1, 1]} : vector<4x32xf32> to vector<4x1xf32>
    %c0_86 = arith.constant 0 : index
    %c577 = arith.constant 577 : index
    %118 = vector.load %arg7[%c0_86, %c577] : memref<4x1280xf32, #tpu.memory_space<vmem>>, vector<4x1xf32>
    tpu.vector_store %arg7[%c0_86, %c577], %117 {strides = array<i32>} : memref<4x1280xf32, #tpu.memory_space<vmem>>, vector<4x1xf32>,
    %c0_87 = arith.constant 0 : index
    %c0_88 = arith.constant 0 : index
    %c512 = arith.constant 512 : index
    %119 = vector.load %arg2[%c0_87, %c0_88, %c512] : memref<1x4x1024xf32, #tpu.memory_space<vmem>>, vector<1x4x32xf32>
    %120 = vector.shape_cast %119 : vector<1x4x32xf32> to vector<4x32xf32>
    %c0_89 = arith.constant 0 : index
    %c579 = arith.constant 579 : index
    %121 = vector.load %arg7[%c0_89, %c579] : memref<4x1280xf32, #tpu.memory_space<vmem>>, vector<4x32xf32>
    tpu.vector_store %arg7[%c0_89, %c579], %120 {strides = array<i32>} : memref<4x1280xf32, #tpu.memory_space<vmem>>, vector<4x32xf32>,
    %122 = vector.extract_strided_slice %120 {offsets = [0, 1], sizes = [4, 1], strides = [1, 1]} : vector<4x32xf32> to vector<4x1xf32>
    %c0_90 = arith.constant 0 : index
    %c578 = arith.constant 578 : index
    %123 = vector.load %arg7[%c0_90, %c578] : memref<4x1280xf32, #tpu.memory_space<vmem>>, vector<4x1xf32>
    tpu.vector_store %arg7[%c0_90, %c578], %122 {strides = array<i32>} : memref<4x1280xf32, #tpu.memory_space<vmem>>, vector<4x1xf32>,
    %124 = vector.extract_strided_slice %120 {offsets = [0, 30], sizes = [4, 1], strides = [1, 1]} : vector<4x32xf32> to vector<4x1xf32>
    %c0_91 = arith.constant 0 : index
    %c611 = arith.constant 611 : index
    %125 = vector.load %arg7[%c0_91, %c611] : memref<4x1280xf32, #tpu.memory_space<vmem>>, vector<4x1xf32>
    tpu.vector_store %arg7[%c0_91, %c611], %124 {strides = array<i32>} : memref<4x1280xf32, #tpu.memory_space<vmem>>, vector<4x1xf32>,
    %c0_92 = arith.constant 0 : index
    %c0_93 = arith.constant 0 : index
    %c544_94 = arith.constant 544 : index
    %126 = vector.load %arg2[%c0_92, %c0_93, %c544_94] : memref<1x4x1024xf32, #tpu.memory_space<vmem>>, vector<1x4x32xf32>
    %127 = vector.shape_cast %126 : vector<1x4x32xf32> to vector<4x32xf32>
    %c0_95 = arith.constant 0 : index
    %c613 = arith.constant 613 : index
    %128 = vector.load %arg7[%c0_95, %c613] : memref<4x1280xf32, #tpu.memory_space<vmem>>, vector<4x32xf32>
    tpu.vector_store %arg7[%c0_95, %c613], %127 {strides = array<i32>} : memref<4x1280xf32, #tpu.memory_space<vmem>>, vector<4x32xf32>,
    %129 = vector.extract_strided_slice %127 {offsets = [0, 1], sizes = [4, 1], strides = [1, 1]} : vector<4x32xf32> to vector<4x1xf32>
    %c0_96 = arith.constant 0 : index
    %c612 = arith.constant 612 : index
    %130 = vector.load %arg7[%c0_96, %c612] : memref<4x1280xf32, #tpu.memory_space<vmem>>, vector<4x1xf32>
    tpu.vector_store %arg7[%c0_96, %c612], %129 {strides = array<i32>} : memref<4x1280xf32, #tpu.memory_space<vmem>>, vector<4x1xf32>,
    %131 = vector.extract_strided_slice %127 {offsets = [0, 30], sizes = [4, 1], strides = [1, 1]} : vector<4x32xf32> to vector<4x1xf32>
    %c0_97 = arith.constant 0 : index
    %c645 = arith.constant 645 : index
    %132 = vector.load %arg7[%c0_97, %c645] : memref<4x1280xf32, #tpu.memory_space<vmem>>, vector<4x1xf32>
    tpu.vector_store %arg7[%c0_97, %c645], %131 {strides = array<i32>} : memref<4x1280xf32, #tpu.memory_space<vmem>>, vector<4x1xf32>,
    %c0_98 = arith.constant 0 : index
    %c0_99 = arith.constant 0 : index
    %c576 = arith.constant 576 : index
    %133 = vector.load %arg2[%c0_98, %c0_99, %c576] : memref<1x4x1024xf32, #tpu.memory_space<vmem>>, vector<1x4x32xf32>
    %134 = vector.shape_cast %133 : vector<1x4x32xf32> to vector<4x32xf32>
    %c0_100 = arith.constant 0 : index
    %c647 = arith.constant 647 : index
    %135 = vector.load %arg7[%c0_100, %c647] : memref<4x1280xf32, #tpu.memory_space<vmem>>, vector<4x32xf32>
    tpu.vector_store %arg7[%c0_100, %c647], %134 {strides = array<i32>} : memref<4x1280xf32, #tpu.memory_space<vmem>>, vector<4x32xf32>,
    %136 = vector.extract_strided_slice %134 {offsets = [0, 1], sizes = [4, 1], strides = [1, 1]} : vector<4x32xf32> to vector<4x1xf32>
    %c0_101 = arith.constant 0 : index
    %c646 = arith.constant 646 : index
    %137 = vector.load %arg7[%c0_101, %c646] : memref<4x1280xf32, #tpu.memory_space<vmem>>, vector<4x1xf32>
    tpu.vector_store %arg7[%c0_101, %c646], %136 {strides = array<i32>} : memref<4x1280xf32, #tpu.memory_space<vmem>>, vector<4x1xf32>,
    %138 = vector.extract_strided_slice %134 {offsets = [0, 30], sizes = [4, 1], strides = [1, 1]} : vector<4x32xf32> to vector<4x1xf32>
    %c0_102 = arith.constant 0 : index
    %c679 = arith.constant 679 : index
    %139 = vector.load %arg7[%c0_102, %c679] : memref<4x1280xf32, #tpu.memory_space<vmem>>, vector<4x1xf32>
    tpu.vector_store %arg7[%c0_102, %c679], %138 {strides = array<i32>} : memref<4x1280xf32, #tpu.memory_space<vmem>>, vector<4x1xf32>,
    %c0_103 = arith.constant 0 : index
    %c0_104 = arith.constant 0 : index
    %c608 = arith.constant 608 : index
    %140 = vector.load %arg2[%c0_103, %c0_104, %c608] : memref<1x4x1024xf32, #tpu.memory_space<vmem>>, vector<1x4x32xf32>
    %141 = vector.shape_cast %140 : vector<1x4x32xf32> to vector<4x32xf32>
    %c0_105 = arith.constant 0 : index
    %c681 = arith.constant 681 : index
    %142 = vector.load %arg7[%c0_105, %c681] : memref<4x1280xf32, #tpu.memory_space<vmem>>, vector<4x32xf32>
    tpu.vector_store %arg7[%c0_105, %c681], %141 {strides = array<i32>} : memref<4x1280xf32, #tpu.memory_space<vmem>>, vector<4x32xf32>,
    %143 = vector.extract_strided_slice %141 {offsets = [0, 1], sizes = [4, 1], strides = [1, 1]} : vector<4x32xf32> to vector<4x1xf32>
    %c0_106 = arith.constant 0 : index
    %c680 = arith.constant 680 : index
    %144 = vector.load %arg7[%c0_106, %c680] : memref<4x1280xf32, #tpu.memory_space<vmem>>, vector<4x1xf32>
    tpu.vector_store %arg7[%c0_106, %c680], %143 {strides = array<i32>} : memref<4x1280xf32, #tpu.memory_space<vmem>>, vector<4x1xf32>,
    %145 = vector.extract_strided_slice %141 {offsets = [0, 30], sizes = [4, 1], strides = [1, 1]} : vector<4x32xf32> to vector<4x1xf32>
    %c0_107 = arith.constant 0 : index
    %c713 = arith.constant 713 : index
    %146 = vector.load %arg7[%c0_107, %c713] : memref<4x1280xf32, #tpu.memory_space<vmem>>, vector<4x1xf32>
    tpu.vector_store %arg7[%c0_107, %c713], %145 {strides = array<i32>} : memref<4x1280xf32, #tpu.memory_space<vmem>>, vector<4x1xf32>,
    %c0_108 = arith.constant 0 : index
    %c0_109 = arith.constant 0 : index
    %c640 = arith.constant 640 : index
    %147 = vector.load %arg2[%c0_108, %c0_109, %c640] : memref<1x4x1024xf32, #tpu.memory_space<vmem>>, vector<1x4x32xf32>
    %148 = vector.shape_cast %147 : vector<1x4x32xf32> to vector<4x32xf32>
    %c0_110 = arith.constant 0 : index
    %c715 = arith.constant 715 : index
    %149 = vector.load %arg7[%c0_110, %c715] : memref<4x1280xf32, #tpu.memory_space<vmem>>, vector<4x32xf32>
    tpu.vector_store %arg7[%c0_110, %c715], %148 {strides = array<i32>} : memref<4x1280xf32, #tpu.memory_space<vmem>>, vector<4x32xf32>,
    %150 = vector.extract_strided_slice %148 {offsets = [0, 1], sizes = [4, 1], strides = [1, 1]} : vector<4x32xf32> to vector<4x1xf32>
    %c0_111 = arith.constant 0 : index
    %c714 = arith.constant 714 : index
    %151 = vector.load %arg7[%c0_111, %c714] : memref<4x1280xf32, #tpu.memory_space<vmem>>, vector<4x1xf32>
    tpu.vector_store %arg7[%c0_111, %c714], %150 {strides = array<i32>} : memref<4x1280xf32, #tpu.memory_space<vmem>>, vector<4x1xf32>,
    %152 = vector.extract_strided_slice %148 {offsets = [0, 30], sizes = [4, 1], strides = [1, 1]} : vector<4x32xf32> to vector<4x1xf32>
    %c0_112 = arith.constant 0 : index
    %c747 = arith.constant 747 : index
    %153 = vector.load %arg7[%c0_112, %c747] : memref<4x1280xf32, #tpu.memory_space<vmem>>, vector<4x1xf32>
    tpu.vector_store %arg7[%c0_112, %c747], %152 {strides = array<i32>} : memref<4x1280xf32, #tpu.memory_space<vmem>>, vector<4x1xf32>,
    %c0_113 = arith.constant 0 : index
    %c0_114 = arith.constant 0 : index
    %c672 = arith.constant 672 : index
    %154 = vector.load %arg2[%c0_113, %c0_114, %c672] : memref<1x4x1024xf32, #tpu.memory_space<vmem>>, vector<1x4x32xf32>
    %155 = vector.shape_cast %154 : vector<1x4x32xf32> to vector<4x32xf32>
    %c0_115 = arith.constant 0 : index
    %c749 = arith.constant 749 : index
    %156 = vector.load %arg7[%c0_115, %c749] : memref<4x1280xf32, #tpu.memory_space<vmem>>, vector<4x32xf32>
    tpu.vector_store %arg7[%c0_115, %c749], %155 {strides = array<i32>} : memref<4x1280xf32, #tpu.memory_space<vmem>>, vector<4x32xf32>,
    %157 = vector.extract_strided_slice %155 {offsets = [0, 1], sizes = [4, 1], strides = [1, 1]} : vector<4x32xf32> to vector<4x1xf32>
    %c0_116 = arith.constant 0 : index
    %c748 = arith.constant 748 : index
    %158 = vector.load %arg7[%c0_116, %c748] : memref<4x1280xf32, #tpu.memory_space<vmem>>, vector<4x1xf32>
    tpu.vector_store %arg7[%c0_116, %c748], %157 {strides = array<i32>} : memref<4x1280xf32, #tpu.memory_space<vmem>>, vector<4x1xf32>,
    %159 = vector.extract_strided_slice %155 {offsets = [0, 30], sizes = [4, 1], strides = [1, 1]} : vector<4x32xf32> to vector<4x1xf32>
    %c0_117 = arith.constant 0 : index
    %c781 = arith.constant 781 : index
    %160 = vector.load %arg7[%c0_117, %c781] : memref<4x1280xf32, #tpu.memory_space<vmem>>, vector<4x1xf32>
    tpu.vector_store %arg7[%c0_117, %c781], %159 {strides = array<i32>} : memref<4x1280xf32, #tpu.memory_space<vmem>>, vector<4x1xf32>,
    %c0_118 = arith.constant 0 : index
    %c0_119 = arith.constant 0 : index
    %c704 = arith.constant 704 : index
    %161 = vector.load %arg2[%c0_118, %c0_119, %c704] : memref<1x4x1024xf32, #tpu.memory_space<vmem>>, vector<1x4x32xf32>
    %162 = vector.shape_cast %161 : vector<1x4x32xf32> to vector<4x32xf32>
    %c0_120 = arith.constant 0 : index
    %c783 = arith.constant 783 : index
    %163 = vector.load %arg7[%c0_120, %c783] : memref<4x1280xf32, #tpu.memory_space<vmem>>, vector<4x32xf32>
    tpu.vector_store %arg7[%c0_120, %c783], %162 {strides = array<i32>} : memref<4x1280xf32, #tpu.memory_space<vmem>>, vector<4x32xf32>,
    %164 = vector.extract_strided_slice %162 {offsets = [0, 1], sizes = [4, 1], strides = [1, 1]} : vector<4x32xf32> to vector<4x1xf32>
    %c0_121 = arith.constant 0 : index
    %c782 = arith.constant 782 : index
    %165 = vector.load %arg7[%c0_121, %c782] : memref<4x1280xf32, #tpu.memory_space<vmem>>, vector<4x1xf32>
    tpu.vector_store %arg7[%c0_121, %c782], %164 {strides = array<i32>} : memref<4x1280xf32, #tpu.memory_space<vmem>>, vector<4x1xf32>,
    %166 = vector.extract_strided_slice %162 {offsets = [0, 30], sizes = [4, 1], strides = [1, 1]} : vector<4x32xf32> to vector<4x1xf32>
    %c0_122 = arith.constant 0 : index
    %c815 = arith.constant 815 : index
    %167 = vector.load %arg7[%c0_122, %c815] : memref<4x1280xf32, #tpu.memory_space<vmem>>, vector<4x1xf32>
    tpu.vector_store %arg7[%c0_122, %c815], %166 {strides = array<i32>} : memref<4x1280xf32, #tpu.memory_space<vmem>>, vector<4x1xf32>,
    %c0_123 = arith.constant 0 : index
    %c0_124 = arith.constant 0 : index
    %c736 = arith.constant 736 : index
    %168 = vector.load %arg2[%c0_123, %c0_124, %c736] : memref<1x4x1024xf32, #tpu.memory_space<vmem>>, vector<1x4x32xf32>
    %169 = vector.shape_cast %168 : vector<1x4x32xf32> to vector<4x32xf32>
    %c0_125 = arith.constant 0 : index
    %c817 = arith.constant 817 : index
    %170 = vector.load %arg7[%c0_125, %c817] : memref<4x1280xf32, #tpu.memory_space<vmem>>, vector<4x32xf32>
    tpu.vector_store %arg7[%c0_125, %c817], %169 {strides = array<i32>} : memref<4x1280xf32, #tpu.memory_space<vmem>>, vector<4x32xf32>,
    %171 = vector.extract_strided_slice %169 {offsets = [0, 1], sizes = [4, 1], strides = [1, 1]} : vector<4x32xf32> to vector<4x1xf32>
    %c0_126 = arith.constant 0 : index
    %c816 = arith.constant 816 : index
    %172 = vector.load %arg7[%c0_126, %c816] : memref<4x1280xf32, #tpu.memory_space<vmem>>, vector<4x1xf32>
    tpu.vector_store %arg7[%c0_126, %c816], %171 {strides = array<i32>} : memref<4x1280xf32, #tpu.memory_space<vmem>>, vector<4x1xf32>,
    %173 = vector.extract_strided_slice %169 {offsets = [0, 30], sizes = [4, 1], strides = [1, 1]} : vector<4x32xf32> to vector<4x1xf32>
    %c0_127 = arith.constant 0 : index
    %c849 = arith.constant 849 : index
    %174 = vector.load %arg7[%c0_127, %c849] : memref<4x1280xf32, #tpu.memory_space<vmem>>, vector<4x1xf32>
    tpu.vector_store %arg7[%c0_127, %c849], %173 {strides = array<i32>} : memref<4x1280xf32, #tpu.memory_space<vmem>>, vector<4x1xf32>,
    %c0_128 = arith.constant 0 : index
    %c0_129 = arith.constant 0 : index
    %c768 = arith.constant 768 : index
    %175 = vector.load %arg2[%c0_128, %c0_129, %c768] : memref<1x4x1024xf32, #tpu.memory_space<vmem>>, vector<1x4x32xf32>
    %176 = vector.shape_cast %175 : vector<1x4x32xf32> to vector<4x32xf32>
    %c0_130 = arith.constant 0 : index
    %c851 = arith.constant 851 : index
    %177 = vector.load %arg7[%c0_130, %c851] : memref<4x1280xf32, #tpu.memory_space<vmem>>, vector<4x32xf32>
    tpu.vector_store %arg7[%c0_130, %c851], %176 {strides = array<i32>} : memref<4x1280xf32, #tpu.memory_space<vmem>>, vector<4x32xf32>,
    %178 = vector.extract_strided_slice %176 {offsets = [0, 1], sizes = [4, 1], strides = [1, 1]} : vector<4x32xf32> to vector<4x1xf32>
    %c0_131 = arith.constant 0 : index
    %c850 = arith.constant 850 : index
    %179 = vector.load %arg7[%c0_131, %c850] : memref<4x1280xf32, #tpu.memory_space<vmem>>, vector<4x1xf32>
    tpu.vector_store %arg7[%c0_131, %c850], %178 {strides = array<i32>} : memref<4x1280xf32, #tpu.memory_space<vmem>>, vector<4x1xf32>,
    %180 = vector.extract_strided_slice %176 {offsets = [0, 30], sizes = [4, 1], strides = [1, 1]} : vector<4x32xf32> to vector<4x1xf32>
    %c0_132 = arith.constant 0 : index
    %c883 = arith.constant 883 : index
    %181 = vector.load %arg7[%c0_132, %c883] : memref<4x1280xf32, #tpu.memory_space<vmem>>, vector<4x1xf32>
    tpu.vector_store %arg7[%c0_132, %c883], %180 {strides = array<i32>} : memref<4x1280xf32, #tpu.memory_space<vmem>>, vector<4x1xf32>,
    %c0_133 = arith.constant 0 : index
    %c0_134 = arith.constant 0 : index
    %c800 = arith.constant 800 : index
    %182 = vector.load %arg2[%c0_133, %c0_134, %c800] : memref<1x4x1024xf32, #tpu.memory_space<vmem>>, vector<1x4x32xf32>
    %183 = vector.shape_cast %182 : vector<1x4x32xf32> to vector<4x32xf32>
    %c0_135 = arith.constant 0 : index
    %c885 = arith.constant 885 : index
    %184 = vector.load %arg7[%c0_135, %c885] : memref<4x1280xf32, #tpu.memory_space<vmem>>, vector<4x32xf32>
    tpu.vector_store %arg7[%c0_135, %c885], %183 {strides = array<i32>} : memref<4x1280xf32, #tpu.memory_space<vmem>>, vector<4x32xf32>,
    %185 = vector.extract_strided_slice %183 {offsets = [0, 1], sizes = [4, 1], strides = [1, 1]} : vector<4x32xf32> to vector<4x1xf32>
    %c0_136 = arith.constant 0 : index
    %c884 = arith.constant 884 : index
    %186 = vector.load %arg7[%c0_136, %c884] : memref<4x1280xf32, #tpu.memory_space<vmem>>, vector<4x1xf32>
    tpu.vector_store %arg7[%c0_136, %c884], %185 {strides = array<i32>} : memref<4x1280xf32, #tpu.memory_space<vmem>>, vector<4x1xf32>,
    %187 = vector.extract_strided_slice %183 {offsets = [0, 30], sizes = [4, 1], strides = [1, 1]} : vector<4x32xf32> to vector<4x1xf32>
    %c0_137 = arith.constant 0 : index
    %c917 = arith.constant 917 : index
    %188 = vector.load %arg7[%c0_137, %c917] : memref<4x1280xf32, #tpu.memory_space<vmem>>, vector<4x1xf32>
    tpu.vector_store %arg7[%c0_137, %c917], %187 {strides = array<i32>} : memref<4x1280xf32, #tpu.memory_space<vmem>>, vector<4x1xf32>,
    %c0_138 = arith.constant 0 : index
    %c0_139 = arith.constant 0 : index
    %c832 = arith.constant 832 : index
    %189 = vector.load %arg2[%c0_138, %c0_139, %c832] : memref<1x4x1024xf32, #tpu.memory_space<vmem>>, vector<1x4x32xf32>
    %190 = vector.shape_cast %189 : vector<1x4x32xf32> to vector<4x32xf32>
    %c0_140 = arith.constant 0 : index
    %c919 = arith.constant 919 : index
    %191 = vector.load %arg7[%c0_140, %c919] : memref<4x1280xf32, #tpu.memory_space<vmem>>, vector<4x32xf32>
    tpu.vector_store %arg7[%c0_140, %c919], %190 {strides = array<i32>} : memref<4x1280xf32, #tpu.memory_space<vmem>>, vector<4x32xf32>,
    %192 = vector.extract_strided_slice %190 {offsets = [0, 1], sizes = [4, 1], strides = [1, 1]} : vector<4x32xf32> to vector<4x1xf32>
    %c0_141 = arith.constant 0 : index
    %c918 = arith.constant 918 : index
    %193 = vector.load %arg7[%c0_141, %c918] : memref<4x1280xf32, #tpu.memory_space<vmem>>, vector<4x1xf32>
    tpu.vector_store %arg7[%c0_141, %c918], %192 {strides = array<i32>} : memref<4x1280xf32, #tpu.memory_space<vmem>>, vector<4x1xf32>,
    %194 = vector.extract_strided_slice %190 {offsets = [0, 30], sizes = [4, 1], strides = [1, 1]} : vector<4x32xf32> to vector<4x1xf32>
    %c0_142 = arith.constant 0 : index
    %c951 = arith.constant 951 : index
    %195 = vector.load %arg7[%c0_142, %c951] : memref<4x1280xf32, #tpu.memory_space<vmem>>, vector<4x1xf32>
    tpu.vector_store %arg7[%c0_142, %c951], %194 {strides = array<i32>} : memref<4x1280xf32, #tpu.memory_space<vmem>>, vector<4x1xf32>,
    %c0_143 = arith.constant 0 : index
    %c0_144 = arith.constant 0 : index
    %c864 = arith.constant 864 : index
    %196 = vector.load %arg2[%c0_143, %c0_144, %c864] : memref<1x4x1024xf32, #tpu.memory_space<vmem>>, vector<1x4x32xf32>
    %197 = vector.shape_cast %196 : vector<1x4x32xf32> to vector<4x32xf32>
    %c0_145 = arith.constant 0 : index
    %c953 = arith.constant 953 : index
    %198 = vector.load %arg7[%c0_145, %c953] : memref<4x1280xf32, #tpu.memory_space<vmem>>, vector<4x32xf32>
    tpu.vector_store %arg7[%c0_145, %c953], %197 {strides = array<i32>} : memref<4x1280xf32, #tpu.memory_space<vmem>>, vector<4x32xf32>,
    %199 = vector.extract_strided_slice %197 {offsets = [0, 1], sizes = [4, 1], strides = [1, 1]} : vector<4x32xf32> to vector<4x1xf32>
    %c0_146 = arith.constant 0 : index
    %c952 = arith.constant 952 : index
    %200 = vector.load %arg7[%c0_146, %c952] : memref<4x1280xf32, #tpu.memory_space<vmem>>, vector<4x1xf32>
    tpu.vector_store %arg7[%c0_146, %c952], %199 {strides = array<i32>} : memref<4x1280xf32, #tpu.memory_space<vmem>>, vector<4x1xf32>,
    %201 = vector.extract_strided_slice %197 {offsets = [0, 30], sizes = [4, 1], strides = [1, 1]} : vector<4x32xf32> to vector<4x1xf32>
    %c0_147 = arith.constant 0 : index
    %c985 = arith.constant 985 : index
    %202 = vector.load %arg7[%c0_147, %c985] : memref<4x1280xf32, #tpu.memory_space<vmem>>, vector<4x1xf32>
    tpu.vector_store %arg7[%c0_147, %c985], %201 {strides = array<i32>} : memref<4x1280xf32, #tpu.memory_space<vmem>>, vector<4x1xf32>,
    %c0_148 = arith.constant 0 : index
    %c0_149 = arith.constant 0 : index
    %c896 = arith.constant 896 : index
    %203 = vector.load %arg2[%c0_148, %c0_149, %c896] : memref<1x4x1024xf32, #tpu.memory_space<vmem>>, vector<1x4x32xf32>
    %204 = vector.shape_cast %203 : vector<1x4x32xf32> to vector<4x32xf32>
    %c0_150 = arith.constant 0 : index
    %c987 = arith.constant 987 : index
    %205 = vector.load %arg7[%c0_150, %c987] : memref<4x1280xf32, #tpu.memory_space<vmem>>, vector<4x32xf32>
    tpu.vector_store %arg7[%c0_150, %c987], %204 {strides = array<i32>} : memref<4x1280xf32, #tpu.memory_space<vmem>>, vector<4x32xf32>,
    %206 = vector.extract_strided_slice %204 {offsets = [0, 1], sizes = [4, 1], strides = [1, 1]} : vector<4x32xf32> to vector<4x1xf32>
    %c0_151 = arith.constant 0 : index
    %c986 = arith.constant 986 : index
    %207 = vector.load %arg7[%c0_151, %c986] : memref<4x1280xf32, #tpu.memory_space<vmem>>, vector<4x1xf32>
    tpu.vector_store %arg7[%c0_151, %c986], %206 {strides = array<i32>} : memref<4x1280xf32, #tpu.memory_space<vmem>>, vector<4x1xf32>,
    %208 = vector.extract_strided_slice %204 {offsets = [0, 30], sizes = [4, 1], strides = [1, 1]} : vector<4x32xf32> to vector<4x1xf32>
    %c0_152 = arith.constant 0 : index
    %c1019 = arith.constant 1019 : index
    %209 = vector.load %arg7[%c0_152, %c1019] : memref<4x1280xf32, #tpu.memory_space<vmem>>, vector<4x1xf32>
    tpu.vector_store %arg7[%c0_152, %c1019], %208 {strides = array<i32>} : memref<4x1280xf32, #tpu.memory_space<vmem>>, vector<4x1xf32>,
    %c0_153 = arith.constant 0 : index
    %c0_154 = arith.constant 0 : index
    %c928 = arith.constant 928 : index
    %210 = vector.load %arg2[%c0_153, %c0_154, %c928] : memref<1x4x1024xf32, #tpu.memory_space<vmem>>, vector<1x4x32xf32>
    %211 = vector.shape_cast %210 : vector<1x4x32xf32> to vector<4x32xf32>
    %c0_155 = arith.constant 0 : index
    %c1021 = arith.constant 1021 : index
    %212 = vector.load %arg7[%c0_155, %c1021] : memref<4x1280xf32, #tpu.memory_space<vmem>>, vector<4x32xf32>
    tpu.vector_store %arg7[%c0_155, %c1021], %211 {strides = array<i32>} : memref<4x1280xf32, #tpu.memory_space<vmem>>, vector<4x32xf32>,
    %213 = vector.extract_strided_slice %211 {offsets = [0, 1], sizes = [4, 1], strides = [1, 1]} : vector<4x32xf32> to vector<4x1xf32>
    %c0_156 = arith.constant 0 : index
    %c1020 = arith.constant 1020 : index
    %214 = vector.load %arg7[%c0_156, %c1020] : memref<4x1280xf32, #tpu.memory_space<vmem>>, vector<4x1xf32>
    tpu.vector_store %arg7[%c0_156, %c1020], %213 {strides = array<i32>} : memref<4x1280xf32, #tpu.memory_space<vmem>>, vector<4x1xf32>,
    %215 = vector.extract_strided_slice %211 {offsets = [0, 30], sizes = [4, 1], strides = [1, 1]} : vector<4x32xf32> to vector<4x1xf32>
    %c0_157 = arith.constant 0 : index
    %c1053 = arith.constant 1053 : index
    %216 = vector.load %arg7[%c0_157, %c1053] : memref<4x1280xf32, #tpu.memory_space<vmem>>, vector<4x1xf32>
    tpu.vector_store %arg7[%c0_157, %c1053], %215 {strides = array<i32>} : memref<4x1280xf32, #tpu.memory_space<vmem>>, vector<4x1xf32>,
    %c0_158 = arith.constant 0 : index
    %c0_159 = arith.constant 0 : index
    %c960 = arith.constant 960 : index
    %217 = vector.load %arg2[%c0_158, %c0_159, %c960] : memref<1x4x1024xf32, #tpu.memory_space<vmem>>, vector<1x4x32xf32>
    %218 = vector.shape_cast %217 : vector<1x4x32xf32> to vector<4x32xf32>
    %c0_160 = arith.constant 0 : index
    %c1055 = arith.constant 1055 : index
    %219 = vector.load %arg7[%c0_160, %c1055] : memref<4x1280xf32, #tpu.memory_space<vmem>>, vector<4x32xf32>
    tpu.vector_store %arg7[%c0_160, %c1055], %218 {strides = array<i32>} : memref<4x1280xf32, #tpu.memory_space<vmem>>, vector<4x32xf32>,
    %220 = vector.extract_strided_slice %218 {offsets = [0, 1], sizes = [4, 1], strides = [1, 1]} : vector<4x32xf32> to vector<4x1xf32>
    %c0_161 = arith.constant 0 : index
    %c1054 = arith.constant 1054 : index
    %221 = vector.load %arg7[%c0_161, %c1054] : memref<4x1280xf32, #tpu.memory_space<vmem>>, vector<4x1xf32>
    tpu.vector_store %arg7[%c0_161, %c1054], %220 {strides = array<i32>} : memref<4x1280xf32, #tpu.memory_space<vmem>>, vector<4x1xf32>,
    %222 = vector.extract_strided_slice %218 {offsets = [0, 30], sizes = [4, 1], strides = [1, 1]} : vector<4x32xf32> to vector<4x1xf32>
    %c0_162 = arith.constant 0 : index
    %c1087 = arith.constant 1087 : index
    %223 = vector.load %arg7[%c0_162, %c1087] : memref<4x1280xf32, #tpu.memory_space<vmem>>, vector<4x1xf32>
    tpu.vector_store %arg7[%c0_162, %c1087], %222 {strides = array<i32>} : memref<4x1280xf32, #tpu.memory_space<vmem>>, vector<4x1xf32>,
    %c0_163 = arith.constant 0 : index
    %c0_164 = arith.constant 0 : index
    %c992 = arith.constant 992 : index
    %224 = vector.load %arg2[%c0_163, %c0_164, %c992] : memref<1x4x1024xf32, #tpu.memory_space<vmem>>, vector<1x4x32xf32>
    %225 = vector.shape_cast %224 : vector<1x4x32xf32> to vector<4x32xf32>
    %c0_165 = arith.constant 0 : index
    %c1089 = arith.constant 1089 : index
    %226 = vector.load %arg7[%c0_165, %c1089] : memref<4x1280xf32, #tpu.memory_space<vmem>>, vector<4x32xf32>
    tpu.vector_store %arg7[%c0_165, %c1089], %225 {strides = array<i32>} : memref<4x1280xf32, #tpu.memory_space<vmem>>, vector<4x32xf32>,
    %227 = vector.extract_strided_slice %225 {offsets = [0, 1], sizes = [4, 1], strides = [1, 1]} : vector<4x32xf32> to vector<4x1xf32>
    %c0_166 = arith.constant 0 : index
    %c1088 = arith.constant 1088 : index
    %228 = vector.load %arg7[%c0_166, %c1088] : memref<4x1280xf32, #tpu.memory_space<vmem>>, vector<4x1xf32>
    tpu.vector_store %arg7[%c0_166, %c1088], %227 {strides = array<i32>} : memref<4x1280xf32, #tpu.memory_space<vmem>>, vector<4x1xf32>,
    %229 = vector.extract_strided_slice %225 {offsets = [0, 30], sizes = [4, 1], strides = [1, 1]} : vector<4x32xf32> to vector<4x1xf32>
    %c0_167 = arith.constant 0 : index
    %c1121 = arith.constant 1121 : index
    %230 = vector.load %arg7[%c0_167, %c1121] : memref<4x1280xf32, #tpu.memory_space<vmem>>, vector<4x1xf32>
    tpu.vector_store %arg7[%c0_167, %c1121], %229 {strides = array<i32>} : memref<4x1280xf32, #tpu.memory_space<vmem>>, vector<4x1xf32>,
    %c0_168 = arith.constant 0 : index
    %c0_169 = arith.constant 0 : index
    %c960_170 = arith.constant 960 : index
    %231 = vector.load %arg2[%c0_168, %c0_169, %c960_170] : memref<1x4x1024xf32, #tpu.memory_space<vmem>>, vector<1x4x32xf32>
    %232 = vector.shape_cast %231 : vector<1x4x32xf32> to vector<4x32xf32>
    %c0_171 = arith.constant 0 : index
    %c1123 = arith.constant 1123 : index
    %233 = vector.load %arg7[%c0_171, %c1123] : memref<4x1280xf32, #tpu.memory_space<vmem>>, vector<4x32xf32>
    tpu.vector_store %arg7[%c0_171, %c1123], %232 {strides = array<i32>} : memref<4x1280xf32, #tpu.memory_space<vmem>>, vector<4x32xf32>,
    %234 = vector.extract_strided_slice %232 {offsets = [0, 1], sizes = [4, 1], strides = [1, 1]} : vector<4x32xf32> to vector<4x1xf32>
    %c0_172 = arith.constant 0 : index
    %c1122 = arith.constant 1122 : index
    %235 = vector.load %arg7[%c0_172, %c1122] : memref<4x1280xf32, #tpu.memory_space<vmem>>, vector<4x1xf32>
    tpu.vector_store %arg7[%c0_172, %c1122], %234 {strides = array<i32>} : memref<4x1280xf32, #tpu.memory_space<vmem>>, vector<4x1xf32>,
    %236 = vector.extract_strided_slice %232 {offsets = [0, 30], sizes = [4, 1], strides = [1, 1]} : vector<4x32xf32> to vector<4x1xf32>
    %c0_173 = arith.constant 0 : index
    %c1155 = arith.constant 1155 : index
    %237 = vector.load %arg7[%c0_173, %c1155] : memref<4x1280xf32, #tpu.memory_space<vmem>>, vector<4x1xf32>
    tpu.vector_store %arg7[%c0_173, %c1155], %236 {strides = array<i32>} : memref<4x1280xf32, #tpu.memory_space<vmem>>, vector<4x1xf32>,
    %cst = arith.constant 0.000000e+00 : f32
    %238 = vector.broadcast %cst : f32 to vector<4x124xf32>
    %c0_174 = arith.constant 0 : index
    %c1156 = arith.constant 1156 : index
    %239 = vector.load %arg7[%c0_174, %c1156] : memref<4x1280xf32, #tpu.memory_space<vmem>>, vector<4x124xf32>
    tpu.vector_store %arg7[%c0_174, %c1156], %238 {strides = array<i32>} : memref<4x1280xf32, #tpu.memory_space<vmem>>, vector<4x124xf32>,
    %c0_175 = arith.constant 0 : index
    %c0_176 = arith.constant 0 : index
    %240 = vector.load %arg7[%c0_175, %c0_176] : memref<4x1280xf32, #tpu.memory_space<vmem>>, vector<4x1088xf32>
    %c0_177 = arith.constant 0 : index
    %c0_178 = arith.constant 0 : index
    %241 = vector.load %arg8[%c0_177, %c0_178] : memref<36x1088xf32, #tpu.memory_space<vmem>>, vector<4x1088xf32>
    tpu.vector_store %arg8[%c0_177, %c0_178], %240 {strides = array<i32>} : memref<36x1088xf32, #tpu.memory_space<vmem>>, vector<4x1088xf32>,
    %c0_179 = arith.constant 0 : index
    %c1_180 = arith.constant 1 : index
    %242 = vector.load %arg7[%c0_179, %c1_180] : memref<4x1280xf32, #tpu.memory_space<vmem>>, vector<4x1088xf32>
    %c4 = arith.constant 4 : index
    %c0_181 = arith.constant 0 : index
    %243 = vector.load %arg8[%c4, %c0_181] : memref<36x1088xf32, #tpu.memory_space<vmem>>, vector<4x1088xf32>
    tpu.vector_store %arg8[%c4, %c0_181], %242 {strides = array<i32>} : memref<36x1088xf32, #tpu.memory_space<vmem>>, vector<4x1088xf32>,
    %c0_182 = arith.constant 0 : index
    %c2 = arith.constant 2 : index
    %244 = vector.load %arg7[%c0_182, %c2] : memref<4x1280xf32, #tpu.memory_space<vmem>>, vector<4x1088xf32>
    %c8 = arith.constant 8 : index
    %c0_183 = arith.constant 0 : index
    %245 = vector.load %arg8[%c8, %c0_183] : memref<36x1088xf32, #tpu.memory_space<vmem>>, vector<4x1088xf32>
    tpu.vector_store %arg8[%c8, %c0_183], %244 {strides = array<i32>} : memref<36x1088xf32, #tpu.memory_space<vmem>>, vector<4x1088xf32>,
    %c0_184 = arith.constant 0 : index
    %c34_185 = arith.constant 34 : index
    %246 = vector.load %arg7[%c0_184, %c34_185] : memref<4x1280xf32, #tpu.memory_space<vmem>>, vector<4x1088xf32>
    %c12 = arith.constant 12 : index
    %c0_186 = arith.constant 0 : index
    %247 = vector.load %arg8[%c12, %c0_186] : memref<36x1088xf32, #tpu.memory_space<vmem>>, vector<4x1088xf32>
    tpu.vector_store %arg8[%c12, %c0_186], %246 {strides = array<i32>} : memref<36x1088xf32, #tpu.memory_space<vmem>>, vector<4x1088xf32>,
    %c0_187 = arith.constant 0 : index
    %c35_188 = arith.constant 35 : index
    %248 = vector.load %arg7[%c0_187, %c35_188] : memref<4x1280xf32, #tpu.memory_space<vmem>>, vector<4x1088xf32>
    %c16 = arith.constant 16 : index
    %c0_189 = arith.constant 0 : index
    %249 = vector.load %arg8[%c16, %c0_189] : memref<36x1088xf32, #tpu.memory_space<vmem>>, vector<4x1088xf32>
    tpu.vector_store %arg8[%c16, %c0_189], %248 {strides = array<i32>} : memref<36x1088xf32, #tpu.memory_space<vmem>>, vector<4x1088xf32>,
    %c0_190 = arith.constant 0 : index
    %c36 = arith.constant 36 : index
    %250 = vector.load %arg7[%c0_190, %c36] : memref<4x1280xf32, #tpu.memory_space<vmem>>, vector<4x1088xf32>
    %c20 = arith.constant 20 : index
    %c0_191 = arith.constant 0 : index
    %251 = vector.load %arg8[%c20, %c0_191] : memref<36x1088xf32, #tpu.memory_space<vmem>>, vector<4x1088xf32>
    tpu.vector_store %arg8[%c20, %c0_191], %250 {strides = array<i32>} : memref<36x1088xf32, #tpu.memory_space<vmem>>, vector<4x1088xf32>,
    %c0_192 = arith.constant 0 : index
    %c68_193 = arith.constant 68 : index
    %252 = vector.load %arg7[%c0_192, %c68_193] : memref<4x1280xf32, #tpu.memory_space<vmem>>, vector<4x1088xf32>
    %c24 = arith.constant 24 : index
    %c0_194 = arith.constant 0 : index
    %253 = vector.load %arg8[%c24, %c0_194] : memref<36x1088xf32, #tpu.memory_space<vmem>>, vector<4x1088xf32>
    tpu.vector_store %arg8[%c24, %c0_194], %252 {strides = array<i32>} : memref<36x1088xf32, #tpu.memory_space<vmem>>, vector<4x1088xf32>,
    %c0_195 = arith.constant 0 : index
    %c69_196 = arith.constant 69 : index
    %254 = vector.load %arg7[%c0_195, %c69_196] : memref<4x1280xf32, #tpu.memory_space<vmem>>, vector<4x1088xf32>
    %c28 = arith.constant 28 : index
    %c0_197 = arith.constant 0 : index
    %255 = vector.load %arg8[%c28, %c0_197] : memref<36x1088xf32, #tpu.memory_space<vmem>>, vector<4x1088xf32>
    tpu.vector_store %arg8[%c28, %c0_197], %254 {strides = array<i32>} : memref<36x1088xf32, #tpu.memory_space<vmem>>, vector<4x1088xf32>,
    %c0_198 = arith.constant 0 : index
    %c70 = arith.constant 70 : index
    %256 = vector.load %arg7[%c0_198, %c70] : memref<4x1280xf32, #tpu.memory_space<vmem>>, vector<4x1088xf32>
    %c32_199 = arith.constant 32 : index
    %c0_200 = arith.constant 0 : index
    %257 = vector.load %arg8[%c32_199, %c0_200] : memref<36x1088xf32, #tpu.memory_space<vmem>>, vector<4x1088xf32>
    tpu.vector_store %arg8[%c32_199, %c0_200], %256 {strides = array<i32>} : memref<36x1088xf32, #tpu.memory_space<vmem>>, vector<4x1088xf32>,
    %c0_201 = arith.constant 0 : index
    %c0_202 = arith.constant 0 : index
    %258 = vector.load %arg3[%c0_201, %c0_202] : memref<8x36xf32, #tpu.memory_space<vmem>>, vector<8x36xf32>
    %c0_203 = arith.constant 0 : index
    %c0_204 = arith.constant 0 : index
    %259 = vector.load %arg8[%c0_203, %c0_204] : memref<36x1088xf32, #tpu.memory_space<vmem>>, vector<36x1088xf32>
    %cst_205 = arith.constant dense<0.000000e+00> : vector<8x1088xf32>
    %260 = tpu.matmul %258, %259, %cst_205 {dimension_numbers = #tpu.dot_dimension_numbers<[1], [0], [0], [1], [0, 0, 1, 1], [], []>} : vector<8x36xf32>, vector<36x1088xf32>, vector<8x1088xf32> -> vector<8x1088xf32>
    %261 = tpu.iota {dimensions = array<i32: 1>} : vector<1x1088xi32>
    %262 = arith.sitofp %261 : vector<1x1088xi32> to vector<1x1088xf32>
    %cst_206 = arith.constant 5.000000e-01 : f32
    %263 = vector.broadcast %cst_206 : f32 to vector<1x1088xf32>
    %264 = arith.addf %262, %263 : vector<1x1088xf32>
    %cst_207 = arith.constant 0.0294117648 : f32
    %265 = vector.broadcast %cst_207 : f32 to vector<1x1088xf32>
    %266 = arith.mulf %264, %265 : vector<1x1088xf32>
    %267 = math.floor %266 : vector<1x1088xf32>
    %cst_208 = arith.constant 3.400000e+01 : f32
    %268 = vector.broadcast %cst_208 : f32 to vector<1x1088xf32>
    %269 = arith.mulf %267, %268 : vector<1x1088xf32>
    %270 = arith.subf %262, %269 : vector<1x1088xf32>
    %cst_209 = arith.constant 3.200000e+01 : f32
    %271 = vector.broadcast %cst_209 : f32 to vector<1x1088xf32>
    %272 = arith.cmpf olt, %270, %271 : vector<1x1088xf32>
    %273 = arith.extui %272 : vector<1x1088xi1> to vector<1x1088xi32>
    %274 = arith.sitofp %273 : vector<1x1088xi32> to vector<1x1088xf32>
    %275 = vector.broadcast %274 : vector<1x1088xf32> to vector<8x1088xf32>
    %276 = arith.mulf %260, %275 : vector<8x1088xf32>
    %cst_210 = arith.constant dense<0.000000e+00> : vector<8xf32>
    %277 = vector.multi_reduction <add>, %276, %cst_210 [1] : vector<8x1088xf32> to vector<8xf32>
    %278 = vector.shape_cast %277 : vector<8xf32> to vector<8x1xf32>
    %279 = arith.mulf %276, %260 : vector<8x1088xf32>
    %cst_211 = arith.constant dense<0.000000e+00> : vector<8xf32>
    %280 = vector.multi_reduction <add>, %279, %cst_211 [1] : vector<8x1088xf32> to vector<8xf32>
    %281 = vector.shape_cast %280 : vector<8xf32> to vector<8x1xf32>
    %cst_212 = arith.constant 9.765625E-4 : f32
    %282 = vector.broadcast %cst_212 : f32 to vector<8x1xf32>
    %283 = arith.mulf %278, %282 : vector<8x1xf32>
    %cst_213 = arith.constant 9.765625E-4 : f32
    %284 = vector.broadcast %cst_213 : f32 to vector<8x1xf32>
    %285 = arith.mulf %281, %284 : vector<8x1xf32>
    %286 = arith.mulf %283, %283 : vector<8x1xf32>
    %287 = arith.subf %285, %286 : vector<8x1xf32>
    %cst_214 = arith.constant 0.000000e+00 : f32
    %288 = vector.broadcast %cst_214 : f32 to vector<8x1xf32>
    %289 = arith.maximumf %287, %288 : vector<8x1xf32>
    %cst_215 = arith.constant 9.99999974E-6 : f32
    %290 = vector.broadcast %cst_215 : f32 to vector<8x1xf32>
    %291 = arith.addf %289, %290 : vector<8x1xf32>
    %292 = math.rsqrt %291 : vector<8x1xf32>
    %c0_216 = arith.constant 0 : index
    %c0_217 = arith.constant 0 : index
    %293 = vector.load %arg4[%c0_216, %c0_217] : memref<8x1xf32, #tpu.memory_space<vmem>>, vector<8x1xf32>
    %294 = arith.mulf %292, %293 : vector<8x1xf32>
    %c0_218 = arith.constant 0 : index
    %c0_219 = arith.constant 0 : index
    %295 = vector.load %arg5[%c0_218, %c0_219] : memref<8x1xf32, #tpu.memory_space<vmem>>, vector<8x1xf32>
    %296 = arith.mulf %283, %294 : vector<8x1xf32>
    %297 = arith.subf %295, %296 : vector<8x1xf32>
    %298 = vector.broadcast %294 : vector<8x1xf32> to vector<8x1088xf32>
    %299 = arith.mulf %260, %298 : vector<8x1088xf32>
    %300 = vector.broadcast %297 : vector<8x1xf32> to vector<8x1088xf32>
    %301 = arith.addf %299, %300 : vector<8x1088xf32>
    %c0_220 = arith.constant 0 : index
    %c0_221 = arith.constant 0 : index
    %c0_222 = arith.constant 0 : index
    %302 = vector.load %arg6[%c0_220, %c0_221, %c0_222] : memref<1x8x1088xf32, #tpu.memory_space<vmem>>, vector<1x8x1088xf32>
    %303 = vector.shape_cast %302 : vector<1x8x1088xf32> to vector<8x1088xf32>
    %304 = vector.shape_cast %301 : vector<8x1088xf32> to vector<1x8x1088xf32>
    tpu.vector_store %arg6[%c0_220, %c0_221, %c0_222], %304 {strides = array<i32>} : memref<1x8x1088xf32, #tpu.memory_space<vmem>>, vector<1x8x1088xf32>,
    return
  }
  func.func @transform_0(%arg0: i32, %arg1: i32) -> (i32, i32, i32) {
    %c0_i32 = arith.constant 0 : i32
    %c0_i32_0 = arith.constant 0 : i32
    %c0_i32_1 = arith.constant 0 : i32
    return %arg0, %c0_i32, %c0_i32_0 : i32, i32, i32
  }
  func.func @transform_1(%arg0: i32, %arg1: i32) -> (i32, i32) {
    %c0_i32 = arith.constant 0 : i32
    %c0_i32_0 = arith.constant 0 : i32
    return %arg1, %c0_i32 : i32, i32
  }
  func.func @transform_2(%arg0: i32, %arg1: i32) -> (i32, i32) {
    %c0_i32 = arith.constant 0 : i32
    %c0_i32_0 = arith.constant 0 : i32
    return %arg1, %c0_i32 : i32, i32
  }
  func.func @transform_3(%arg0: i32, %arg1: i32) -> (i32, i32) {
    %c0_i32 = arith.constant 0 : i32
    %c0_i32_0 = arith.constant 0 : i32
    return %arg1, %c0_i32 : i32, i32
  }
  func.func @transform_4(%arg0: i32, %arg1: i32) -> (i32, i32, i32) {
    %c0_i32 = arith.constant 0 : i32
    %c0_i32_0 = arith.constant 0 : i32
    return %arg0, %arg1, %c0_i32 : i32, i32, i32
  }
}

</mosaic_0001>

<bundles_post_ra>
// kernel: tpu_custom_call.1
= control target key start
LH: loop header
LB: loop body
LE: loop exit
PB: predicated region body
PF: predicated region fallthrough
CT: control target
= control target key end

     0   :  { %9 = vsyncpa [#allocation5], 0  ;;  %s3223_s0 = inlined_call_operand.hbm [shape: f32[2,4,1024], index: 0, kind: input, shape index: {}]   ;;  %s3224_s1 = inlined_call_operand.vmem [shape: f32[8,36], index: 1, kind: input, shape index: {}]   ;;  %s3225_s2 = inlined_call_operand.vmem [shape: f32[8,1], index: 2, kind: input, shape index: {}]   ;;  %s3226_s3 = inlined_call_operand.vmem [shape: f32[8,1], index: 3, kind: input, shape index: {}]   ;;  %s3227_s4 = inlined_call_operand.hbm [shape: f32[2,8,1088], index: 4, kind: output, shape index: {}]  }
   0x1   :  { %11 = vsyncpa [#allocation5 + $0x1], 0 }
   0x2   :  { %12 = vsyncpa [#allocation6], 0 }
   0x3   :  { %14 = vsyncpa [#allocation6 + $0x1], 0  ;;  %s2533_s15 = smov 0   ;;  %s2535_s16 = smov 0  }
   0x4   :  { %s2537_s17 = smov 0   ;;  %s2539_s18 = smov 0  }
   0x5   :  { %s2541_s19 = smov 0   ;;  %s2543_s20 = smov 0  }
   0x6 LB: > { %s2174_s21 = sadd.s32 4294967295, %s2461_s20   ;;  %s2175_s22 = sadd.s32 4294967294, %s2461_s20   ;;  %s2461_s20 = sphi %s2543_s20, %s20_s20   ;;  %s2457_s19 = sphi %s2541_s19, %s3244_s19   ;;  %s2453_s18 = sphi %s2539_s18, %s3243_s18   ;;  %s2449_s17 = sphi %s2537_s17, %s3242_s17   ;;  %s2445_s16 = sphi %s2535_s16, %s3241_s16   ;;  %s2441_s15 = sphi %s2533_s15, %s3240_s15  }
   0x7   : > { %s32_s23 = sadd.s32 1, %s2457_s19  ;;  %s39_s24 = sadd.s32 1, %s2449_s17 }
   0x8   : > { %p34_p0 = scmp.ge.s32.totalorder %s32_s23, 2  ;;  %p46_p1 = scmp.ne.s32.totalorder %s2449_s17, %s2445_s16 }
   0x9   : > { %p47_p2 = scmp.eq.s32.totalorder %s2461_s20, 0  ;;  %p52_p3 = scmp.ne.s32.totalorder %s2445_s16, %s2441_s15 }
   0xa   : > { %s3246_s23 = smov (%p34_p0, %s32_s23), 0  ;;  %p53_p5 = scmp.eq.s32.totalorder %s2174_s21, 0 }
   0xb   : > { %p2574_p4 = por %p47_p2, %p46_p1  ;;  %s36_s26 = ssub.s32 %s2457_s19, %s3246_s23 }
   0xc   : > { %p156_p6 = scmp.eq.s32.totalorder %s2174_s21, 1  ;;  %p37_p7 = scmp.eq.s32.totalorder %s36_s26, 0 }
   0xd   : > { %p2580_p8 = por %p53_p5, %p52_p3  ;;  %p162_p10 = scmp.eq.s32.totalorder %s2175_s22, 1 }
   0xe   : > { %p2584_p9 = por %p156_p6, %p46_p1  ;;  %p2246_p13 = scmp.lt.s32.totalorder %s2461_s20, 2 }
   0xf   : > { %s2589_s29 = scalar_select %p37_p7, %s2449_s17, %s39_s24  }
  0x10   : > { %p2591_p11 = por %p162_p10, %p52_p3  ;;  %s203_s5 = sand.u32 1, %s2449_s17  }
  0x11   : > { %s2181_s6 = sshll.u32 %s203_s5, 5  ;;  %s2212_s7 = sshll.u32 %s2457_s19, 9 }
  0x12   : > { %s3234_s30 = scalar_select %p2591_p11, 1, 0 }
  0x13   : > { %s213_s10 = scalar_lea.hbm %s3223_s0, %s2212_s7  ;;  %s207_s11 = scalar_lea.vmem [#allocation4], %s2181_s6 }
  0x14   : > { %s215_s12 = sshll.u32 %s207_s11, 4  ;;  %p2604_p0 = pnand %p2246_p13, %p2574_p4  ;;  %s216_s12 = int_to_ptr.vmem [resolvable:$true] %s215_s12 }
  0x15   : > { %p2184_p1 = scmp.ge.s32.totalorder %s2461_s20, 1  ;;  %p220_p2 = scmp.lt.s32.totalorder %s2461_s20, 3 }
  0x16   : > { %s204_s14 = scalar_lea.sflag [#allocation5], %s203_s5  ;;  %p2355_p3 = pneg %p2604_p0 }
  0x17   : > { %s2366_s21 = scalar_lea.vmem %s216_s12, 512  ;;  %s2463_s22 = smov [#allocation4]  }
  0x18   : > { %p2367_p5 = scmp.ne.s32.totalorder %s216_s12, %s2366_s21  ;;  %s2371_s24 = sshll.u32 %s2463_s22, 4  ;;  %s2372_s24 = int_to_ptr.vmem [resolvable:$false] %s2371_s24 }
  0x19   : > { %s2373_s26 = scalar_lea.vmem %s2372_s24, 1024  ;;  %p2374_p10 = scmp.lt.s32.totalorder %s216_s12, %s2372_s24 }
  0x1a   : > { %p2369_p6 = pnand %p2367_p5, %p2355_p3  ;;  %p2375_p12 = scmp.lt.s32.totalorder %s2373_s26, %s2366_s21 }
  0x1c   : > { %p2370_p7 = pneg %p2369_p6  ;;  %p2376_p4 = por %p2375_p12, %p2374_p10 }
  0x1e   : > { %p2377_p13 = pnand %p2376_p4, %p2370_p7 }
  0x20   : > { %2380 = shalt.err (!%p2377_p13)
}
  0x21   : > { %2241 = dma.hbm_to_vmem [thread:$0]  (!%p2604_p0), %s213_s10, 512, %s216_s12, %s204_s14  }
  0x22   : > { %p221_p11 = pnand %p2184_p1, %p220_p2 }
  0x23   : > { %s2619_s25 = sand.u32 (!%p221_p11), 1, %s2445_s16  }
  0x24   : > { %224 = sbr.rel (%p221_p11) target bundleno = 1105 (0x451), region = 36  ;;  %s2185_s5 = sshll.u32 (!%p221_p11), %s2619_s25, 5 }
  0x25   : > { %s227_s6 = scalar_lea.sflag (!%p221_p11), [#allocation5], %s2619_s25  ;;  %s2623_s7 = scalar_lea.vmem (!%p221_p11), [#allocation4], %s2185_s5 }
  0x29   : > { %2432 = dma.done.wait (%p2580_p8), %s227_s6, 512  }
  0x2a   : > { %2434 = vsyncadd (%p2580_p8), %s227_s6, 4294966784  ;;  %v279_v0 = vld [vmem:[%s2623_s7] sm:$0xf]  ;;  %s2464_s8 = smov 99   ;;  %s2465_s9 = smov 97   ;;  %vm284_vm0 = vcmask 265224  }
  0x2b   : > { %291 = vrot.lane.b32.xlu1 %v279_v0, %s2464_s8  ;;  %281 = vrot.lane.b32.xlu0 %v279_v0, %s2465_s9  ;;  %v296_v1 = vld [vmem:[%s2623_s7] sm:$0xf]  ;;  %s2466_s10 = smov 35   ;;  %s2467_s11 = smov 95   ;;  %v369_v5 = vld [vmem:[%s2623_s7 + $0x4] sm:$0xf] }
  0x2c   : > { %s2468_s27 = smov 37   ;;  %s3230_s12 = smov 33   ;;  %v2638_v2 = vld [vmem:[%s2623_s7] sm:$0xf]  ;;  %v386_v6 = vld [vmem:[%s2623_s7 + $0x4] sm:$0xf] }
  0x2d   : > { %v313_v3 = vld [vmem:[%s2623_s7] sm:$0xf]  ;;  %s2470_s13 = smov 39   ;;  %s2471_s14 = smov 41   ;;  %v2651_v7 = vld [vmem:[%s2623_s7 + $0x4] sm:$0xf] }
  0x2e   : > { %v352_v4 = vld [vmem:[%s2623_s7] sm:$0xf]  ;;  %s2472_s21 = smov 43   ;;  %s2473_s22 = smov 45   ;;  %v425_v8 = vld [vmem:[%s2623_s7 + $0x4] sm:$0xf] }
  0x2f   : > { %298 = vrot.lane.b32.xlu1 %v296_v1, %s2466_s10  ;;  %286 = vrot.lane.b32.xlu0 %v279_v0, %s2467_s11  ;;  %s2474_s24 = smov 47   ;;  %s2475_s26 = smov 49   ;;  %v442_v9 = vld [vmem:[%s2623_s7 + $0x8] sm:$0xf]  ;;  %v515_v13 = vld [vmem:[%s2623_s7 + $0xc] sm:$0xf] }
  0x30   : > { %s2476_s5 = smov 51   ;;  %s2477_s6 = smov 53   ;;  %v2659_v10 = vld [vmem:[%s2623_s7 + $0x8] sm:$0xf]  ;;  %v532_v14 = vld [vmem:[%s2623_s7 + $0xc] sm:$0xf] }
  0x31   : > { %v459_v11 = vld [vmem:[%s2623_s7 + $0x8] sm:$0xf]  ;;  %v2673_v15 = vld [vmem:[%s2623_s7 + $0xc] sm:$0xf]  ;;  %v588_v17 = vld [vmem:[%s2623_s7 + $0x10] sm:$0xf] }
  0x32   : > { %v498_v12 = vld [vmem:[%s2623_s7 + $0x8] sm:$0xf]  ;;  %v571_v16 = vld [vmem:[%s2623_s7 + $0xc] sm:$0xf]  ;;  %v2683_v18 = vld [vmem:[%s2623_s7 + $0x10] sm:$0xf] }
  0x33   : > { %308 = vrot.lane.b32.xlu1 %v296_v1, %s2468_s27  ;;  %303 = vrot.lane.b32.xlu0 %v296_v1, %s3230_s12  ;;  %v627_v19 = vld [vmem:[%s2623_s7 + $0x10] sm:$0xf]  ;;  %s2488_s12 = smov 75   ;;  %v2691_v21 = vld [vmem:[%s2623_s7 + $0x14] sm:$0xf]  ;;  %vm289_vm1 = vcmask 3072  }
  0x34   : > { %v644_v20 = vld [vmem:[%s2623_s7 + $0x10] sm:$0xf]  ;;  %v661_v22 = vld [vmem:[%s2623_s7 + $0x14] sm:$0xf]  ;;  %vm294_vm2 = vcmask 273672   ;;  %vm301_vm3 = vcmask 544024  }
  0x35   : > { %vm306_vm4 = vcmask 281872   ;;  %vm311_vm5 = vcmask 552472   ;;  %v700_v27 = vld [vmem:[%s2623_s7 + $0x14] sm:$0xf]  ;;  %vm318_vm6 = vcmask 822824   ;;  %vm338_vm7 = vcmask 1044280  }
  0x36   : > { %vm339_vm8 = vcmask 56324   ;;  %vm323_vm9 = vcmask 560672   ;;  %vm335_vm10 = vcmask 318464   ;;  %vm328_vm11 = vcmask 831272   ;;  %v717_v33 = vld [vmem:[%s2623_s7 + $0x14] sm:$0xf] }
  0x37   : > { %332 = vrot.lane.b32.xlu1 %v2638_v2, %s2470_s13  ;;  %315 = vrot.lane.b32.xlu0 %v313_v3, %s2468_s27  ;;  %vm340_vm12 = vmor %vm339_vm8, %vm338_vm7  ;;  %vm350_vm13 = vcmask 60472   ;;  %vm357_vm14 = vcmask 330824   ;;  %v734_v37 = vld [vmem:[%s2623_s7 + $0x18] sm:$0xf]  ;;  %vm362_vm15 = vcmask 68672   ;;  %vm412_vm7 = vcmask 121860  }
  0x38   : > { %v2708_v40 = vld [vmem:[%s2623_s7 + $0x18] sm:$0xf]  ;;  %vm408_vm8 = vcmask 384000   ;;  %v807_v59 = vld [vmem:[%s2623_s7 + $0x1c] sm:$0xf] }
  0x39   : > { %v773_v47 = vld [vmem:[%s2623_s7 + $0x18] sm:$0xf]  ;;  %v824_v60 = vld [vmem:[%s2623_s7 + $0x1c] sm:$0xf] }
  0x3a   : > { %v790_v54 = vld [vmem:[%s2623_s7 + $0x18] sm:$0xf] }
  0x3b   : > { %325 = vrot.lane.b32.xlu1 %v313_v3, %s2470_s13  ;;  %320 = vrot.lane.b32.xlu0 %v313_v3, %s2466_s10 }
  0x3f   : > { %354 = vrot.lane.b32.xlu1 %v352_v4, %s2471_s14  ;;  %347 = vrot.lane.b32.xlu0 %v2638_v2, %s2471_s14 }
  0x43   : > { %364 = vrot.lane.b32.xlu1 %v352_v4, %s2472_s21  ;;  %359 = vrot.lane.b32.xlu0 %v352_v4, %s2470_s13  ;;  %s2478_s13 = smov 55  }
  0x47   : > { %376 = vrot.lane.b32.xlu1 %v369_v5, %s2471_s14  ;;  %371 = vrot.lane.b32.xlu0 %v369_v5, %s2472_s21  ;;  %s2479_s14 = smov 57  }
  0x4b   : > { %388 = vrot.lane.b32.xlu1 %v386_v6, %s2473_s22  ;;  %381 = vrot.lane.b32.xlu0 %v369_v5, %s2473_s22  ;;  %v846_v5 = vld [vmem:[%s2623_s7 + $0x1c] sm:$0xf] }
  0x4f   : > { %393 = vrot.lane.b32.xlu1 %v386_v6, %s2472_s21  ;;  %405 = vrot.lane.b32.xlu0 %v2651_v7, %s2474_s24  ;;  %s3228_s21 = smov 59  }
  0x53   : > { %420 = vrot.lane.b32.xlu1 %v2651_v7, %s2475_s26  ;;  %398 = vrot.lane.b32.xlu0 %v386_v6, %s2474_s24 }
  0x57   : > { %432 = vrot.lane.b32.xlu1 %v425_v8, %s2474_s24  ;;  %427 = vrot.lane.b32.xlu0 %v425_v8, %s2475_s26  ;;  %s2481_s24 = smov 61  }
  0x5b   : > { %444 = vrot.lane.b32.xlu1 %v442_v9, %s2476_s5  ;;  %437 = vrot.lane.b32.xlu0 %v425_v8, %s2476_s5 }
  0x5f   : > { %454 = vrot.lane.b32.xlu1 %v442_v9, %s2477_s6  ;;  %449 = vrot.lane.b32.xlu0 %v442_v9, %s2475_s26  ;;  %s2482_s26 = smov 63  }
  0x63   : > { %478 = vrot.lane.b32.xlu1 %v2659_v10, %s2478_s13  ;;  %461 = vrot.lane.b32.xlu0 %v459_v11, %s2477_s6 }
  0x67   : > { %471 = vrot.lane.b32.xlu1 %v459_v11, %s2478_s13  ;;  %466 = vrot.lane.b32.xlu0 %v459_v11, %s2476_s5  ;;  %s2483_s5 = smov 65  }
  0x6b   : > { %500 = vrot.lane.b32.xlu1 %v498_v12, %s2479_s14  ;;  %493 = vrot.lane.b32.xlu0 %v2659_v10, %s2479_s14 }
  0x6f   : > { %510 = vrot.lane.b32.xlu1 %v498_v12, %s3228_s21  ;;  %505 = vrot.lane.b32.xlu0 %v498_v12, %s2478_s13  ;;  %s2484_s13 = smov 67   ;;  %v863_v12 = vld [vmem:[%s2623_s7 + $0x1c] sm:$0xf] }
  0x73   : > { %522 = vrot.lane.b32.xlu1 %v515_v13, %s2479_s14  ;;  %517 = vrot.lane.b32.xlu0 %v515_v13, %s3228_s21  ;;  %s2485_s14 = smov 69  }
  0x77   : > { %534 = vrot.lane.b32.xlu1 %v532_v14, %s2481_s24  ;;  %527 = vrot.lane.b32.xlu0 %v515_v13, %s2481_s24  ;;  %v880_v13 = vld [vmem:[%s2623_s7 + $0x1c] sm:$0xf]  ;;  %s3236_s7 = smov 33  }
  0x7b   : > { %539 = vrot.lane.b32.xlu1 %v532_v14, %s3228_s21  ;;  %551 = vrot.lane.b32.xlu0 %v2673_v15, %s2482_s26  ;;  %s2486_s21 = smov 71  }
  0x7f   : > { %566 = vrot.lane.b32.xlu1 %v2673_v15, %s2483_s5  ;;  %544 = vrot.lane.b32.xlu0 %v532_v14, %s2482_s26 }
  0x83   : > { %578 = vrot.lane.b32.xlu1 %v571_v16, %s2482_s26  ;;  %573 = vrot.lane.b32.xlu0 %v571_v16, %s2483_s5  ;;  %s2487_s26 = smov 73  }
  0x87   : > { %590 = vrot.lane.b32.xlu1 %v588_v17, %s2484_s13  ;;  %583 = vrot.lane.b32.xlu0 %v571_v16, %s2484_s13 }
  0x8b   : > { %595 = vrot.lane.b32.xlu1 %v588_v17, %s2483_s5  ;;  %607 = vrot.lane.b32.xlu0 %v2683_v18, %s2485_s14  ;;  %s2489_s5 = smov 77  }
  0x8f   : > { %622 = vrot.lane.b32.xlu1 %v2683_v18, %s2486_s21  ;;  %600 = vrot.lane.b32.xlu0 %v588_v17, %s2485_s14 }
  0x93   : > { %634 = vrot.lane.b32.xlu1 %v627_v19, %s2485_s14  ;;  %629 = vrot.lane.b32.xlu0 %v627_v19, %s2486_s21  ;;  %s2491_s14 = smov 81  }
  0x97   : > { %646 = vrot.lane.b32.xlu1 %v644_v20, %s2487_s26  ;;  %639 = vrot.lane.b32.xlu0 %v627_v19, %s2487_s26 }
  0x9b   : > { %656 = vrot.lane.b32.xlu1 %v644_v20, %s2488_s12  ;;  %651 = vrot.lane.b32.xlu0 %v644_v20, %s2486_s21  ;;  %s2490_s21 = smov 79  }
  0x9d   : > { %v292_v23 = vpop.permute.xlu1 %291  ;;  %v282_v24 = vpop.permute.xlu0 %281 }
  0x9e   : > { %285 = vst.msk [vmem:[#allocation2] sm:$0xf] %vm284_vm0, %v282_v24  ;;  %vm367_vm0 = vcmask 339272  }
  0x9f   : > { %680 = vrot.lane.b32.xlu1 %v2691_v21, %s2489_s5  ;;  %663 = vrot.lane.b32.xlu0 %v661_v22, %s2488_s12 }
  0xa1   : > { %v299_v25 = vpop.permute.xlu1 %298  ;;  %v287_v26 = vpop.permute.xlu0 %286 }
  0xa2   : > { %290 = vst.msk [vmem:[#allocation2] sm:$0xf] %vm289_vm1, %v287_v26  ;;  %vm374_vm1 = vcmask 609624  }
  0xa3   : > { %295 = vst.msk [vmem:[#allocation2] sm:$0xf] %vm294_vm2, %v292_v23  ;;  %673 = vrot.lane.b32.xlu1 %v661_v22, %s2489_s5  ;;  %668 = vrot.lane.b32.xlu0 %v661_v22, %s2487_s26  ;;  %s2492_s26 = smov 83   ;;  %vm379_vm2 = vcmask 347472  }
  0xa4   : > { %302 = vst.msk [vmem:[#allocation2] sm:$0xf] %vm301_vm3, %v299_v25  ;;  %vm384_vm3 = vcmask 618072  }
  0xa5   : > { %v309_v28 = vpop.permute.xlu1 %308  ;;  %v304_v29 = vpop.permute.xlu0 %303 }
  0xa6   : > { %307 = vst.msk [vmem:[#allocation2] sm:$0xf] %vm306_vm4, %v304_v29  ;;  %vm391_vm4 = vcmask 888424  }
  0xa7   : > { %312 = vst.msk [vmem:[#allocation2] sm:$0xf] %vm311_vm5, %v309_v28  ;;  %702 = vrot.lane.b32.xlu1 %v700_v27, %s2490_s21  ;;  %695 = vrot.lane.b32.xlu0 %v2691_v21, %s2490_s21  ;;  %vm396_vm5 = vcmask 626272  }
  0xa9   : > { %v333_v30 = vpop.permute.xlu1 %332  ;;  %v316_v31 = vpop.permute.xlu0 %315 }
  0xaa   : > { %319 = vst.msk [vmem:[#allocation2] sm:$0xf] %vm318_vm6, %v316_v31  ;;  %v334_v32 = vrot.slane %v333_v30, 4  ;;  %vm411_vm6 = vcmask 1044344  }
  0xab   : > { %712 = vrot.lane.b32.xlu1 %v700_v27, %s2491_s14  ;;  %707 = vrot.lane.b32.xlu0 %v700_v27, %s2489_s5  ;;  %s2493_s5 = smov 85  }
  0xac   : > { %v336_v36 = vsel %vm335_vm10, %v334_v32, %v333_v30  ;;  %vm413_vm10 = vmor %vm412_vm7, %vm411_vm6  ;;  %vm481_vm6 = vcmask 449536   ;;  %vm474_vm7 = vcmask 962472  }
  0xad   : > { %v326_v34 = vpop.permute.xlu1 %325  ;;  %v321_v35 = vpop.permute.xlu0 %320 }
  0xae   : > { %324 = vst.msk [vmem:[#allocation2] sm:$0xf] %vm323_vm9, %v321_v35  ;;  %vm401_vm9 = vcmask 896872  }
  0xaf   : > { %329 = vst.msk [vmem:[#allocation2] sm:$0xf] %vm328_vm11, %v326_v34  ;;  %724 = vrot.lane.b32.xlu1 %v717_v33, %s2490_s21  ;;  %719 = vrot.lane.b32.xlu0 %v717_v33, %s2491_s14  ;;  %s2494_s21 = smov 87   ;;  %vm423_vm11 = vcmask 126072  }
  0xb0   : > { %341 = vst.msk [vmem:[#allocation2] sm:$0xff] %vm340_vm12, %v336_v36  ;;  %vm430_vm12 = vcmask 396424  }
  0xb1   : > { %v355_v38 = vpop.permute.xlu1 %354  ;;  %v348_v39 = vpop.permute.xlu0 %347 }
  0xb2   : > { %351 = vst.msk [vmem:[#allocation2 + $0x4] sm:$0xf] %vm350_vm13, %v348_v39  ;;  %vm435_vm13 = vcmask 134272  }
  0xb3   : > { %358 = vst.msk [vmem:[#allocation2 + $0x4] sm:$0xf] %vm357_vm14, %v355_v38  ;;  %736 = vrot.lane.b32.xlu1 %v734_v37, %s2492_s26  ;;  %729 = vrot.lane.b32.xlu0 %v717_v33, %s2492_s26  ;;  %vm440_vm14 = vcmask 404872  }
  0xb5   : > { %v365_v41 = vpop.permute.xlu1 %364  ;;  %v360_v42 = vpop.permute.xlu0 %359 }
  0xb6   : > { %363 = vst.msk [vmem:[#allocation2 + $0x4] sm:$0xf] %vm362_vm15, %v360_v42  ;;  %vm447_vm15 = vcmask 675224  }
  0xb7   : > { %368 = vst.msk [vmem:[#allocation2 + $0x4] sm:$0xf] %vm367_vm0, %v365_v41  ;;  %741 = vrot.lane.b32.xlu1 %v734_v37, %s2491_s14  ;;  %753 = vrot.lane.b32.xlu0 %v2708_v40, %s2493_s5  ;;  %vm452_vm0 = vcmask 413072  }
  0xb9   : > { %v377_v43 = vpop.permute.xlu1 %376  ;;  %v372_v44 = vpop.permute.xlu0 %371 }
  0xba   : > { %375 = vst.msk [vmem:[#allocation2 + $0x4] sm:$0xf] %vm374_vm1, %v372_v44  ;;  %vm457_vm1 = vcmask 683672  }
  0xbb   : > { %380 = vst.msk [vmem:[#allocation2 + $0x4] sm:$0xf] %vm379_vm2, %v377_v43  ;;  %768 = vrot.lane.b32.xlu1 %v2708_v40, %s2494_s21  ;;  %746 = vrot.lane.b32.xlu0 %v734_v37, %s2493_s5  ;;  %vm464_vm2 = vcmask 954024  }
  0xbd   : > { %v389_v45 = vpop.permute.xlu1 %388  ;;  %v382_v46 = vpop.permute.xlu0 %381 }
  0xbe   : > { %385 = vst.msk [vmem:[#allocation2 + $0x4] sm:$0xf] %vm384_vm3, %v382_v46  ;;  %vm484_vm3 = vcmask 1044408  }
  0xbf   : > { %392 = vst.msk [vmem:[#allocation2 + $0x4] sm:$0xf] %vm391_vm4, %v389_v45  ;;  %415 = vrot.lane.b32.xlu1 %v2651_v7, %s2473_s22  ;;  %342 = vrot.lane.b32.xlu0 %v2638_v2, %s2468_s27  ;;  %s2495_s22 = smov 89   ;;  %vm485_vm4 = vcmask 187396  }
  0xc1   : > { %v394_v48 = vpop.permute.xlu1 %393  ;;  %v406_v49 = vpop.permute.xlu0 %405 }
  0xc2   : > { %397 = vst.msk [vmem:[#allocation2 + $0x4] sm:$0xf] %vm396_vm5, %v394_v48  ;;  %v407_v50 = vrot.slane %v406_v49, 4  ;;  %vm469_vm5 = vcmask 691872  }
  0xc3   : > { %780 = vrot.lane.b32.xlu1 %v773_v47, %s2493_s5  ;;  %775 = vrot.lane.b32.xlu0 %v773_v47, %s2494_s21 }
  0xc4   : > { %v409_v53 = vsel %vm408_vm8, %v407_v50, %v406_v49  ;;  %vm486_vm8 = vmor %vm485_vm4, %vm484_vm3  ;;  %vm558_vm3 = vcmask 252932   ;;  %vm554_vm4 = vcmask 515072  }
  0xc5   : > { %v421_v51 = vpop.permute.xlu1 %420  ;;  %v399_v52 = vpop.permute.xlu0 %398 }
  0xc6   : > { %402 = vst.msk [vmem:[#allocation2 + $0x4] sm:$0xf] %vm401_vm9, %v399_v52  ;;  %vm496_vm9 = vcmask 191672   ;;  %v2498_v52 = vmov 0.0  }
  0xc7   : > { %414 = vst.msk [vmem:[#allocation2 + $0x4] sm:$0xff] %vm413_vm10, %v409_v53  ;;  %561 = vrot.lane.b32.xlu1 %v2673_v15, %s2481_s24  ;;  %488 = vrot.lane.b32.xlu0 %v2659_v10, %s2477_s6  ;;  %s2496_s6 = smov 91   ;;  %s2497_s24 = smov 93   ;;  %vm503_vm10 = vcmask 462024  }
  0xc8   : > { %424 = vst.msk [vmem:[#allocation2 + $0x8] sm:$0xf] %vm423_vm11, %v421_v51  ;;  %vm508_vm11 = vcmask 199872   ;;  %1560 = vmatprep.mubr.f32.mxu0 %v2498_v52  ;;  %1631 = vmatprep.mubr.f32.mxu1 %v2498_v52 }
  0xc9   : > { %v433_v55 = vpop.permute.xlu1 %432  ;;  %v428_v56 = vpop.permute.xlu0 %427 }
  0xca   : > { %431 = vst.msk [vmem:[#allocation2 + $0x8] sm:$0xf] %vm430_vm12, %v428_v56  ;;  %vm513_vm12 = vcmask 470472  }
  0xcb   : > { %436 = vst.msk [vmem:[#allocation2 + $0x8] sm:$0xf] %vm435_vm13, %v433_v55  ;;  %785 = vrot.lane.b32.xlu0 %v773_v47, %s2495_s22  ;;  %792 = vrot.lane.b32.xlu1 %v790_v54, %s2495_s22  ;;  %vm520_vm13 = vcmask 740824  }
  0xcd   : > { %v445_v57 = vpop.permute.xlu1 %444  ;;  %v438_v58 = vpop.permute.xlu0 %437 }
  0xce   : > { %441 = vst.msk [vmem:[#allocation2 + $0x8] sm:$0xf] %vm440_vm14, %v438_v58  ;;  %vm525_vm14 = vcmask 478672  }
  0xcf   : > { %448 = vst.msk [vmem:[#allocation2 + $0x8] sm:$0xf] %vm447_vm15, %v445_v57  ;;  %797 = vrot.lane.b32.xlu0 %v790_v54, %s2494_s21  ;;  %802 = vrot.lane.b32.xlu1 %v790_v54, %s2496_s6  ;;  %vm530_vm15 = vcmask 749272  }
  0xd1   : > { %v455_v61 = vpop.permute.xlu1 %454  ;;  %v450_v62 = vpop.permute.xlu0 %449 }
  0xd2   : > { %453 = vst.msk [vmem:[#allocation2 + $0x8] sm:$0xf] %vm452_vm0, %v450_v62  ;;  %vm537_vm0 = vcmask 1019624  }
  0xd3   : > { %458 = vst.msk [vmem:[#allocation2 + $0x8] sm:$0xf] %vm457_vm1, %v455_v61  ;;  %809 = vrot.lane.b32.xlu0 %v807_v59, %s2496_s6  ;;  %826 = vrot.lane.b32.xlu1 %v824_v60, %s2497_s24  ;;  %vm542_vm1 = vcmask 757472  }
  0xd5   : > { %v479_v63 = vpop.permute.xlu1 %478  ;;  %v462_v0 = vpop.permute.xlu0 %461 }
  0xd6   : > { %465 = vst.msk [vmem:[#allocation2 + $0x8] sm:$0xf] %vm464_vm2, %v462_v0  ;;  %v480_v1 = vrot.slane %v479_v63, 4  ;;  %vm557_vm2 = vcmask 1044472  }
  0xd7   : > { %814 = vrot.lane.b32.xlu0 %v807_v59, %s2495_s22  ;;  %819 = vrot.lane.b32.xlu1 %v807_v59, %s2497_s24 }
  0xd8   : > { %v482_v4 = vsel %vm481_vm6, %v480_v1, %v479_v63  ;;  %vm559_vm6 = vmor %vm558_vm3, %vm557_vm2  ;;  %vm625_vm2 = vcmask 44072   ;;  %vm632_vm3 = vcmask 314424  }
  0xd9   : > { %v472_v2 = vpop.permute.xlu1 %471  ;;  %v467_v3 = vpop.permute.xlu0 %466 }
  0xda   : > { %470 = vst.msk [vmem:[#allocation2 + $0x8] sm:$0xf] %vm469_vm5, %v467_v3  ;;  %vm547_vm5 = vcmask 1028072  }
  0xdb   : > { %475 = vst.msk [vmem:[#allocation2 + $0x8] sm:$0xf] %vm474_vm7, %v472_v2  ;;  %690 = vrot.lane.b32.xlu1 %v2691_v21, %s2488_s12  ;;  %617 = vrot.lane.b32.xlu0 %v2683_v18, %s2484_s13  ;;  %vm569_vm7 = vcmask 257272   ;;  %s2503_s12 = smov 94   ;;  %s2504_s13 = smov 127  }
  0xdc   : > { %487 = vst.msk [vmem:[#allocation2 + $0x8] sm:$0xff] %vm486_vm8, %v482_v4  ;;  %vm576_vm8 = vcmask 527624  }
  0xdd   : > { %v501_v6 = vpop.permute.xlu1 %500  ;;  %v494_v7 = vpop.permute.xlu0 %493 }
  0xde   : > { %497 = vst.msk [vmem:[#allocation2 + $0xc] sm:$0xf] %vm496_vm9, %v494_v7  ;;  %vm581_vm9 = vcmask 265472  }
  0xdf   : > { %504 = vst.msk [vmem:[#allocation2 + $0xc] sm:$0xf] %vm503_vm10, %v501_v6  ;;  %841 = vrot.lane.b32.xlu0 %v824_v60, %s2467_s11  ;;  %848 = vrot.lane.b32.xlu1 %v846_v5, %s2467_s11  ;;  %vm586_vm10 = vcmask 536072  }
  0xe1   : > { %v511_v8 = vpop.permute.xlu1 %510  ;;  %v506_v9 = vpop.permute.xlu0 %505 }
  0xe2   : > { %509 = vst.msk [vmem:[#allocation2 + $0xc] sm:$0xf] %vm508_vm11, %v506_v9  ;;  %vm593_vm11 = vcmask 806424  }
  0xe3   : > { %514 = vst.msk [vmem:[#allocation2 + $0xc] sm:$0xf] %vm513_vm12, %v511_v8  ;;  %836 = vrot.lane.b32.xlu1 %v824_v60, %s2496_s6  ;;  %763 = vrot.lane.b32.xlu0 %v2708_v40, %s2492_s26  ;;  %vm598_vm12 = vcmask 544272  }
  0xe5   : > { %v523_v10 = vpop.permute.xlu1 %522  ;;  %v518_v11 = vpop.permute.xlu0 %517 }
  0xe6   : > { %521 = vst.msk [vmem:[#allocation2 + $0xc] sm:$0xf] %vm520_vm13, %v518_v11  ;;  %vm613_vm13 = vcmask 1044264  }
  0xe7   : > { %526 = vst.msk [vmem:[#allocation2 + $0xc] sm:$0xf] %vm525_vm14, %v523_v10  ;;  %853 = vrot.lane.b32.xlu0 %v846_v5, %s2497_s24  ;;  %858 = vrot.lane.b32.xlu1 %v846_v5, %s2465_s9  ;;  %vm614_vm14 = vcmask 39940  }
  0xe9   : > { %v535_v14 = vpop.permute.xlu1 %534  ;;  %v528_v15 = vpop.permute.xlu0 %527 }
  0xea   : > { %531 = vst.msk [vmem:[#allocation2 + $0xc] sm:$0xf] %vm530_vm15, %v528_v15  ;;  %vm610_vm15 = vcmask 564224  }
  0xeb   : > { %538 = vst.msk [vmem:[#allocation2 + $0xc] sm:$0xf] %vm537_vm0, %v535_v14  ;;  %865 = vrot.lane.b32.xlu0 %v863_v12, %s2465_s9  ;;  %882 = vrot.lane.b32.xlu1 %v880_v13, %s2466_s10  ;;  %vm603_vm0 = vcmask 814872   ;;  %s2500_s9 = smov 60   ;;  %s3237_s10 = smov 59  }
  0xed   : > { %v540_v16 = vpop.permute.xlu1 %539  ;;  %v552_v17 = vpop.permute.xlu0 %551 }
  0xee   : > { %543 = vst.msk [vmem:[#allocation2 + $0xc] sm:$0xf] %vm542_vm1, %v540_v16  ;;  %v553_v18 = vrot.slane %v552_v17, 4  ;;  %vm615_vm1 = vmor %vm614_vm14, %vm613_vm13  ;;  %vm683_vm13 = vcmask 629760   ;;  %vm676_vm14 = vcmask 880472  }
  0xef   : > { %870 = vrot.lane.b32.xlu0 %v863_v12, %s2467_s11  ;;  %875 = vrot.lane.b32.xlu1 %v863_v12, %s2464_s8  ;;  %s2499_s8 = smov 58   ;;  %s2501_s11 = smov 92  }
  0xf0   : > { %v555_v21 = vsel %vm554_vm4, %v553_v18, %v552_v17  ;;  %vm637_vm4 = vcmask 52272  }
  0xf1   : > { %v567_v19 = vpop.permute.xlu1 %566  ;;  %v545_v20 = vpop.permute.xlu0 %544 }
  0xf2   : > { %548 = vst.msk [vmem:[#allocation2 + $0xc] sm:$0xf] %vm547_vm5, %v545_v20  ;;  %vm642_vm5 = vcmask 322872  }
  0xf3   : > { %560 = vst.msk [vmem:[#allocation2 + $0xc] sm:$0xff] %vm559_vm6, %v555_v21  ;;  %897 = vrot.lane.b32.xlu0 %v880_v13, %s2468_s27  ;;  %892 = vrot.lane.b32.xlu1 %v880_v13, %s3236_s7  ;;  %vm649_vm6 = vcmask 593224   ;;  %s2502_s27 = smov 126   ;;  %s2233_s7 = smul.u32 1152, %s2453_s18 }
  0xf4   : > { %570 = vst.msk [vmem:[#allocation2 + $0x10] sm:$0xf] %vm569_vm7, %v567_v19  ;;  %vm654_vm7 = vcmask 331072  }
  0xf5   : > { %v579_v22 = vpop.permute.xlu1 %578  ;;  %v574_v23 = vpop.permute.xlu0 %573 }
  0xf6   : > { %577 = vst.msk [vmem:[#allocation2 + $0x10] sm:$0xf] %vm576_vm8, %v574_v23  ;;  %vm659_vm8 = vcmask 601672  }
  0xf7   : > { %582 = vst.msk [vmem:[#allocation2 + $0x10] sm:$0xf] %vm581_vm9, %v579_v22  ;;  %vm666_vm9 = vcmask 872024  }
  0xf9   : > { %v591_v24 = vpop.permute.xlu1 %590  ;;  %v584_v25 = vpop.permute.xlu0 %583 }
  0xfa   : > { %587 = vst.msk [vmem:[#allocation2 + $0x10] sm:$0xf] %vm586_vm10, %v584_v25  ;;  %vm686_vm10 = vcmask 1044328  }
  0xfb   : > { %594 = vst.msk [vmem:[#allocation2 + $0x10] sm:$0xf] %vm593_vm11, %v591_v24  ;;  %vm687_vm11 = vcmask 105476  }
  0xfd   : > { %v596_v26 = vpop.permute.xlu1 %595  ;;  %v608_v27 = vpop.permute.xlu0 %607 }
  0xfe   : > { %599 = vst.msk [vmem:[#allocation2 + $0x10] sm:$0xf] %vm598_vm12, %v596_v26  ;;  %v609_v28 = vrot.slane %v608_v27, 4  ;;  %vm671_vm12 = vcmask 609872  }
 0x100   : > { %v611_v31 = vsel %vm610_vm15, %v609_v28, %v608_v27  ;;  %vm688_vm15 = vmor %vm687_vm11, %vm686_vm10  ;;  %vm760_vm10 = vcmask 171012   ;;  %vm756_vm11 = vcmask 695296  }
 0x101   : > { %v623_v29 = vpop.permute.xlu1 %622  ;;  %v601_v30 = vpop.permute.xlu0 %600 }
 0x102   : > { %604 = vst.msk [vmem:[#allocation2 + $0x10] sm:$0xf] %vm603_vm0, %v601_v30  ;;  %vm698_vm0 = vcmask 109672  }
 0x103   : > { %616 = vst.msk [vmem:[#allocation2 + $0x10] sm:$0xff] %vm615_vm1, %v611_v31  ;;  %vm705_vm1 = vcmask 380024  }
 0x104   : > { %626 = vst.msk [vmem:[#allocation2 + $0x14] sm:$0xf] %vm625_vm2, %v623_v29  ;;  %vm710_vm2 = vcmask 117872  }
 0x105   : > { %v635_v32 = vpop.permute.xlu1 %634  ;;  %v630_v33 = vpop.permute.xlu0 %629 }
 0x106   : > { %633 = vst.msk [vmem:[#allocation2 + $0x14] sm:$0xf] %vm632_vm3, %v630_v33  ;;  %vm715_vm3 = vcmask 388472  }
 0x107   : > { %638 = vst.msk [vmem:[#allocation2 + $0x14] sm:$0xf] %vm637_vm4, %v635_v32  ;;  %vm722_vm4 = vcmask 658824  }
 0x109   : > { %v647_v34 = vpop.permute.xlu1 %646  ;;  %v640_v35 = vpop.permute.xlu0 %639 }
 0x10a   : > { %643 = vst.msk [vmem:[#allocation2 + $0x14] sm:$0xf] %vm642_vm5, %v640_v35  ;;  %vm727_vm5 = vcmask 396672  }
 0x10b   : > { %650 = vst.msk [vmem:[#allocation2 + $0x14] sm:$0xf] %vm649_vm6, %v647_v34  ;;  %vm732_vm6 = vcmask 667272  }
 0x10d   : > { %v657_v36 = vpop.permute.xlu1 %656  ;;  %v652_v37 = vpop.permute.xlu0 %651 }
 0x10e   : > { %655 = vst.msk [vmem:[#allocation2 + $0x14] sm:$0xf] %vm654_vm7, %v652_v37  ;;  %vm739_vm7 = vcmask 937624  }
 0x10f   : > { %660 = vst.msk [vmem:[#allocation2 + $0x14] sm:$0xf] %vm659_vm8, %v657_v36  ;;  %vm744_vm8 = vcmask 675472  }
 0x111   : > { %v681_v38 = vpop.permute.xlu1 %680  ;;  %v664_v39 = vpop.permute.xlu0 %663 }
 0x112   : > { %667 = vst.msk [vmem:[#allocation2 + $0x14] sm:$0xf] %vm666_vm9, %v664_v39  ;;  %v682_v40 = vrot.slane %v681_v38, 4  ;;  %vm759_vm9 = vcmask 1044392  }
 0x114   : > { %v684_v43 = vsel %vm683_vm13, %v682_v40, %v681_v38  ;;  %vm761_vm13 = vmor %vm760_vm10, %vm759_vm9  ;;  %vm812_vm9 = vcmask 1003224   ;;  %vm829_vm10 = vcmask 760832  }
 0x115   : > { %v674_v41 = vpop.permute.xlu1 %673  ;;  %v669_v42 = vpop.permute.xlu0 %668 }
 0x116   : > { %672 = vst.msk [vmem:[#allocation2 + $0x14] sm:$0xf] %vm671_vm12, %v669_v42  ;;  %vm749_vm12 = vcmask 946072  }
 0x117   : > { %677 = vst.msk [vmem:[#allocation2 + $0x14] sm:$0xf] %vm676_vm14, %v674_v41  ;;  %vm771_vm14 = vcmask 175272  }
 0x118   : > { %689 = vst.msk [vmem:[#allocation2 + $0x14] sm:$0xff] %vm688_vm15, %v684_v43  ;;  %vm418_vm15 = vcmask 905072  }
 0x119   : > { %v703_v44 = vpop.permute.xlu1 %702  ;;  %v696_v45 = vpop.permute.xlu0 %695 }
 0x11a   : > { %699 = vst.msk [vmem:[#allocation2 + $0x18] sm:$0xf] %vm698_vm0, %v696_v45  ;;  %vm345_vm0 = vcmask 839472  }
 0x11b   : > { %706 = vst.msk [vmem:[#allocation2 + $0x18] sm:$0xf] %vm705_vm1, %v703_v44  ;;  %vm778_vm1 = vcmask 445624  }
 0x11d   : > { %v713_v46 = vpop.permute.xlu1 %712  ;;  %v708_v47 = vpop.permute.xlu0 %707 }
 0x11e   : > { %711 = vst.msk [vmem:[#allocation2 + $0x18] sm:$0xf] %vm710_vm2, %v708_v47  ;;  %vm783_vm2 = vcmask 183472  }
 0x11f   : > { %716 = vst.msk [vmem:[#allocation2 + $0x18] sm:$0xf] %vm715_vm3, %v713_v46  ;;  %vm564_vm3 = vcmask 1036272  }
 0x121   : > { %v725_v48 = vpop.permute.xlu1 %724  ;;  %v720_v49 = vpop.permute.xlu0 %719 }
 0x122   : > { %723 = vst.msk [vmem:[#allocation2 + $0x18] sm:$0xf] %vm722_vm4, %v720_v49  ;;  %vm491_vm4 = vcmask 970672  }
 0x123   : > { %728 = vst.msk [vmem:[#allocation2 + $0x18] sm:$0xf] %vm727_vm5, %v725_v48  ;;  %vm788_vm5 = vcmask 454072  }
 0x125   : > { %v737_v50 = vpop.permute.xlu1 %736  ;;  %v730_v51 = vpop.permute.xlu0 %729 }
 0x126   : > { %733 = vst.msk [vmem:[#allocation2 + $0x18] sm:$0xf] %vm732_vm6, %v730_v51  ;;  %vm795_vm6 = vcmask 724424  }
 0x127   : > { %740 = vst.msk [vmem:[#allocation2 + $0x18] sm:$0xf] %vm739_vm7, %v737_v50  ;;  %vm800_vm7 = vcmask 462272  }
 0x129   : > { %v742_v53 = vpop.permute.xlu1 %741  ;;  %v754_v54 = vpop.permute.xlu0 %753 }
 0x12a   : > { %745 = vst.msk [vmem:[#allocation2 + $0x18] sm:$0xf] %vm744_vm8, %v742_v53  ;;  %v755_v55 = vrot.slane %v754_v54, 4  ;;  %vm805_vm8 = vcmask 732872  }
 0x12c   : > { %v757_v58 = vsel %vm756_vm11, %v755_v55, %v754_v54  ;;  %vm832_vm11 = vcmask 1044456  }
 0x12d   : > { %v769_v56 = vpop.permute.xlu1 %768  ;;  %v747_v57 = vpop.permute.xlu0 %746 }
 0x12e   : > { %750 = vst.msk [vmem:[#allocation2 + $0x18] sm:$0xf] %vm749_vm12, %v747_v57  ;;  %vm833_vm12 = vcmask 236548  }
 0x12f   : > { %762 = vst.msk [vmem:[#allocation2 + $0x18] sm:$0xff] %vm761_vm13, %v757_v58  ;;  %vm817_vm13 = vcmask 741072  }
 0x130   : > { %772 = vst.msk [vmem:[#allocation2 + $0x1c] sm:$0xf] %vm771_vm14, %v769_v56  ;;  %vm822_vm14 = vcmask 1011672  }
 0x131   : > { %v416_v59 = vpop.permute.xlu1 %415  ;;  %v343_v60 = vpop.permute.xlu0 %342 }
 0x132   : > { %419 = vst.msk [vmem:[#allocation2 + $0x4] sm:$0xf] %vm418_vm15, %v416_v59  ;;  %vm834_vm15 = vmor %vm833_vm12, %vm832_vm11  ;;  %vm888_vm11 = vcmask 1044248   ;;  %vm889_vm12 = vcmask 23556  }
 0x133   : > { %346 = vst.msk [vmem:[#allocation2] sm:$0xf] %vm345_vm0, %v343_v60  ;;  %vm693_vm0 = vcmask 888672  }
 0x135   : > { %v781_v61 = vpop.permute.xlu1 %780  ;;  %v776_v62 = vpop.permute.xlu0 %775 }
 0x136   : > { %779 = vst.msk [vmem:[#allocation2 + $0x1c] sm:$0xf] %vm778_vm1, %v776_v62  ;;  %vm620_vm1 = vcmask 823072  }
 0x137   : > { %784 = vst.msk [vmem:[#allocation2 + $0x1c] sm:$0xf] %vm783_vm2, %v781_v61  ;;  %vm844_vm2 = vcmask 240872  }
 0x139   : > { %v562_v0 = vpop.permute.xlu1 %561  ;;  %v489_v1 = vpop.permute.xlu0 %488 }
 0x13a   : > { %v2754_v63 = vld [vmem:[#allocation2] sm:$0xff]  ;;  %565 = vst.msk [vmem:[#allocation2 + $0xc] sm:$0xf] %vm564_vm3, %v562_v0  ;;  %vm851_vm3 = vcmask 511224  }
 0x13b   : > { %921 = vst [vmem:[#allocation3] sm:$0xf] %v2754_v63  ;;  %492 = vst.msk [vmem:[#allocation2 + $0x8] sm:$0xf] %vm491_vm4, %v489_v1  ;;  %v2759_v2 = vcombine.high %v2754_v63, %v2754_v63  ;;  %v2789_v16 = vcombine.low %v2754_v63, %v2754_v63  ;;  %vm839_vm4 = vcmask 1019872  }
 0x13d   : > { %1372 = vrot.lane.b32.xlu0 %v2759_v2, %s2499_s8  ;;  %922 = vst [vmem:[#allocation3 + $0x8] sm:$0xf] %v2759_v2  ;;  %v786_v3 = vpop.permute.xlu0 %785  ;;  %v793_v4 = vpop.permute.xlu1 %792 }
 0x13e   : > { %789 = vst.msk [vmem:[#allocation2 + $0x1c] sm:$0xf] %vm788_vm5, %v786_v3  ;;  %vm766_vm5 = vcmask 954272  }
 0x13f   : > { %796 = vst.msk [vmem:[#allocation2 + $0x1c] sm:$0xf] %vm795_vm6, %v793_v4  ;;  %vm856_vm6 = vcmask 249072  }
 0x141   : > { %1370 = vrot.lane.b32.xlu0 %v2754_v63, %s2499_s8  ;;  %v798_v6 = vpop.permute.xlu0 %797  ;;  %v803_v7 = vpop.permute.xlu1 %802 }
 0x142   : > { %v2766_v5 = vld [vmem:[#allocation2 + $0x8] sm:$0xff]  ;;  %801 = vst.msk [vmem:[#allocation2 + $0x1c] sm:$0xf] %vm800_vm7, %v798_v6  ;;  %vm861_vm7 = vcmask 519672  }
 0x143   : > { %923 = vst [vmem:[#allocation3 + $0x10] sm:$0xf] %v2766_v5  ;;  %1374 = vrot.lane.b32.xlu1 %v2766_v5, %s2499_s8  ;;  %v2773_v8 = vcombine.high %v2766_v5, %v2766_v5  ;;  %806 = vst.msk [vmem:[#allocation2 + $0x1c] sm:$0xf] %vm805_vm8, %v803_v7  ;;  %v2782_v11 = vcombine.low %v2766_v5, %v2766_v5  ;;  %vm868_vm8 = vcmask 790024  }
 0x145   : > { %1248 = vrot.lane.b32.xlu0 %v2766_v5, %s2500_s9  ;;  %924 = vst [vmem:[#allocation3 + $0x18] sm:$0xf] %v2773_v8  ;;  %v810_v9 = vpop.permute.xlu0 %809  ;;  %v827_v10 = vpop.permute.xlu1 %826 }
 0x146   : > { %813 = vst.msk [vmem:[#allocation2 + $0x1c] sm:$0xf] %vm812_vm9, %v810_v9  ;;  %v828_v12 = vrot.slane %v827_v10, 4  ;;  %vm885_vm9 = vcmask 285696  }
 0x147   : > { %1246 = vrot.lane.b32.xlu1 %v2759_v2, %s2500_s9 }
 0x148   : > { %v830_v13 = vsel %vm829_vm10, %v828_v12, %v827_v10 }
 0x149   : > { %1311 = vrot.lane.b32.xlu0 %v2782_v11, %s3237_s10  ;;  %v815_v14 = vpop.permute.xlu0 %814  ;;  %v820_v15 = vpop.permute.xlu1 %819 }
 0x14a   : > { %818 = vst.msk [vmem:[#allocation2 + $0x1c] sm:$0xf] %vm817_vm13, %v815_v14  ;;  %vm873_vm13 = vcmask 527872  }
 0x14b   : > { %1309 = vrot.lane.b32.xlu1 %v2754_v63, %s3237_s10  ;;  %823 = vst.msk [vmem:[#allocation2 + $0x1c] sm:$0xf] %vm822_vm14, %v820_v15  ;;  %vm878_vm14 = vcmask 798472  }
 0x14c   : > { %835 = vst.msk [vmem:[#allocation2 + $0x1c] sm:$0xff] %vm834_vm15, %v830_v13  ;;  %vm890_vm15 = vmor %vm889_vm12, %vm888_vm11  ;;  %vm1084_vm11 = vcmask 769024   ;;  %vm964_vm12 = vcmask 1039360  }
 0x14d   : > { %1307 = vrot.lane.b32.xlu0 %v2789_v16, %s3237_s10  ;;  %v691_v17 = vpop.permute.xlu1 %690  ;;  %v618_v18 = vpop.permute.xlu0 %617 }
 0x14e   : > { %694 = vst.msk [vmem:[#allocation2 + $0x14] sm:$0xf] %vm693_vm0, %v691_v17  ;;  %vm900_vm0 = vcmask 27672  }
 0x14f   : > { %1244 = vrot.lane.b32.xlu1 %v2754_v63, %s2500_s9  ;;  %621 = vst.msk [vmem:[#allocation2 + $0x10] sm:$0xf] %vm620_vm1, %v618_v18  ;;  %vm895_vm1 = vcmask 806672  }
 0x151   : > { %1129 = vrot.lane.b32.xlu0 %v2766_v5, %s2497_s24  ;;  %v842_v19 = vpop.permute.xlu0 %841  ;;  %v849_v20 = vpop.permute.xlu1 %848 }
 0x152   : > { %845 = vst.msk [vmem:[#allocation2 + $0x20] sm:$0xf] %vm844_vm2, %v842_v19  ;;  %vm902_vm2 = vcmask 1043488  }
 0x153   : > { %1127 = vrot.lane.b32.xlu1 %v2759_v2, %s2497_s24  ;;  %852 = vst.msk [vmem:[#allocation2 + $0x20] sm:$0xf] %vm851_vm3, %v849_v20  ;;  %vm929_vm3 = vcmask 519168  }
 0x155   : > { %1188 = vrot.lane.b32.xlu0 %v2782_v11, %s2501_s11  ;;  %v837_v22 = vpop.permute.xlu1 %836  ;;  %v764_v23 = vpop.permute.xlu0 %763 }
 0x156   : > { %v2803_v21 = vld [vmem:[#allocation2 + $0x10] sm:$0xff]  ;;  %840 = vst.msk [vmem:[#allocation2 + $0x1c] sm:$0xf] %vm839_vm4, %v837_v22  ;;  %vm1390_vm4 = vcmask 474112  }
 0x157   : > { %1186 = vrot.lane.b32.xlu1 %v2754_v63, %s2501_s11  ;;  %925 = vst [vmem:[#allocation3 + $0x20] sm:$0xf] %v2803_v21  ;;  %v2810_v24 = vcombine.high %v2803_v21, %v2803_v21  ;;  %767 = vst.msk [vmem:[#allocation2 + $0x18] sm:$0xf] %vm766_vm5, %v764_v23  ;;  %v1304_v38 = vcombine.low %v2803_v21, %v2803_v21  ;;  %vm1264_vm5 = vcmask 490496  }
 0x159   : > { %1184 = vrot.lane.b32.xlu0 %v2789_v16, %s2501_s11  ;;  %926 = vst [vmem:[#allocation3 + $0x28] sm:$0xf] %v2810_v24  ;;  %v854_v25 = vpop.permute.xlu0 %853  ;;  %v859_v26 = vpop.permute.xlu1 %858 }
 0x15a   : > { %857 = vst.msk [vmem:[#allocation2 + $0x20] sm:$0xf] %vm856_vm6, %v854_v25  ;;  %vm1327_vm6 = vcmask 482304  }
 0x15b   : > { %1125 = vrot.lane.b32.xlu1 %v2754_v63, %s2497_s24  ;;  %862 = vst.msk [vmem:[#allocation2 + $0x20] sm:$0xf] %vm861_vm7, %v859_v26  ;;  %vm1468_vm7 = vcmask 1043456  }
 0x15d   : > { %1010 = vrot.lane.b32.xlu0 %v2766_v5, %s2502_s27  ;;  %v866_v28 = vpop.permute.xlu0 %865  ;;  %v883_v29 = vpop.permute.xlu1 %882 }
 0x15e   : > { %v2819_v27 = vld [vmem:[#allocation2 + $0x18] sm:$0xff]  ;;  %869 = vst.msk [vmem:[#allocation2 + $0x20] sm:$0xf] %vm868_vm8, %v866_v28  ;;  %v884_v31 = vrot.slane %v883_v29, 4  ;;  %vm1202_vm8 = vcmask 752640  }
 0x15f   : > { %1008 = vrot.lane.b32.xlu1 %v2759_v2, %s2502_s27  ;;  %927 = vst [vmem:[#allocation3 + $0x30] sm:$0xf] %v2819_v27  ;;  %v2826_v30 = vcombine.high %v2819_v27, %v2819_v27  ;;  %v1305_v39 = vcombine.low %v2819_v27, %v2819_v27 }
 0x160   : > { %v886_v32 = vsel %vm885_vm9, %v884_v31, %v883_v29  ;;  %vm1024_vm9 = vcmask 1031168  }
 0x161   : > { %1070 = vrot.lane.b32.xlu0 %v2782_v11, %s2503_s12  ;;  %928 = vst [vmem:[#allocation3 + $0x38] sm:$0xf] %v2826_v30  ;;  %v871_v33 = vpop.permute.xlu0 %870  ;;  %v876_v34 = vpop.permute.xlu1 %875 }
 0x162   : > { %874 = vst.msk [vmem:[#allocation2 + $0x20] sm:$0xf] %vm873_vm13, %v871_v33  ;;  %vm1464_vm13 = vcmask 293888  }
 0x163   : > { %1068 = vrot.lane.b32.xlu1 %v2754_v63, %s2503_s12  ;;  %879 = vst.msk [vmem:[#allocation2 + $0x20] sm:$0xf] %vm878_vm14, %v876_v34  ;;  %vm2505_vm14 = vmmov 0  }
 0x164   : > { %891 = vst.msk [vmem:[#allocation2 + $0x20] sm:$0xff] %vm890_vm15, %v886_v32  ;;  %vm990_vm15 = vcmask 523268  }
 0x165   : > { %1066 = vrot.lane.b32.xlu0 %v2789_v16, %s2503_s12  ;;  %v898_v35 = vpop.permute.xlu0 %897  ;;  %v893_v36 = vpop.permute.xlu1 %892 }
 0x166   : > { %901 = vst.msk [vmem:[#allocation2 + $0x24] sm:$0xf] %vm900_vm0, %v898_v35 }
 0x167   : > { %1006 = vrot.lane.b32.xlu1 %v2754_v63, %s2502_s27  ;;  %896 = vst.msk [vmem:[#allocation2 + $0x20] sm:$0xf] %vm895_vm1, %v893_v36 }
 0x168   : > { %903 = vst.msk [vmem:[#allocation2 + $0x24] sm:$0xf] %vm902_vm2, %v2498_v52 }
 0x169   : > { %1378 = vrot.lane.b32.xlu0 %v2803_v21, %s2499_s8 }
 0x16b   : > { %1376 = vrot.lane.b32.xlu1 %v2773_v8, %s2499_s8 }
 0x16d   : > { %950 = vrot.lane.b32.xlu0 %v2782_v11, %s2504_s13 }
 0x16e   : > { %v908_v37 = vld [vmem:[#allocation2 + $0x20] sm:$0xf] }
 0x16f   : > { %948 = vrot.lane.b32.xlu1 %v2754_v63, %s2504_s13  ;;  %930 = vst.msk [vmem:[#allocation3 + $0x40] sm:$0xf] %vm929_vm3, %v908_v37  ;;  %v2904_v40 = vld [vmem:[#allocation2 + $0x20] sm:$0xff] }
 0x170   : > { %v1306_v48 = vcombine.low %v2904_v40, %v2904_v40  ;;  %v1115_v54 = vld [vmem:[#allocation2 + $0x20] sm:$0xf]  ;;  %v1369_v56 = vcombine.high %v2904_v40, %v2904_v40 }
 0x171   : > { %1250 = vrot.lane.b32.xlu0 %v2773_v8, %s2500_s9  ;;  %v2348_v61 = vld [vmem:[#allocation2 + $0x20] ss:$0 sps:$4 sm:$0xff]  }
 0x172   : > { %v996_v0 = vld [vmem:[#allocation2 + $0x20] sm:$0xf] }
 0x173   : > { %946 = vrot.lane.b32.xlu1 %v2789_v16, %s2504_s13  ;;  %v2350_v14 = vld [vmem:[#allocation2 + $0x20] ss:$0 sps:$4 sm:$0xff]  }
 0x175   : > { %1313 = vrot.lane.b32.xlu0 %v2766_v5, %s3237_s10 }
 0x177   : > { %1252 = vrot.lane.b32.xlu1 %v2803_v21, %s2500_s9 }
 0x179   : > { %1380 = vrot.lane.b32.xlu0 %v2810_v24, %s2499_s8 }
 0x17b   : > { %1315 = vrot.lane.b32.xlu1 %v1304_v38, %s3237_s10 }
 0x17d   : > { %1131 = vrot.lane.b32.xlu0 %v2773_v8, %s2497_s24 }
 0x17f   : > { %1382 = vrot.lane.b32.xlu1 %v2819_v27, %s2499_s8 }
 0x181   : > { %1190 = vrot.lane.b32.xlu0 %v2766_v5, %s2501_s11 }
 0x183   : > { %1133 = vrot.lane.b32.xlu1 %v2803_v21, %s2497_s24 }
 0x185   : > { %1254 = vrot.lane.b32.xlu0 %v2810_v24, %s2500_s9 }
 0x187   : > { %1192 = vrot.lane.b32.xlu1 %v1304_v38, %s2501_s11 }
 0x189   : > { %1317 = vrot.lane.b32.xlu0 %v2803_v21, %s3237_s10 }
 0x18b   : > { %1256 = vrot.lane.b32.xlu1 %v2819_v27, %s2500_s9 }
 0x18d   : > { %1012 = vrot.lane.b32.xlu0 %v2773_v8, %s2502_s27 }
 0x18f   : > { %1319 = vrot.lane.b32.xlu1 %v1305_v39, %s3237_s10 }
 0x191   : > { %1072 = vrot.lane.b32.xlu0 %v2766_v5, %s2503_s12 }
 0x193   : > { %1014 = vrot.lane.b32.xlu1 %v2803_v21, %s2502_s27 }
 0x195   : > { %1135 = vrot.lane.b32.xlu0 %v2810_v24, %s2497_s24 }
 0x197   : > { %1074 = vrot.lane.b32.xlu1 %v1304_v38, %s2503_s12 }
 0x199   : > { %1194 = vrot.lane.b32.xlu0 %v2803_v21, %s2501_s11 }
 0x19b   : > { %1137 = vrot.lane.b32.xlu1 %v2819_v27, %s2497_s24 }
 0x19d   : > { %952 = vrot.lane.b32.xlu0 %v2766_v5, %s2504_s13  ;;  %v2349_v5 = vld [vmem:[#allocation2 + $0x20] ss:$0 sps:$4 sm:$0xff]  }
 0x19f   : > { %1196 = vrot.lane.b32.xlu1 %v1305_v39, %s2501_s11 }
 0x1a1   : > { %1016 = vrot.lane.b32.xlu0 %v2810_v24, %s2502_s27 }
 0x1a3   : > { %954 = vrot.lane.b32.xlu1 %v1304_v38, %s2504_s13 }
 0x1a5   : > { %1076 = vrot.lane.b32.xlu0 %v2803_v21, %s2503_s12 }
 0x1a7   : > { %1018 = vrot.lane.b32.xlu1 %v2819_v27, %s2502_s27 }
 0x1a9   : > { %1384 = vrot.lane.b32.xlu0 %v2826_v30, %s2499_s8 }
 0x1ab   : > { %1078 = vrot.lane.b32.xlu1 %v1305_v39, %s2503_s12 }
 0x1ad   : > { %956 = vrot.lane.b32.xlu0 %v2803_v21, %s2504_s13 }
 0x1af   : > { %1386 = vrot.lane.b32.xlu1 %v2904_v40, %s2499_s8  ;;  %v1373_v41 = vpop.permute.xlu0 %1372 }
 0x1b1   : > { %1258 = vrot.lane.b32.xlu0 %v2826_v30, %s2500_s9 }
 0x1b3   : > { %958 = vrot.lane.b32.xlu1 %v1305_v39, %s2504_s13  ;;  %v1371_v42 = vpop.permute.xlu0 %1370 }
 0x1b4   : > { %v1391_v43 = vsel %vm1390_vm4, %v1371_v42, %v1373_v41 }
 0x1b5   : > { %1409 = vst [vmem:[#allocation3 + $0x120] sm:$0xf] %v1391_v43  ;;  %v2914_v44 = vpop.permute.xlu1 %1374  ;;  %1321 = vrot.lane.b32.xlu0 %v2819_v27, %s3237_s10 }
 0x1b6   : > { %v1392_v45 = vsel %vm1390_vm4, %v1373_v41, %v2914_v44 }
 0x1b7   : > { %1410 = vst [vmem:[#allocation3 + $0x128] sm:$0xf] %v1392_v45  ;;  %1260 = vrot.lane.b32.xlu1 %v2904_v40, %s2500_s9  ;;  %v2922_v46 = vpop.permute.xlu0 %1248 }
 0x1b9   : > { %v1247_v47 = vpop.permute.xlu1 %1246  ;;  %1139 = vrot.lane.b32.xlu0 %v2826_v30, %s2497_s24 }
 0x1ba   : > { %v1266_v49 = vsel %vm1264_vm5, %v1247_v47, %v2922_v46 }
 0x1bb   : > { %1284 = vst [vmem:[#allocation3 + $0xe0] sm:$0xf] %v1266_v49  ;;  %1323 = vrot.lane.b32.xlu1 %v1306_v48, %s3237_s10  ;;  %v2931_v50 = vpop.permute.xlu0 %1311  ;;  %v2997_v49 = vld [vmem:[%s3224_s1] sm:$0xff] }
 0x1bc   : > { %v1455_v58 = vld [vmem:[#allocation3 + $0x120] sm:$0xf] }
 0x1bd   : > { %v1310_v51 = vpop.permute.xlu1 %1309  ;;  %1198 = vrot.lane.b32.xlu0 %v2819_v27, %s2501_s11 }
 0x1be   : > { %v1329_v53 = vsel %vm1327_vm6, %v1310_v51, %v2931_v50  ;;  %v1456_v55 = vld [vmem:[#allocation3 + $0x128] sm:$0xf] }
 0x1bf   : > { %1347 = vst [vmem:[#allocation3 + $0xe0] sm:$0xf0] %v1329_v53  ;;  %1141 = vrot.lane.b32.xlu1 %v1115_v54, %s2497_s24  ;;  %2186 = vmatprep.subr.msk.mxu0 %vm1468_vm7, %v1456_v55  ;;  %v1308_v57 = vpop.permute.xlu0 %1307  ;;  %s2232_s24 = smul.u32 72, %s2619_s25 }
 0x1c0   : > { %v1328_v59 = vsel %vm1327_vm6, %v1308_v57, %v1310_v51  ;;  %2187 = vmatpush1.msk.msra.mxu0 %vm1468_vm7, %v1455_v58 }
 0x1c1   : > { %1346 = vst [vmem:[#allocation3 + $0xd8] sm:$0xf0] %v1328_v59  ;;  %v1245_v60 = vpop.permute.xlu1 %1244  ;;  %1388 = vrot.lane.b32.xlu0 %v1369_v56, %s2499_s8  ;;  %s266_s8 = scalar_lea.vmem [#allocation7], %s2232_s24 }
 0x1c2   : > { %v1265_v62 = vsel %vm1264_vm5, %v1245_v60, %v1247_v47 }
 0x1c3   : > { %1283 = vst [vmem:[#allocation3 + $0xd8] sm:$0xf] %v1265_v62  ;;  %1200 = vrot.lane.b32.xlu1 %v2348_v61, %s2501_s11  ;;  %v2946_v63 = vpop.permute.xlu0 %1129  ;;  %s3174_s11 = scalar_lea.hbm %s3227_s4, %s2233_s7 }
 0x1c5   : > { %v1128_v1 = vpop.permute.xlu1 %1127  ;;  %1022 = vrot.lane.b32.xlu0 %v996_v0, %s2502_s27 }
 0x1c6   : > { %v1144_v2 = vsel %vm829_vm10, %v1128_v1, %v2946_v63  ;;  %v1447_v3 = vld [vmem:[#allocation3 + $0xe0] sm:$0xff] }
 0x1c7   : > { %1161 = vst [vmem:[#allocation3 + $0x98] sm:$0xf] %v1144_v2  ;;  %1020 = vrot.lane.b32.xlu1 %v2826_v30, %s2502_s27  ;;  %1520 = vmatprep.subr.mxu0 %v1447_v3  ;;  %v2953_v4 = vpop.permute.xlu0 %1188  ;;  %s2032_s27 = scalar_lea.sflag [#allocation6], %s2619_s25 }
 0x1c9   : > { %v1187_v6 = vpop.permute.xlu1 %1186  ;;  %1082 = vrot.lane.b32.xlu0 %v2349_v5, %s2503_s12 }
 0x1ca   : > { %v1204_v7 = vsel %vm1202_vm8, %v1187_v6, %v2953_v4  ;;  %v1446_v8 = vld [vmem:[#allocation3 + $0xd8] sm:$0xff] }
 0x1cb   : > { %1221 = vst [vmem:[#allocation3 + $0x98] sm:$0xf0] %v1204_v7  ;;  %1080 = vrot.lane.b32.xlu1 %v2819_v27, %s2503_s12  ;;  %1521 = vmatpush1.msra.mxu0 %v1446_v8  ;;  %v1185_v9 = vpop.permute.xlu0 %1184 }
 0x1cc   : > { %v1203_v10 = vsel %vm1202_vm8, %v1185_v9, %v1187_v6 }
 0x1cd   : > { %1220 = vst [vmem:[#allocation3 + $0x90] sm:$0xf0] %v1203_v10  ;;  %v1126_v11 = vpop.permute.xlu1 %1125  ;;  %1325 = vrot.lane.b32.xlu0 %v2904_v40, %s3237_s10 }
 0x1ce   : > { %v1143_v12 = vsel %vm829_vm10, %v1126_v11, %v1128_v1 }
 0x1cf   : > { %1160 = vst [vmem:[#allocation3 + $0x90] sm:$0xf] %v1143_v12  ;;  %1262 = vrot.lane.b32.xlu1 %v1369_v56, %s2500_s9  ;;  %v2965_v13 = vpop.permute.xlu0 %1010  ;;  %s2048_s9 = sshll.u32 %s266_s8, 4  ;;  %s3176_s9 = int_to_ptr.vmem [resolvable:$true] %s2048_s9 }
 0x1d0   : > { %s2381_s12 = scalar_lea.vmem %s3176_s9, 1152 }
 0x1d1   : > { %v1009_v15 = vpop.permute.xlu1 %1008  ;;  %962 = vrot.lane.b32.xlu0 %v2350_v14, %s2504_s13  ;;  %p2382_p8 = scmp.ne.s32.totalorder %s3176_s9, %s2381_s12 }
 0x1d2   : > { %v1026_v16 = vsel %vm1024_vm9, %v1009_v15, %v2965_v13  ;;  %v1438_v17 = vld [vmem:[#allocation3 + $0x98] sm:$0xff] }
 0x1d3   : > { %1043 = vst [vmem:[#allocation3 + $0x50] sm:$0xf] %v1026_v16  ;;  %960 = vrot.lane.b32.xlu1 %v2819_v27, %s2504_s13  ;;  %1522 = vmatprep.subr.mxu0 %v1438_v17  ;;  %v2972_v18 = vpop.permute.xlu0 %1070  ;;  %p2383_p11 = pnand %p2382_p8, %p2584_p9  ;;  %s2507_s13 = smov [#allocation7]  }
 0x1d4   : > { %s2385_s14 = sshll.u32 %s2507_s13, 4  ;;  %s2386_s14 = int_to_ptr.vmem [resolvable:$false] %s2385_s14 }
 0x1d5   : > { %v1069_v19 = vpop.permute.xlu1 %1068  ;;  %p2384_p12 = pneg %p2383_p11  ;;  %s2387_s26 = scalar_lea.vmem %s2386_s14, 2304 }
 0x1d6   : > { %v1086_v20 = vsel %vm1084_vm11, %v1069_v19, %v2972_v18  ;;  %v1437_v21 = vld [vmem:[#allocation3 + $0x90] sm:$0xff]  ;;  %p2388_p0 = scmp.lt.s32.totalorder %s3176_s9, %s2386_s14  ;;  %p2389_p1 = scmp.lt.s32.totalorder %s2387_s26, %s2381_s12 }
 0x1d7   : > { %1103 = vst [vmem:[#allocation3 + $0x50] sm:$0xf0] %v1086_v20  ;;  %1523 = vmatpush1.msra.mxu0 %v1437_v21  ;;  %v1067_v22 = vpop.permute.xlu0 %1066 }
 0x1d8   : > { %v1085_v23 = vsel %vm1084_vm11, %v1067_v22, %v1069_v19  ;;  %p2390_p2 = por %p2389_p1, %p2388_p0 }
 0x1d9   : > { %1102 = vst [vmem:[#allocation3 + $0x48] sm:$0xf0] %v1085_v23  ;;  %v1007_v24 = vpop.permute.xlu1 %1006 }
 0x1da   : > { %v1025_v25 = vsel %vm1024_vm9, %v1007_v24, %v1009_v15  ;;  %p2391_p3 = pnand %p2390_p2, %p2384_p12 }
 0x1db   : > { %1042 = vst [vmem:[#allocation3 + $0x48] sm:$0xf] %v1025_v25  ;;  %v1379_v26 = vpop.permute.xlu0 %1378 }
 0x1dd   : > { %v1377_v27 = vpop.permute.xlu1 %1376 }
 0x1de   : > { %v1393_v28 = vsel %vm1390_vm4, %v2914_v44, %v1377_v27  ;;  %v1394_v29 = vsel %vm1390_vm4, %v1377_v27, %v1379_v26  ;;  %v1429_v30 = vld [vmem:[#allocation3 + $0x50] sm:$0xff] }
 0x1df   : > { %1411 = vst [vmem:[#allocation3 + $0x130] sm:$0xf] %v1393_v28  ;;  %1412 = vst [vmem:[#allocation3 + $0x138] sm:$0xf] %v1394_v29  ;;  %1524 = vmatprep.subr.mxu0 %v1429_v30  ;;  %v2981_v31 = vpop.permute.xlu0 %950 }
 0x1e1   : > { %v949_v32 = vpop.permute.xlu1 %948 }
 0x1e2   : > { %v966_v33 = vsel %vm964_vm12, %v949_v32, %v2981_v31  ;;  %v1428_v34 = vld [vmem:[#allocation3 + $0x48] sm:$0xff] }
 0x1e3   : > { %983 = vst [vmem:[#allocation3 + $0x8] sm:$0xf0] %v966_v33  ;;  %1525 = vmatpush1.msra.mxu0 %v1428_v34  ;;  %v1251_v35 = vpop.permute.xlu0 %1250 }
 0x1e4   : > { %v1267_v36 = vsel %vm1264_vm5, %v2922_v46, %v1251_v35 }
 0x1e5   : > { %1285 = vst [vmem:[#allocation3 + $0xe8] sm:$0xf] %v1267_v36  ;;  %v947_v37 = vpop.permute.xlu1 %946 }
 0x1e6   : > { %v965_v38 = vsel %vm964_vm12, %v947_v37, %v949_v32  ;;  %v1458_v39 = vld [vmem:[#allocation3 + $0x138] sm:$0xf]  ;;  %v1457_v40 = vld [vmem:[#allocation3 + $0x130] sm:$0xf] }
 0x1e7   : > { %982 = vst [vmem:[#allocation3] sm:$0xf0] %v965_v38  ;;  %2189 = vmatprep.subr.msk.mxu1 %vm1468_vm7, %v1458_v39  ;;  %v1314_v41 = vpop.permute.xlu0 %1313 }
 0x1e8   : > { %v1330_v42 = vsel %vm1327_vm6, %v2931_v50, %v1314_v41  ;;  %2190 = vmatpush1.msk.msra.mxu1 %vm1468_vm7, %v1457_v40 }
 0x1e9   : > { %1348 = vst [vmem:[#allocation3 + $0xe8] sm:$0xf0] %v1330_v42  ;;  %v1253_v43 = vpop.permute.xlu1 %1252 }
 0x1ea   : > { %v1268_v44 = vsel %vm1264_vm5, %v1251_v35, %v1253_v43  ;;  %v1420_v45 = vld [vmem:[#allocation3 + $0x8] sm:$0xff] }
 0x1eb   : > { %1286 = vst [vmem:[#allocation3 + $0xf0] sm:$0xf] %v1268_v44  ;;  %1526 = vmatprep.subr.mxu0 %v1420_v45  ;;  %v1381_v46 = vpop.permute.xlu0 %1380 }
 0x1ec   : > { %v1395_v47 = vsel %vm1390_vm4, %v1379_v26, %v1381_v46 }
 0x1ed   : > { %1413 = vst [vmem:[#allocation3 + $0x140] sm:$0xf] %v1395_v47  ;;  %v1316_v48 = vpop.permute.xlu1 %1315 }
 0x1ee   : > { %v1331_v50 = vsel %vm1327_vm6, %v1314_v41, %v1316_v48  ;;  %v1419_v51 = vld [vmem:[#allocation3] sm:$0xff] }
 0x1ef   : > { %1349 = vst [vmem:[#allocation3 + $0xf0] sm:$0xf0] %v1331_v50  ;;  %1527 = vmatpush1.msra.mxu0 %v1419_v51  ;;  %v1132_v53 = vpop.permute.xlu0 %1131 }
 0x1f0   : > { %v1145_v54 = vsel %vm829_vm10, %v2946_v63, %v1132_v53  ;;  %2188 = vmatmul.mubr.msk.f32.vlgmr.msra.gmra.mxu0 %vm1464_vm13, %v2997_v49  ;;  %v1448_v63 = vld [vmem:[#allocation3 + $0xe8] sm:$0xff] }
 0x1f1   : > { %1162 = vst [vmem:[#allocation3 + $0xa0] sm:$0xf] %v1145_v54  ;;  %v3004_v55 = vpop.permute.xlu1 %1382  ;;  %1702 = vmatprep.mubr.f32.mxu0 %v2498_v52 }
 0x1f2   : > { %v1396_v56 = vsel %vm1390_vm4, %v1381_v46, %v3004_v55 }
 0x1f3   : > { %1414 = vst [vmem:[#allocation3 + $0x148] sm:$0xf] %v1396_v56  ;;  %v1191_v57 = vpop.permute.xlu0 %1190 }
 0x1f4   : > { %v1205_v58 = vsel %vm1202_vm8, %v2953_v4, %v1191_v57  ;;  %v1459_v5 = vld [vmem:[#allocation3 + $0x140] sm:$0xf] }
 0x1f5   : > { %1222 = vst [vmem:[#allocation3 + $0xa0] sm:$0xf0] %v1205_v58  ;;  %v1134_v59 = vpop.permute.xlu1 %1133 }
 0x1f6   : > { %v1146_v60 = vsel %vm829_vm10, %v1132_v53, %v1134_v59  ;;  %v1449_v61 = vld [vmem:[#allocation3 + $0xf0] sm:$0xff] }
 0x1f7   : > { %1163 = vst [vmem:[#allocation3 + $0xa8] sm:$0xf] %v1146_v60  ;;  %1591 = vmatprep.subr.mxu1 %v1449_v61  ;;  %v1255_v62 = vpop.permute.xlu0 %1254 }
 0x1f8   : > { %v1269_v0 = vsel %vm1264_vm5, %v1253_v43, %v1255_v62  ;;  %1592 = vmatpush1.msra.mxu1 %v1448_v63 }
 0x1f9   : > { %1287 = vst [vmem:[#allocation3 + $0xf8] sm:$0xf] %v1269_v0  ;;  %v1193_v1 = vpop.permute.xlu1 %1192 }
 0x1fa   : > { %v1206_v2 = vsel %vm1202_vm8, %v1191_v57, %v1193_v1  ;;  %v1460_v3 = vld [vmem:[#allocation3 + $0x148] sm:$0xf] }
 0x1fb   : > { %1223 = vst [vmem:[#allocation3 + $0xa8] sm:$0xf0] %v1206_v2  ;;  %2192 = vmatprep.subr.msk.mxu0 %vm1468_vm7, %v1460_v3  ;;  %v1318_v4 = vpop.permute.xlu0 %1317 }
 0x1fc   : > { %v1332_v6 = vsel %vm1327_vm6, %v1316_v48, %v1318_v4  ;;  %2193 = vmatpush1.msk.msra.mxu0 %vm1468_vm7, %v1459_v5  ;;  %v1439_v16 = vld [vmem:[#allocation3 + $0xa0] sm:$0xff] }
 0x1fd   : > { %1350 = vst [vmem:[#allocation3 + $0xf8] sm:$0xf0] %v1332_v6  ;;  %v3017_v7 = vpop.permute.xlu1 %1256 }
 0x1fe   : > { %v1270_v8 = vsel %vm1264_vm5, %v1255_v62, %v3017_v7 }
 0x1ff   : > { %1288 = vst [vmem:[#allocation3 + $0x100] sm:$0xf] %v1270_v8  ;;  %v1013_v9 = vpop.permute.xlu0 %1012 }
 0x200   : > { %v1027_v10 = vsel %vm1024_vm9, %v2965_v13, %v1013_v9 }
 0x201   : > { %1044 = vst [vmem:[#allocation3 + $0x58] sm:$0xf] %v1027_v10  ;;  %v3023_v11 = vpop.permute.xlu1 %1319 }
 0x202   : > { %v1333_v12 = vsel %vm1327_vm6, %v1318_v4, %v3023_v11  ;;  %v1440_v14 = vld [vmem:[#allocation3 + $0xa8] sm:$0xff] }
 0x203   : > { %1351 = vst [vmem:[#allocation3 + $0x100] sm:$0xf0] %v1333_v12  ;;  %1593 = vmatprep.subr.mxu1 %v1440_v14  ;;  %v1073_v15 = vpop.permute.xlu0 %1072 }
 0x204   : > { %v1087_v17 = vsel %vm1084_vm11, %v2972_v18, %v1073_v15  ;;  %1594 = vmatpush1.msra.mxu1 %v1439_v16  ;;  %v1450_v26 = vld [vmem:[#allocation3 + $0xf8] sm:$0xff] }
 0x205   : > { %1104 = vst [vmem:[#allocation3 + $0x58] sm:$0xf0] %v1087_v17  ;;  %v1015_v19 = vpop.permute.xlu1 %1014 }
 0x206   : > { %v1028_v20 = vsel %vm1024_vm9, %v1013_v9, %v1015_v19 }
 0x207   : > { %1045 = vst [vmem:[#allocation3 + $0x60] sm:$0xf] %v1028_v20  ;;  %v1136_v13 = vpop.permute.xlu0 %1135 }
 0x208   : > { %v1147_v21 = vsel %vm829_vm10, %v1134_v59, %v1136_v13 }
 0x209   : > { %1164 = vst [vmem:[#allocation3 + $0xb0] sm:$0xf] %v1147_v21  ;;  %v1075_v22 = vpop.permute.xlu1 %1074 }
 0x20a   : > { %v1088_v23 = vsel %vm1084_vm11, %v1073_v15, %v1075_v22  ;;  %v1451_v24 = vld [vmem:[#allocation3 + $0x100] sm:$0xff] }
 0x20b   : > { %1105 = vst [vmem:[#allocation3 + $0x60] sm:$0xf0] %v1088_v23  ;;  %1662 = vmatprep.subr.mxu0 %v1451_v24  ;;  %v1195_v25 = vpop.permute.xlu0 %1194 }
 0x20c   : > { %v1207_v18 = vsel %vm1202_vm8, %v1193_v1, %v1195_v25  ;;  %1663 = vmatpush1.msra.mxu0 %v1450_v26  ;;  %v1430_v36 = vld [vmem:[#allocation3 + $0x58] sm:$0xff] }
 0x20d   : > { %1224 = vst [vmem:[#allocation3 + $0xb0] sm:$0xf0] %v1207_v18  ;;  %v3033_v27 = vpop.permute.xlu1 %1137 }
 0x20e   : > { %v1148_v28 = vsel %vm829_vm10, %v1136_v13, %v3033_v27 }
 0x20f   : > { %1165 = vst [vmem:[#allocation3 + $0xb8] sm:$0xf] %v1148_v28  ;;  %v953_v29 = vpop.permute.xlu0 %952 }
 0x210   : > { %v967_v30 = vsel %vm964_vm12, %v2981_v31, %v953_v29 }
 0x211   : > { %984 = vst [vmem:[#allocation3 + $0x10] sm:$0xf0] %v967_v30  ;;  %v3039_v32 = vpop.permute.xlu1 %1196 }
 0x212   : > { %v1208_v33 = vsel %vm1202_vm8, %v1195_v25, %v3039_v32  ;;  %v1431_v34 = vld [vmem:[#allocation3 + $0x60] sm:$0xff] }
 0x213   : > { %1225 = vst [vmem:[#allocation3 + $0xb8] sm:$0xf0] %v1208_v33  ;;  %1595 = vmatprep.subr.mxu1 %v1431_v34  ;;  %v1017_v35 = vpop.permute.xlu0 %1016 }
 0x214   : > { %v1029_v37 = vsel %vm1024_vm9, %v1015_v19, %v1017_v35  ;;  %1596 = vmatpush1.msra.mxu1 %v1430_v36  ;;  %v1441_v45 = vld [vmem:[#allocation3 + $0xb0] sm:$0xff] }
 0x215   : > { %1046 = vst [vmem:[#allocation3 + $0x68] sm:$0xf] %v1029_v37  ;;  %v955_v38 = vpop.permute.xlu1 %954 }
 0x216   : > { %v968_v39 = vsel %vm964_vm12, %v953_v29, %v955_v38 }
 0x217   : > { %985 = vst [vmem:[#allocation3 + $0x18] sm:$0xf0] %v968_v39  ;;  %v1077_v31 = vpop.permute.xlu0 %1076 }
 0x218   : > { %v1089_v40 = vsel %vm1084_vm11, %v1075_v22, %v1077_v31  ;;  %v1421_v53 = vld [vmem:[#allocation3 + $0x10] sm:$0xff] }
 0x219   : > { %1106 = vst [vmem:[#allocation3 + $0x68] sm:$0xf0] %v1089_v40  ;;  %v3046_v41 = vpop.permute.xlu1 %1018 }
 0x21a   : > { %v1030_v42 = vsel %vm1024_vm9, %v1017_v35, %v3046_v41  ;;  %v1442_v43 = vld [vmem:[#allocation3 + $0xb8] sm:$0xff] }
 0x21b   : > { %1047 = vst [vmem:[#allocation3 + $0x70] sm:$0xf] %v1030_v42  ;;  %1664 = vmatprep.subr.mxu0 %v1442_v43  ;;  %v1385_v44 = vpop.permute.xlu0 %1384 }
 0x21c   : > { %v1397_v46 = vsel %vm1390_vm4, %v3004_v55, %v1385_v44  ;;  %1665 = vmatpush1.msra.mxu0 %v1441_v45 }
 0x21d   : > { %1415 = vst [vmem:[#allocation3 + $0x150] sm:$0xf] %v1397_v46  ;;  %v3052_v47 = vpop.permute.xlu1 %1078 }
 0x21e   : > { %v1090_v48 = vsel %vm1084_vm11, %v1077_v31, %v3052_v47  ;;  %v1422_v50 = vld [vmem:[#allocation3 + $0x18] sm:$0xff] }
 0x21f   : > { %1107 = vst [vmem:[#allocation3 + $0x70] sm:$0xf0] %v1090_v48  ;;  %1597 = vmatprep.subr.mxu1 %v1422_v50  ;;  %v957_v51 = vpop.permute.xlu0 %956  ;;  %v1850_v48 = vlaneseq }
 0x220   : > { %v969_v54 = vsel %vm964_vm12, %v955_v38, %v957_v51  ;;  %1598 = vmatpush1.msra.mxu1 %v1421_v53  ;;  %v1432_v63 = vld [vmem:[#allocation3 + $0x68] sm:$0xff] }
 0x221   : > { %986 = vst [vmem:[#allocation3 + $0x20] sm:$0xf0] %v969_v54  ;;  %v1387_v56 = vpop.permute.xlu1 %1386  ;;  %2191 = vmatmul.mubr.msk.f32.vlgmr.msra.gmra.mxu1 %vm1464_vm13, %v2997_v49  ;;  %v1851_v50 = vand.u32 127, %v1850_v48 }
 0x222   : > { %v1398_v55 = vsel %vm1390_vm4, %v1385_v44, %v1387_v56  ;;  %1773 = vmatprep.mubr.f32.mxu1 %v2498_v52 }
 0x223   : > { %1416 = vst [vmem:[#allocation3 + $0x158] sm:$0xf] %v1398_v55  ;;  %v1259_v57 = vpop.permute.xlu0 %1258  ;;  %v1860_v53 = vcvt.s32.f32 %v1851_v50 }
 0x224   : > { %v1271_v58 = vsel %vm1264_vm5, %v3017_v7, %v1259_v57  ;;  %v1461_v5 = vld [vmem:[#allocation3 + $0x150] sm:$0xf] }
 0x225   : > { %1289 = vst [vmem:[#allocation3 + $0x108] sm:$0xf] %v1271_v58  ;;  %v3063_v59 = vpop.permute.xlu1 %958  ;;  %v1869_v55 = vadd.f32 0.5, %v1860_v53 }
 0x226   : > { %v970_v60 = vsel %vm964_vm12, %v957_v51, %v3063_v59  ;;  %v1433_v61 = vld [vmem:[#allocation3 + $0x70] sm:$0xff]  ;;  %v1852_v51 = vadd.s32 128, %v1851_v50 }
 0x227   : > { %987 = vst [vmem:[#allocation3 + $0x28] sm:$0xf0] %v970_v60  ;;  %1666 = vmatprep.subr.mxu0 %v1433_v61  ;;  %v1322_v62 = vpop.permute.xlu0 %1321  ;;  %v1878_v60 = vmul.f32 0.029411765, %v1869_v55 }
 0x228   : > { %v1334_v0 = vsel %vm1327_vm6, %v3023_v11, %v1322_v62  ;;  %1667 = vmatpush1.msra.mxu0 %v1432_v63  ;;  %v1423_v11 = vld [vmem:[#allocation3 + $0x20] sm:$0xff]  ;;  %v1861_v54 = vcvt.s32.f32 %v1852_v51 }
 0x229   : > { %1352 = vst [vmem:[#allocation3 + $0x108] sm:$0xf0] %v1334_v0  ;;  %v3069_v1 = vpop.permute.xlu1 %1260  ;;  %v1855_v0 = vadd.s32 512, %v1851_v50 }
 0x22a   : > { %v1272_v2 = vsel %vm1264_vm5, %v1259_v57, %v3069_v1  ;;  %v1462_v3 = vld [vmem:[#allocation3 + $0x158] sm:$0xf]  ;;  %v1870_v57 = vadd.f32 0.5, %v1861_v54 }
 0x22b   : > { %1290 = vst [vmem:[#allocation3 + $0x110] sm:$0xf] %v1272_v2  ;;  %2195 = vmatprep.subr.msk.mxu1 %vm1468_vm7, %v1462_v3  ;;  %v1140_v4 = vpop.permute.xlu0 %1139 }
 0x22c   : > { %v1149_v6 = vsel %vm829_vm10, %v3033_v27, %v1140_v4  ;;  %2196 = vmatpush1.msk.msra.mxu1 %vm1468_vm7, %v1461_v5  ;;  %v1879_v61 = vmul.f32 0.029411765, %v1870_v57  ;;  %v1856_v5 = vadd.s32 640, %v1851_v50 }
 0x22d   : > { %1166 = vst [vmem:[#allocation3 + $0xc0] sm:$0xf] %v1149_v6  ;;  %v1324_v7 = vpop.permute.xlu1 %1323 }
 0x22e   : > { %v1335_v8 = vsel %vm1327_vm6, %v1322_v62, %v1324_v7  ;;  %v1424_v9 = vld [vmem:[#allocation3 + $0x28] sm:$0xff]  ;;  %v1888_v2 = vfloor.f32 %v1879_v61 }
 0x22f   : > { %1353 = vst [vmem:[#allocation3 + $0x110] sm:$0xf0] %v1335_v8  ;;  %1668 = vmatprep.subr.mxu0 %v1424_v9  ;;  %v1199_v10 = vpop.permute.xlu0 %1198 }
 0x230   : > { %v1209_v12 = vsel %vm1202_vm8, %v3039_v32, %v1199_v10  ;;  %1669 = vmatpush1.msra.mxu0 %v1423_v11  ;;  %v1452_v22 = vld [vmem:[#allocation3 + $0x108] sm:$0xff]  ;;  %v1865_v11 = vcvt.s32.f32 %v1856_v5 }
 0x231   : > { %1226 = vst [vmem:[#allocation3 + $0xc0] sm:$0xf0] %v1209_v12  ;;  %v1142_v14 = vpop.permute.xlu1 %1141  ;;  %2219 = vmatprep.subr.mxu0 %v2498_v52  ;;  %2194 = vmatmul.mubr.msk.f32.vlgmr.msra.gmra.mxu0 %vm1464_vm13, %v2997_v49  ;;  %v3116_v12 = vadd.s32 768, %v1851_v50 }
 0x232   : > { %v1150_v15 = vsel %vm829_vm10, %v1140_v4, %v1142_v14  ;;  %1168 = vst.msk [vmem:[#allocation3 + $0xd0] sm:$0xf] %vm929_vm3, %v1142_v14  ;;  %2229 = vmatprep.mubr.msk.f32.mxu0 %vm2505_vm14, %v2498_v52 }
 0x233   : > { %1167 = vst [vmem:[#allocation3 + $0xc8] sm:$0xf] %v1150_v15  ;;  %v1389_v16 = vpop.permute.xlu0 %1388 }
 0x234   : > { %v1399_v17 = vsel %vm1390_vm4, %v1387_v56, %v1389_v16  ;;  %v1853_v56 = vadd.s32 256, %v1851_v50 }
 0x235   : > { %1417 = vst.msk [vmem:[#allocation3 + $0x160] sm:$0xf] %vm929_vm3, %v1399_v17  ;;  %v1201_v19 = vpop.permute.xlu1 %1200  ;;  %v3118_v17 = vadd.s32 1024, %v1851_v50 }
 0x236   : > { %v1210_v20 = vsel %vm1202_vm8, %v1199_v10, %v1201_v19  ;;  %1228 = vst.msk [vmem:[#allocation3 + $0xd0] sm:$0xf0] %vm990_vm15, %v1201_v19  ;;  %v1453_v13 = vld [vmem:[#allocation3 + $0x110] sm:$0xff]  ;;  %v1862_v58 = vcvt.s32.f32 %v1853_v56  ;;  %vm1957_vm8 = vcmask 523264  }
 0x237   : > { %1227 = vst [vmem:[#allocation3 + $0xc8] sm:$0xf0] %v1210_v20  ;;  %1733 = vmatprep.subr.mxu1 %v1453_v13  ;;  %v1023_v21 = vpop.permute.xlu0 %1022  ;;  %v1874_v13 = vadd.f32 0.5, %v1865_v11 }
 0x238   : > { %1050 = vst.msk [vmem:[#allocation3 + $0x88] sm:$0xf] %vm929_vm3, %v1023_v21  ;;  %1734 = vmatpush1.msra.mxu1 %v1452_v22  ;;  %v1443_v33 = vld [vmem:[#allocation3 + $0xc0] sm:$0xff]  ;;  %v1871_v62 = vadd.f32 0.5, %v1862_v58  ;;  %v1866_v22 = vcvt.s32.f32 %v3116_v12 }
 0x239   : > { %v1021_v23 = vpop.permute.xlu1 %1020 }
 0x23a   : > { %v1031_v24 = vsel %vm1024_vm9, %v3046_v41, %v1021_v23  ;;  %v1032_v25 = vsel %vm1024_vm9, %v1021_v23, %v1023_v21  ;;  %v1880_v3 = vmul.f32 0.029411765, %v1871_v62  ;;  %v1858_v21 = vadd.s32 896, %v1851_v50 }
 0x23b   : > { %1048 = vst [vmem:[#allocation3 + $0x78] sm:$0xf] %v1031_v24  ;;  %1049 = vst [vmem:[#allocation3 + $0x80] sm:$0xf] %v1032_v25  ;;  %v1083_v26 = vpop.permute.xlu0 %1082  ;;  %v1868_v25 = vcvt.s32.f32 %v3118_v17 }
 0x23c   : > { %1110 = vst.msk [vmem:[#allocation3 + $0x88] sm:$0xf0] %vm990_vm15, %v1083_v26  ;;  %v1463_v18 = vld [vmem:[#allocation3 + $0x160] sm:$0xf]  ;;  %v1889_v8 = vfloor.f32 %v1880_v3 }
 0x23d   : > { %v1081_v27 = vpop.permute.xlu1 %1080  ;;  %2220 = vmatpush3.msk.msra.mxu0 %vm1468_vm7, %v1463_v18  ;;  %v1445_v43 = vld [vmem:[#allocation3 + $0xd0] sm:$0xff] }
 0x23e   : > { %v1091_v28 = vsel %vm1084_vm11, %v3052_v47, %v1081_v27  ;;  %v1092_v29 = vsel %vm1084_vm11, %v1081_v27, %v1083_v26  ;;  %v1444_v30 = vld [vmem:[#allocation3 + $0xc8] sm:$0xff]  ;;  %2221 = vmatprep.subr.mxu0 %v2498_v52  ;;  %v1898_v16 = vmul.f32 34.0, %v1889_v8  ;;  %v1883_v27 = vmul.f32 0.029411765, %v1874_v13 }
 0x23f   : > { %1108 = vst [vmem:[#allocation3 + $0x78] sm:$0xf0] %v1091_v28  ;;  %1109 = vst [vmem:[#allocation3 + $0x80] sm:$0xf0] %v1092_v29  ;;  %1735 = vmatprep.subr.mxu1 %v1444_v30  ;;  %v1326_v32 = vpop.permute.xlu0 %1325  ;;  %v1867_v28 = vcvt.s32.f32 %v1858_v21  ;;  %v1875_v29 = vadd.f32 0.5, %v1866_v22 }
 0x240   : > { %v1336_v34 = vsel %vm1327_vm6, %v1324_v7, %v1326_v32  ;;  %1736 = vmatpush1.msra.mxu1 %v1443_v33  ;;  %v1897_v7 = vmul.f32 34.0, %v1888_v2  ;;  %v1907_v24 = vsub.f32 %v1862_v58, %v1898_v16 }
 0x241   : > { %1354 = vst.msk [vmem:[#allocation3 + $0x118] sm:$0xf0] %vm990_vm15, %v1336_v34  ;;  %v1263_v35 = vpop.permute.xlu1 %1262  ;;  %v1877_v34 = vadd.f32 0.5, %v1868_v25 }
 0x242   : > { %v1273_v36 = vsel %vm1264_vm5, %v3069_v1, %v1263_v35  ;;  %v1887_v1 = vfloor.f32 %v1878_v60  ;;  %v1906_v15 = vsub.f32 %v1861_v54, %v1897_v7  ;;  %vm1916_vm1 = vcmp.lt.f32.partialorder %v1907_v24, 32.0 }
 0x243   : > { %1291 = vst.msk [vmem:[#allocation3 + $0x118] sm:$0xf] %vm929_vm3, %v1273_v36  ;;  %v963_v37 = vpop.permute.xlu0 %962  ;;  %v1436_v45 = vld [vmem:[#allocation3 + $0x88] sm:$0xff] }
 0x244   : > { %991 = vst.msk [vmem:[#allocation3 + $0x40] sm:$0xf0] %vm990_vm15, %v963_v37  ;;  %v1896_v6 = vmul.f32 34.0, %v1887_v1  ;;  %vm1915_vm0 = vcmp.lt.f32.partialorder %v1906_v15, 32.0 }
 0x245   : > { %v961_v38 = vpop.permute.xlu1 %960  ;;  %v2201_v33 = vsel %vm1915_vm0, 1.0, %v2498_v52 }
 0x246   : > { %v971_v39 = vsel %vm964_vm12, %v3063_v59, %v961_v38  ;;  %v972_v31 = vsel %vm964_vm12, %v961_v38, %v963_v37  ;;  %v1435_v40 = vld [vmem:[#allocation3 + $0x80] sm:$0xff]  ;;  %v1434_v41 = vld [vmem:[#allocation3 + $0x78] sm:$0xff]  ;;  %v1854_v59 = vadd.s32 384, %v1851_v50  ;;  %v1905_v14 = vsub.f32 %v1860_v53, %v1896_v6 }
 0x247   : > { %988 = vst [vmem:[#allocation3 + $0x30] sm:$0xf0] %v971_v39  ;;  %989 = vst [vmem:[#allocation3 + $0x38] sm:$0xf0] %v972_v31  ;;  %1737 = vmatprep.subr.mxu1 %v1435_v40  ;;  %v1892_v37 = vfloor.f32 %v1883_v27  ;;  %v1876_v38 = vadd.f32 0.5, %v1867_v28 }
 0x248   : > { %1738 = vmatpush1.msra.mxu1 %v1434_v41  ;;  %v1863_v63 = vcvt.s32.f32 %v1854_v59  ;;  %vm1914_vm10 = vcmp.lt.f32.partialorder %v1905_v14, 32.0  ;;  %v1884_v40 = vmul.f32 0.029411765, %v1875_v29 }
 0x249   : > { %v2200_v30 = vsel %vm1914_vm10, 1.0, %v2498_v52 }
 0x24a   : > { %v1454_v42 = vld [vmem:[#allocation3 + $0x118] sm:$0xff]  ;;  %v1872_v4 = vadd.f32 0.5, %v1863_v63  ;;  %v1893_v51 = vfloor.f32 %v1884_v40 }
 0x24b   : > { %2222 = vmatpush3.msra.mxu0 %v1454_v42  ;;  %v1427_v47 = vld [vmem:[#allocation3 + $0x40] sm:$0xff]  ;;  %v2202_v42 = vsel %vm1916_vm1, 1.0, %v2498_v52 }
 0x24c   : > { %2223 = vmatprep.subr.mxu0 %v2498_v52  ;;  %v1881_v9 = vmul.f32 0.029411765, %v1872_v4  ;;  %v1902_v62 = vmul.f32 34.0, %v1893_v51 }
 0x24d   : > { %2224 = vmatpush3.msra.mxu0 %v1445_v43  ;;  %v1886_v43 = vmul.f32 0.029411765, %v1877_v34 }
 0x24e   : > { %2225 = vmatprep.subr.mxu0 %v2498_v52  ;;  %v1426_v44 = vld [vmem:[#allocation3 + $0x38] sm:$0xff]  ;;  %v1425_v46 = vld [vmem:[#allocation3 + $0x30] sm:$0xff]  ;;  %v1890_v19 = vfloor.f32 %v1881_v9  ;;  %v1911_v6 = vsub.f32 %v1866_v22, %v1902_v62 }
 0x24f   : > { %1739 = vmatprep.subr.mxu1 %v1426_v44  ;;  %2226 = vmatpush3.msra.mxu0 %v1436_v45  ;;  %v1901_v45 = vmul.f32 34.0, %v1892_v37  ;;  %v1895_v56 = vfloor.f32 %v1886_v43  ;;  %v2506_v43 = vmov 0  }
 0x250   : > { %1740 = vmatpush1.msra.mxu1 %v1425_v46  ;;  %2227 = vmatprep.subr.mxu0 %v2498_v52  ;;  %v1899_v26 = vmul.f32 34.0, %v1890_v19  ;;  %v1885_v46 = vmul.f32 0.029411765, %v1876_v38  ;;  %vm1920_vm5 = vcmp.lt.f32.partialorder %v1911_v6, 32.0 }
 0x251   : > { %2197 = vmatmul.mubr.msk.f32.vlgmr.msra.gmra.mxu1 %vm1464_vm13, %v2997_v49  ;;  %2228 = vmatpush3.msra.mxu0 %v1427_v47  ;;  %v1910_v57 = vsub.f32 %v1865_v11, %v1901_v45  ;;  %v1904_v1 = vmul.f32 34.0, %v1895_v56  ;;  %v2206_v17 = vsel %vm1920_vm5, 1.0, %v2498_v52  ;;  %v1989_v56 = vld [vmem:[%s3225_s2] sm:$0xff] }
 0x252   : > { %2230 = vmatmul.mubr.msk.f32.vlgmr.msra.gmra.mxu0 %vm1464_vm13, %v2997_v49  ;;  %v1864_v49 = vcvt.s32.f32 %v1855_v0  ;;  %v1908_v35 = vsub.f32 %v1863_v63, %v1899_v26  ;;  %v1894_v58 = vfloor.f32 %v1885_v46  ;;  %2339 = vset.pattern.permute.xlu0 %v2506_v43 }
 0x253   : > { %vm1919_vm4 = vcmp.lt.f32.partialorder %v1910_v57, 32.0  ;;  %v1913_v9 = vsub.f32 %v1868_v25, %v1904_v1  ;;  %2340 = vset.pattern.permute.xlu1 %v2506_v43 }
 0x254   : > { %v1873_v10 = vadd.f32 0.5, %v1864_v49  ;;  %vm1917_vm2 = vcmp.lt.f32.partialorder %v1908_v35, 32.0  ;;  %v1903_v3 = vmul.f32 34.0, %v1894_v58  ;;  %v2205_v8 = vsel %vm1919_vm4, 1.0, %v2498_v52  ;;  %v1991_v58 = vld [vmem:[%s3226_s3] sm:$0xff] }
 0x255   : > { %v2203_v54 = vsel %vm1917_vm2, 1.0, %v2498_v52  ;;  %vm1922_vm6 = vcmp.lt.f32.partialorder %v1913_v9, 32.0 }
 0x256   : > { %v1882_v20 = vmul.f32 0.029411765, %v1873_v10  ;;  %v1912_v11 = vsub.f32 %v1867_v28, %v1903_v3  ;;  %v2208_v13 = vsel %vm1922_vm6, 1.0, %v2498_v52 }
 0x258   : > { %v1891_v18 = vfloor.f32 %v1882_v20  ;;  %vm1921_vm7 = vcmp.lt.f32.partialorder %v1912_v11, 32.0 }
 0x259   : > { %v2207_v22 = vsel %vm1921_vm7, 1.0, %v2498_v52 }
 0x25a   : > { %v1900_v36 = vmul.f32 34.0, %v1891_v18 }
 0x25c   : > { %v1909_v44 = vsub.f32 %v1864_v49, %v1900_v36 }
 0x25e   : > { %vm1918_vm3 = vcmp.lt.f32.partialorder %v1909_v44, 32.0 }
 0x25f   : > { %v2204_v0 = vsel %vm1918_vm3, 1.0, %v2498_v52 }
 0x2b0   : > { %v3121_v23 = vpop.f32.mrf.mxu0 }
 0x2b1   : > { %v1941_v39 = vmul.f32 %v2200_v30, %v3121_v23 }
 0x2b2   : > { %v3125_v32 = vpop.f32.mrf.mxu0 }
 0x2b3   : > { %v1942_v31 = vmul.f32 %v2201_v33, %v3125_v32  ;;  %v1962_v47 = vmul.f32 %v1941_v39, %v3121_v23 }
 0x2b5   : > { %v1963_v48 = vmul.f32 %v1942_v31, %v3125_v32  ;;  %v1950_v55 = vadd.f32 %v1942_v31, %v1941_v39 }
 0x2b7   : > { %v1971_v59 = vadd.f32 %v1963_v48, %v1962_v47 }
 0x2e1   : > { %v3130_v41 = vpop.f32.mrf.mxu1 }
 0x2e2   : > { %v1943_v50 = vmul.f32 %v2202_v42, %v3130_v41 }
 0x2e3   : > { %v3136_v53 = vpop.f32.mrf.mxu1 }
 0x2e4   : > { %v1964_v60 = vmul.f32 %v1943_v50, %v3130_v41  ;;  %v1944_v61 = vmul.f32 %v2203_v54, %v3136_v53  ;;  %v1951_v2 = vadd.f32 %v1950_v55, %v1943_v50 }
 0x2e6   : > { %v1972_v4 = vadd.f32 %v1971_v59, %v1964_v60  ;;  %v1965_v49 = vmul.f32 %v1944_v61, %v3136_v53  ;;  %v1952_v10 = vadd.f32 %v1951_v2, %v1944_v61 }
 0x2e8   : > { %v1973_v12 = vadd.f32 %v1972_v4, %v1965_v49 }
 0x2f1   : > { %v3141_v63 = vpop.f32.mrf.mxu0 }
 0x2f2   : > { %v1945_v5 = vmul.f32 %v2204_v0, %v3141_v63 }
 0x2f3   : > { %v3146_v7 = vpop.f32.mrf.mxu0 }
 0x2f4   : > { %v1966_v14 = vmul.f32 %v1945_v5, %v3141_v63  ;;  %v1946_v15 = vmul.f32 %v2205_v8, %v3146_v7  ;;  %v1953_v16 = vadd.f32 %v1952_v10, %v1945_v5 }
 0x2f6   : > { %v1974_v19 = vadd.f32 %v1973_v12, %v1966_v14  ;;  %v1967_v20 = vmul.f32 %v1946_v15, %v3146_v7  ;;  %v1954_v24 = vadd.f32 %v1953_v16, %v1946_v15 }
 0x2f8   : > { %v1975_v28 = vadd.f32 %v1974_v19, %v1967_v20 }
 0x311   : > { %v1775_v21 = vpop.f32.mrf.mxu1 }
 0x312   : > { %v1947_v25 = vmul.f32 %v2206_v17, %v1775_v21  ;;  %v1846_v26 = vpop.f32.mrf.mxu0 }
 0x313   : > { %v1949_v18 = vmul.f32 %v2208_v13, %v1846_v26  ;;  %v1777_v27 = vpop.f32.mrf.mxu1 }
 0x314   : > { %v1955_v29 = vadd.f32 %v1954_v24, %v1947_v25  ;;  %v1968_v30 = vmul.f32 %v1947_v25, %v1775_v21  ;;  %v1948_v33 = vmul.f32 %v2207_v22, %v1777_v27  ;;  %v2231_v34 = vpop.f32.mrf.mxu0 }
 0x315   : > { %v1970_v35 = vmul.f32 %v1949_v18, %v1846_v26  ;;  %v1958_v36 = vsel %vm1957_vm8, %v1949_v18, 0.0 }
 0x316   : > { %v1976_v37 = vadd.f32 %v1975_v28, %v1968_v30  ;;  %v1956_v38 = vadd.f32 %v1955_v29, %v1948_v33  ;;  %v1969_v39 = vmul.f32 %v1948_v33, %v1777_v27 }
 0x317   : > { %v1978_v52 = vsel %vm1957_vm8, %v1970_v35, 0.0 }
 0x318   : > { %v1977_v31 = vadd.f32 %v1976_v37, %v1969_v39  ;;  %v1959_v40 = vadd.f32 %v1958_v36, %v1956_v38 }
 0x31a   : > { %1960 = vadd.xlane.f32.xlu1 %v1959_v40  ;;  %v1979_v42 = vadd.f32 %v1978_v52, %v1977_v31 }
 0x31c   : > { %1980 = vadd.xlane.f32.xlu0 %v1979_v42 }
 0x3a3   : > { %v1961_v44 = vpop.xlane.xlu1 %1960 }
 0x3a4   : > { %v1982_v45 = vmul.f32 0.0009765625, %v1961_v44 }
 0x3a5   : > { %v1981_v46 = vpop.xlane.xlu0 %1980 }
 0x3a6   : > { %v1984_v47 = vmul.f32 %v1982_v45, %v1982_v45  ;;  %v1983_v48 = vmul.f32 0.0009765625, %v1981_v46 }
 0x3a8   : > { %v1985_v50 = vsub.f32 %v1983_v48, %v1984_v47 }
 0x3aa   : > { %v1986_v51 = vmax.f32 %v1985_v50, 0.0 }
 0x3ac   : > { %v1987_v54 = vadd.f32 1e-05, %v1986_v51 }
 0x3ae   : > { %2351 = vrsqrt.f32 %v1987_v54 }
 0x3bb   : > { %v2352_v55 = vpop.eup %2351 }
 0x3bc   : > { %v1990_v57 = vmul.f32 %v2352_v55, %v1989_v56 }
 0x3be   : > { %1996 = vperm.xlu0 %2339, %v1990_v57   ;;  %v1992_v59 = vmul.f32 %v1990_v57, %v1982_v45 }
 0x3c0   : > { %v1993_v60 = vsub.f32 %v1991_v58, %v1992_v59 }
 0x3c2   : > { %2010 = vperm.xlu1 %2340, %v1993_v60  }
 0x439   : > { %v1997_v61 = vpop.permute.xlu0 %1996 }
 0x43a   : > { %v1999_v62 = vmul.f32 %v1997_v61, %v3121_v23  ;;  %v2000_v0 = vmul.f32 %v1997_v61, %v3125_v32  ;;  %v2001_v1 = vmul.f32 %v1997_v61, %v3130_v41  ;;  %v2002_v2 = vmul.f32 %v1997_v61, %v3136_v53 }
 0x43b   : > { %v2003_v3 = vmul.f32 %v1997_v61, %v3141_v63  ;;  %v2004_v4 = vmul.f32 %v1997_v61, %v3146_v7  ;;  %v2005_v49 = vmul.f32 %v1997_v61, %v1775_v21  ;;  %v2006_v5 = vmul.f32 %v1997_v61, %v1777_v27 }
 0x43c   : > { %v2007_v6 = vmul.f32 %v1997_v61, %v1846_v26 }
 0x43d   : > { %v2011_v8 = vpop.permute.xlu1 %2010 }
 0x43e   : > { %v2013_v9 = vadd.f32 %v2011_v8, %v1999_v62  ;;  %v2014_v10 = vadd.f32 %v2011_v8, %v2000_v0  ;;  %v2015_v23 = vadd.f32 %v2011_v8, %v2001_v1  ;;  %v2016_v11 = vadd.f32 %v2011_v8, %v2002_v2 }
 0x43f   : > { %v2017_v32 = vadd.f32 %v2011_v8, %v2003_v3  ;;  %v2018_v41 = vadd.f32 %v2011_v8, %v2004_v4  ;;  %v2019_v12 = vadd.f32 %v2011_v8, %v2005_v49  ;;  %v2020_v53 = vadd.f32 %v2011_v8, %v2006_v5 }
 0x440   : > { %v2021_v63 = vadd.f32 %v2011_v8, %v2007_v6  ;;  %2022 = vst [vmem:[%s266_s8] sm:$0xff] %v2013_v9  ;;  %2023 = vst [vmem:[%s266_s8 + $0x8] sm:$0xff] %v2014_v10 }
 0x441   : > { %2024 = vst [vmem:[%s266_s8 + $0x10] sm:$0xff] %v2015_v23  ;;  %2025 = vst [vmem:[%s266_s8 + $0x18] sm:$0xff] %v2016_v11 }
 0x442   : > { %2026 = vst [vmem:[%s266_s8 + $0x20] sm:$0xff] %v2017_v32  ;;  %2027 = vst [vmem:[%s266_s8 + $0x28] sm:$0xff] %v2018_v41 }
 0x443   : > { %2028 = vst [vmem:[%s266_s8 + $0x30] sm:$0xff] %v2019_v12  ;;  %2029 = vst [vmem:[%s266_s8 + $0x38] sm:$0xff] %v2020_v53 }
 0x444   : > { %2030 = vst.msk [vmem:[%s266_s8 + $0x40] sm:$0xff] %vm1957_vm8, %v2021_v63 }
 0x445   : > { %2394 = shalt.err (!%p2391_p3)
}
 0x446   : > { %s2395_s5 = scalar_lea.hbm %s3174_s11, 1152  ;;  %s2399_s22 = scalar_lea.hbm %s3227_s4, 2304 }
 0x447   : > { %p2396_p5 = scmp.ne.s32.totalorder %s3174_s11, %s2395_s5  ;;  %p2400_p10 = scmp.lt.s32.totalorder %s3174_s11, %s3227_s4 }
 0x448   : > { %p2401_p4 = scmp.lt.s32.totalorder %s2399_s22, %s2395_s5 }
 0x449   : > { %p2397_p6 = pnand %p2396_p5, %p2584_p9 }
 0x44a   : > { %p2402_p13 = por %p2401_p4, %p2400_p10 }
 0x44b   : > { %p2398_p7 = pneg %p2397_p6 }
 0x44d   : > { %p2403_p8 = pnand %p2402_p13, %p2398_p7 }
 0x44f   : > { %2406 = shalt.err (!%p2403_p8)
}
 0x450   : > { %2236 = dma.vmem_to_hbm [thread:$0]  (%p2584_p9), %s3176_s9, 1152, %s3174_s11, %s2032_s27  }
 0x451 PF: > { %s2060_s7 = sand.u32 1, %s2441_s15   ;;  %p3238_p11 = scmp.ne.s32.totalorder %s3234_s30, 0 }
 0x452   : > { %p3239_p12 = scmp.ge.s32.totalorder %s2461_s20, 2  ;;  %s2061_s8 = scalar_lea.sflag [#allocation6], %s2060_s7 }
 0x454   : > { %p2243_p0 = pnand %p3239_p12, %p3238_p11 }
 0x456   : > { %p2244_p1 = pneg %p2243_p0 }
 0x458   : > { %2436 = dma.done.wait (%p2244_p1), %s2061_s8, 1152  }
 0x459   : > { %2438 = vsyncadd (%p2244_p1), %s2061_s8, 4294966144  ;;  %s20_s20 = sadd.s32 1, %s2461_s20   ;;  %s3240_s15 = smov %s2445_s16 }
 0x45a   : > { %p17_p2 = scmp.ge.s32.totalorder %s20_s20, 4   ;;  %s3241_s16 = smov %s2449_s17 }
 0x45b   : > { %s3242_s17 = smov %s2589_s29  ;;  %s3243_s18 = smov %s2457_s19 }
 0x45c   : > { %s3244_s19 = smov %s3246_s23  ;;  %19 = sbr.rel (!%p17_p2) target bundleno = 6 (0x6), region = 90 }
 0x461   :  { %2066 = vsyncpa [#allocation5], 1 }
 0x462   :  { %2068 = vsyncpa [#allocation5 + $0x1], 1 }
 0x463   :  { %2069 = vsyncpa [#allocation6], 1 }
 0x464   :  { %2071 = vsyncpa [#allocation6 + $0x1], 1 }

</bundles_post_ra>
